<compile_context>
chip_gen: v7x
topology: tpu7x:2x2x1
jax: 0.10.0
libtpu: 0.0.40
codegen_flags: <defaults>
</compile_context>

<pallas_src>
import math

import jax
import jax.numpy as jnp
from jax import lax
from jax.experimental import pallas as pl
from jax.experimental.pallas import tpu as pltpu

LANE = 128      # f32 vreg lane width
SUBLANE = 8     # f32 vreg sublane count

VMEM_SPEC = pl.BlockSpec(memory_space=pltpu.MemorySpace.VMEM)


def _round_up(v, m):
    return ((v + m - 1) // m) * m


def _cum_offsets(dims):
    offs, o = [], 0
    for d in dims:
        offs.append(o)
        o += d
    return offs


# --------------------------- parameter construction ------------------------ #

def _linear_params(key, d_in, d_out):
    kw, kb = jax.random.split(key)
    bound = 1.0 / math.sqrt(d_in)
    w = jax.random.uniform(kw, (d_in, d_out), jnp.float32, -bound, bound)
    b = jax.random.uniform(kb, (1, d_out), jnp.float32, -bound, bound)
    return w, b


def _lstm_params(key, d_in, h):
    """Per-gate LSTMCell params (PyTorch gate order i, f, g, o); b = b_ih + b_hh."""
    k1, k2, k3, k4 = jax.random.split(key, 4)
    bound = 1.0 / math.sqrt(h)
    wih = jax.random.uniform(k1, (4, d_in, h), jnp.float32, -bound, bound)
    whh = jax.random.uniform(k2, (4, h, h), jnp.float32, -bound, bound)
    b_ih = jax.random.uniform(k3, (4, 1, h), jnp.float32, -bound, bound)
    b_hh = jax.random.uniform(k4, (4, 1, h), jnp.float32, -bound, bound)
    return wih, whh, b_ih + b_hh


def _pack_lstm_padded(keys, in_dims, h_dims, in_offs, h_offs, in_pad, h_pad):
    """Multi-modality block-diagonal LSTMCell with each of the 4 gates padded to
    `h_pad` lanes.  Everything outside the real blocks is exactly zero, so the
    padded lanes of h/c stay identically zero through the recurrence
    (sigmoid(0)*tanh(0) terms vanish)."""
    wih = jnp.zeros((in_pad, 4 * h_pad), jnp.float32)
    whh = jnp.zeros((h_pad, 4 * h_pad), jnp.float32)
    b = jnp.zeros((1, 4 * h_pad), jnp.float32)
    for key, d, h, io, ho in zip(keys, in_dims, h_dims, in_offs, h_offs):
        wih_m, whh_m, b_m = _lstm_params(key, d, h)
        for g in range(4):
            cs = g * h_pad + ho
            wih = wih.at[io:io + d, cs:cs + h].set(wih_m[g])
            whh = whh.at[ho:ho + h, cs:cs + h].set(whh_m[g])
            b = b.at[:, cs:cs + h].set(b_m[g])
    return wih, whh, b


def _pack_blocks(keys, in_dims, out_dims, in_offs, out_offs, in_pad, out_pad):
    """Block-structured Linear layer (zero outside the blocks)."""
    w = jnp.zeros((in_pad, out_pad), jnp.float32)
    b = jnp.zeros((1, out_pad), jnp.float32)
    for key, di, do, io, oo in zip(keys, in_dims, out_dims, in_offs, out_offs):
        wm, bm = _linear_params(key, di, do)
        w = w.at[io:io + di, oo:oo + do].set(wm)
        b = b.at[:, oo:oo + do].set(bm)
    return w, b


def init_mb_params(key, config):
    d_dims = tuple(config['input_dims'])
    z_dims = (config['zl_size'], config['za_size'], config['zv_size'])
    f_dims = (config['fl_size'], config['fa_size'], config['fv_size'])
    fy, out_dim = config['fy_size'], config['output_dim']

    d_tot, hz, hf = sum(d_dims), sum(z_dims), sum(f_dims)
    HZP = _round_up(hz, LANE)          # padded encoder hidden width (per gate)
    FP = _round_up(hf, LANE)           # padded decoder/f hidden width (per gate)
    ZW = len(z_dims) * LANE            # z_all width: one 128-lane block / modality
    DOUT_P = _round_up(d_tot, LANE)    # padded reconstruction width
    FYP = _round_up(fy, LANE)
    YP = _round_up(out_dim, LANE)

    d_offs = _cum_offsets(d_dims)
    z_offs = _cum_offsets(z_dims)
    f_offs = _cum_offsets(f_dims)
    z_lane_offs = [m * LANE for m in range(len(z_dims))]

    keys = list(jax.random.split(key, 24))
    ki = iter(keys)
    k_enc = [next(ki) for _ in range(3)]
    k_encfc = [next(ki) for _ in range(3)]
    k_dec = [next(ki) for _ in range(3)]
    k_decfc = [next(ki) for _ in range(3)]
    k_zf1 = [next(ki) for _ in range(3)]
    k_zf2 = [next(ki) for _ in range(3)]
    k_fy1 = next(ki)
    k_fy2 = next(ki)

    p = {}
    # encoders: 3 modalities batched block-diagonally, gates padded to 128 lanes
    p['enc_wih'], p['enc_whh'], p['enc_b'] = _pack_lstm_padded(
        k_enc, d_dims, z_dims, d_offs, z_offs, d_tot, HZP)
    # encoder fc: hidden [zl|za|zv|0] -> modality-major 128-lane blocks
    p['enc_fc_w'], p['enc_fc_b'] = _pack_blocks(
        k_encfc, z_dims, z_dims, z_offs, z_lane_offs, HZP, ZW)
    # z -> f MLPs
    p['zf_w1'], p['zf_b1'] = _pack_blocks(
        k_zf1, z_dims, f_dims, z_lane_offs, f_offs, ZW, FP)
    p['zf_w2'], p['zf_b2'] = _pack_blocks(
        k_zf2, f_dims, f_dims, f_offs, f_offs, FP, FP)
    # decoders (gate-padded); steps i>0 feed the previous hidden -> precompute Wih+Whh
    dec_wih, dec_whh, dec_b = _pack_lstm_padded(
        k_dec, f_dims, f_dims, f_offs, f_offs, FP, FP)
    p['dec_wih'] = dec_wih
    p['dec_wcomb'] = dec_wih + dec_whh
    p['dec_b'] = dec_b
    p['dec_fc_w'], p['dec_fc_b'] = _pack_blocks(
        k_decfc, f_dims, d_dims, f_offs, d_offs, FP, DOUT_P)
    # prediction head
    p['fy_w1'], p['fy_b1'] = _pack_blocks([k_fy1], [hf], [fy], [0], [0], FP, FYP)
    p['fy_w2'], p['fy_b2'] = _pack_blocks([k_fy2], [fy], [out_dim], [0], [0], FYP, YP)
    return p


# ------------------------------ forward pass ------------------------------- #

def m_b_forward(params, x, config, rng_key):
    d_dims = tuple(config['input_dims'])
    z_dims = (config['zl_size'], config['za_size'], config['zv_size'])
    f_dims = (config['fl_size'], config['fa_size'], config['fv_size'])
    out_dim = config['output_dim']

    t, n, d_tot = x.shape
    hz, hf = sum(z_dims), sum(f_dims)
    HZP = _round_up(hz, LANE)
    FP = _round_up(hf, LANE)
    ZW = len(z_dims) * LANE
    DOUT_P = _round_up(d_tot, LANE)
    NP = _round_up(n, SUBLANE)
    YP = params['fy_b2'].shape[1]
    f32 = jnp.float32

    # batch-pad with zero rows and flatten time into rows:
    # step i occupies rows [i*NP, (i+1)*NP)  (sublane-aligned groups)
    x_pad = jnp.zeros((t, NP, d_tot), f32).at[:, :n, :].set(x.astype(f32))
    x2d = x_pad.reshape(t * NP, d_tot)

    # Gaussian samples for the three MMD terms, one zero-padded 128-lane block
    # per modality (zero padding leaves norms / dot products unchanged).
    mkeys = jax.random.split(rng_key, 3)
    gauss = jnp.zeros((NP, ZW), f32)
    for m, (k, s) in enumerate(zip(mkeys, z_dims)):
        gauss = gauss.at[:n, m * LANE:m * LANE + s].set(
            jax.random.normal(k, (n, s), f32))

    def lstm_step(gates, c, hp):
        # gate slices are 128-lane aligned views (hp is a multiple of 128)
        i_g = jax.nn.sigmoid(gates[:, 0 * hp:1 * hp])
        f_g = jax.nn.sigmoid(gates[:, 1 * hp:2 * hp])
        g_g = jnp.tanh(gates[:, 2 * hp:3 * hp])
        o_g = jax.nn.sigmoid(gates[:, 3 * hp:4 * hp])
        c_new = f_g * c + i_g * g_g
        h_new = o_g * jnp.tanh(c_new)
        return h_new, c_new

    def fused_kernel(x_ref, gauss_ref,
                     enc_wih_ref, enc_whh_ref, enc_b_ref,
                     enc_fc_w_ref, enc_fc_b_ref,
                     zf_w1_ref, zf_b1_ref, zf_w2_ref, zf_b2_ref,
                     dec_wih_ref, dec_wcomb_ref, dec_b_ref,
                     dec_fc_w_ref, dec_fc_b_ref,
                     fy_w1_ref, fy_b1_ref, fy_w2_ref, fy_b2_ref,
                     dec_out_ref, y_ref, mmd_ref,
                     gx_ref, hdec_ref):
        # ------------- encoders (3 modalities batched, gates 128-padded) -------
        # ONE matmul for every timestep's input-to-hidden term, parked in VMEM.
        gx_ref[...] = (jnp.dot(x_ref[...], enc_wih_ref[...],
                               preferred_element_type=f32) + enc_b_ref[...])

        h0, c0 = lstm_step(gx_ref[pl.ds(0, NP), :],
                           jnp.zeros((NP, HZP), f32), HZP)          # h_{-1} = 0

        def enc_body(i, hc):
            h, c = hc
            row = pl.multiple_of(i * NP, NP)
            gates = gx_ref[pl.ds(row, NP), :] + jnp.dot(
                h, enc_whh_ref[...], preferred_element_type=f32)
            return lstm_step(gates, c, HZP)

        h_enc, _ = lax.fori_loop(1, t, enc_body, (h0, c0))

        # last hidden -> z, laid out as [zl|0|za|0|zv|0] (128 lanes / modality)
        z_all = (jnp.dot(h_enc, enc_fc_w_ref[...], preferred_element_type=f32)
                 + enc_fc_b_ref[...])

        # ------------- MMD loss (norms computed once, reused) ------------------
        gauss_all = gauss_ref[...]
        ones_nl = jnp.ones((n, LANE), f32)

        def rownorm(v):      # (n, LANE) -> (n, n); every row = row-norms of v
            return lax.dot_general(ones_nl, v * v, (((1,), (1,)), ((), ())),
                                   preferred_element_type=f32)

        def gram(a, b):      # (n, n) = a . b^T
            return lax.dot_general(a, b, (((1,), (1,)), ((), ())),
                                   preferred_element_type=f32)

        def kmean(ab, sa_col, sb_row, inv):
            sq = jnp.maximum(sa_col + sb_row - 2.0 * ab, 0.0)
            return jnp.mean(jnp.exp(-sq * inv))

        mmd_total = jnp.zeros((), f32)
        for m, s in enumerate(z_dims):
            zm = z_all[:n, m * LANE:(m + 1) * LANE]       # lane-aligned views
            gm = gauss_all[:n, m * LANE:(m + 1) * LANE]
            sz_col = jnp.sum(zm * zm, axis=1, keepdims=True)
            sg_col = jnp.sum(gm * gm, axis=1, keepdims=True)
            sz_row = rownorm(zm)
            sg_row = rownorm(gm)
            inv = 1.0 / float(s * s)
            mmd_total = (mmd_total
                         + kmean(gram(gm, gm), sg_col, sg_row, inv)
                         + kmean(gram(zm, zm), sz_col, sz_row, inv)
                         - 2.0 * kmean(gram(gm, zm), sg_col, sz_row, inv))
        # (1,1) VMEM store kept for lowering safety; SMEM scalar out is a
        # negligible further win at these sizes.
        mmd_ref[...] = jnp.broadcast_to(mmd_total, (1, 1))

        # ------------- z -> f MLPs (dropout = identity) ------------------------
        h1 = jnp.maximum(jnp.dot(z_all, zf_w1_ref[...],
                                 preferred_element_type=f32) + zf_b1_ref[...], 0.0)
        f_all = jnp.maximum(jnp.dot(h1, zf_w2_ref[...],
                                    preferred_element_type=f32) + zf_b2_ref[...], 0.0)

        # ------------- decoders (3 modalities batched, gates 128-padded) -------
        dec_b_bcast = jnp.broadcast_to(dec_b_ref[...], (NP, 4 * FP))   # hoisted
        g0 = (jnp.dot(f_all, dec_wih_ref[...], preferred_element_type=f32)
              + dec_b_bcast)                         # step 0: input = f, h0 = 0
        h, c = lstm_step(g0, jnp.zeros((NP, FP), f32), FP)
        hdec_ref[pl.ds(0, NP), :] = h

        def dec_body(i, hc):
            h, c = hc
            gates = jnp.dot(h, dec_wcomb_ref[...],
                            preferred_element_type=f32) + dec_b_bcast
            h, c = lstm_step(gates, c, FP)
            row = pl.multiple_of(i * NP, NP)
            hdec_ref[pl.ds(row, NP), :] = h
            return (h, c)

        lax.fori_loop(1, t, dec_body, (h, c))

        # single post-loop output projection + one lane-dense 2-D store
        dec_out_ref[...] = (jnp.dot(hdec_ref[...], dec_fc_w_ref[...],
                                    preferred_element_type=f32) + dec_fc_b_ref[...])

        # ------------- prediction head (dropout = identity) --------------------
        hy = jnp.maximum(jnp.dot(f_all, fy_w1_ref[...],
                                 preferred_element_type=f32) + fy_b1_ref[...], 0.0)
        y_ref[...] = (jnp.dot(hy, fy_w2_ref[...],
                              preferred_element_type=f32) + fy_b2_ref[...])

    out_shapes = (
        jax.ShapeDtypeStruct((t * NP, DOUT_P), jnp.float32),   # reconstructions
        jax.ShapeDtypeStruct((NP, YP), jnp.float32),           # y_hat (padded)
        jax.ShapeDtypeStruct((1, 1), jnp.float32),             # mmd loss
    )
    slab, y_pad, mmd = pl.pallas_call(
        fused_kernel,
        out_shape=out_shapes,
        in_specs=[VMEM_SPEC] * 20,
        out_specs=(VMEM_SPEC, VMEM_SPEC, VMEM_SPEC),
        scratch_shapes=[
            pltpu.VMEM((t * NP, 4 * HZP), jnp.float32),   # encoder pre-activations
            pltpu.VMEM((t * NP, FP), jnp.float32),        # decoder hidden states
        ],
    )(x2d, gauss,
      params['enc_wih'], params['enc_whh'], params['enc_b'],
      params['enc_fc_w'], params['enc_fc_b'],
      params['zf_w1'], params['zf_b1'], params['zf_w2'], params['zf_b2'],
      params['dec_wih'], params['dec_wcomb'], params['dec_b'],
      params['dec_fc_w'], params['dec_fc_b'],
      params['fy_w1'], params['fy_b1'], params['fy_w2'], params['fy_b2'])

    # strip batch / lane padding outside the kernel
    recon = slab.reshape(t, NP, DOUT_P)[:, :n, :d_tot]
    d_l, d_a, d_v = d_dims
    x_l_hat = recon[:, :, :d_l]
    x_a_hat = recon[:, :, d_l:d_l + d_a]
    x_v_hat = recon[:, :, d_l + d_a:]
    y_hat = y_pad[:n, :out_dim]
    decoded = [x_l_hat, x_a_hat, x_v_hat, y_hat]
    missing_loss = 0.0
    return decoded, mmd[0, 0], missing_loss


# ---------------------------------- main ----------------------------------- #

if __name__ == "__main__":
    config = {
        'input_dims': [8, 6, 6],
        'h_dims': [16, 16, 16],        # unused in forward (kept for fidelity)
        'memsize': 16,                 # unused in forward
        'zy_size': 16,
        'zl_size': 16, 'za_size': 16, 'zv_size': 16,
        'fy_size': 24,
        'fl_size': 16, 'fa_size': 16, 'fv_size': 16,
        'zy_to_fy_dropout': 0.0, 'zl_to_fl_dropout': 0.0,
        'za_to_fa_dropout': 0.0, 'zv_to_fv_dropout': 0.0,
        'fy_to_y_dropout': 0.0,
        'output_dim': 1,
    }

    t, n = 6, 4
    total_d = sum(config['input_dims'])

    root = jax.random.PRNGKey(0)
    k_param, k_x, k_mmd = jax.random.split(root, 3)

    params = init_mb_params(k_param, config)
    x = jax.random.normal(k_x, (t, n, total_d), jnp.float32)

    fwd = jax.jit(lambda p, xv, kv: m_b_forward(p, xv, config, kv))
    decoded, mmd_loss, missing_loss = fwd(params, x, k_mmd)
    jax.block_until_ready((decoded, mmd_loss))

    # sanity on shapes / values
    assert decoded[0].shape == (t, n, config['input_dims'][0])
    assert decoded[1].shape == (t, n, config['input_dims'][1])
    assert decoded[2].shape == (t, n, config['input_dims'][2])
    assert decoded[3].shape == (n, config['output_dim'])
    assert bool(jnp.isfinite(mmd_loss))
    assert bool(jnp.all(jnp.isfinite(decoded[0])))
    assert bool(jnp.all(jnp.isfinite(decoded[3])))

    print("KERNEL_OK")
</pallas_src>

<mosaic_0001>
module attributes {stable_mosaic.version = 11 : i64} {
  func.func @fused_kernel(%arg0: memref<48x20xf32, #tpu.memory_space<vmem>>, %arg1: memref<8x384xf32, #tpu.memory_space<vmem>>, %arg2: memref<20x512xf32, #tpu.memory_space<vmem>>, %arg3: memref<128x512xf32, #tpu.memory_space<vmem>>, %arg4: memref<1x512xf32, #tpu.memory_space<vmem>>, %arg5: memref<128x384xf32, #tpu.memory_space<vmem>>, %arg6: memref<1x384xf32, #tpu.memory_space<vmem>>, %arg7: memref<384x128xf32, #tpu.memory_space<vmem>>, %arg8: memref<1x128xf32, #tpu.memory_space<vmem>>, %arg9: memref<128x128xf32, #tpu.memory_space<vmem>>, %arg10: memref<1x128xf32, #tpu.memory_space<vmem>>, %arg11: memref<128x512xf32, #tpu.memory_space<vmem>>, %arg12: memref<128x512xf32, #tpu.memory_space<vmem>>, %arg13: memref<1x512xf32, #tpu.memory_space<vmem>>, %arg14: memref<128x128xf32, #tpu.memory_space<vmem>>, %arg15: memref<1x128xf32, #tpu.memory_space<vmem>>, %arg16: memref<128x128xf32, #tpu.memory_space<vmem>>, %arg17: memref<1x128xf32, #tpu.memory_space<vmem>>, %arg18: memref<128x128xf32, #tpu.memory_space<vmem>>, %arg19: memref<1x128xf32, #tpu.memory_space<vmem>>, %arg20: memref<48x128xf32, #tpu.memory_space<vmem>>, %arg21: memref<8x128xf32, #tpu.memory_space<vmem>>, %arg22: memref<1x1xf32, #tpu.memory_space<vmem>>, %arg23: memref<48x512xf32, #tpu.memory_space<vmem>>, %arg24: memref<48x128xf32, #tpu.memory_space<vmem>>) attributes {dimension_semantics = [], scalar_prefetch = 0 : i64, scratch_operands = 2 : i64, tpu.core_type = #tpu.core_type<tc>} {
    %c0 = arith.constant 0 : index
    %c0_0 = arith.constant 0 : index
    %0 = vector.load %arg0[%c0, %c0_0] : memref<48x20xf32, #tpu.memory_space<vmem>>, vector<48x20xf32>
    %c0_1 = arith.constant 0 : index
    %c0_2 = arith.constant 0 : index
    %1 = vector.load %arg2[%c0_1, %c0_2] : memref<20x512xf32, #tpu.memory_space<vmem>>, vector<20x512xf32>
    %cst = arith.constant dense<0.000000e+00> : vector<48x512xf32>
    %2 = tpu.matmul %0, %1, %cst {dimension_numbers = #tpu.dot_dimension_numbers<[1], [0], [0], [1], [0, 0, 1, 1], [], []>} : vector<48x20xf32>, vector<20x512xf32>, vector<48x512xf32> -> vector<48x512xf32>
    %c0_3 = arith.constant 0 : index
    %c0_4 = arith.constant 0 : index
    %3 = vector.load %arg4[%c0_3, %c0_4] : memref<1x512xf32, #tpu.memory_space<vmem>>, vector<1x512xf32>
    %4 = vector.broadcast %3 : vector<1x512xf32> to vector<48x512xf32>
    %5 = arith.addf %2, %4 : vector<48x512xf32>
    %c0_5 = arith.constant 0 : index
    %c0_6 = arith.constant 0 : index
    %6 = vector.load %arg23[%c0_5, %c0_6] : memref<48x512xf32, #tpu.memory_space<vmem>>, vector<48x512xf32>
    tpu.vector_store %arg23[%c0_5, %c0_6], %5 {strides = array<i32>} : memref<48x512xf32, #tpu.memory_space<vmem>>, vector<48x512xf32>,
    %c0_7 = arith.constant 0 : index
    %c0_8 = arith.constant 0 : index
    %7 = vector.load %arg23[%c0_7, %c0_8] : memref<48x512xf32, #tpu.memory_space<vmem>>, vector<8x512xf32>
    %cst_9 = arith.constant 0.000000e+00 : f32
    %8 = vector.broadcast %cst_9 : f32 to vector<8x128xf32>
    %9 = vector.extract_strided_slice %7 {offsets = [0, 0], sizes = [8, 128], strides = [1, 1]} : vector<8x512xf32> to vector<8x128xf32>
    %10 = arith.negf %9 : vector<8x128xf32>
    %11 = math.exp %10 : vector<8x128xf32>
    %cst_10 = arith.constant 1.000000e+00 : f32
    %12 = vector.broadcast %cst_10 : f32 to vector<8x128xf32>
    %13 = arith.addf %12, %11 : vector<8x128xf32>
    %14 = arith.divf %12, %13 : vector<8x128xf32>
    %15 = vector.extract_strided_slice %7 {offsets = [0, 128], sizes = [8, 128], strides = [1, 1]} : vector<8x512xf32> to vector<8x128xf32>
    %16 = arith.negf %15 : vector<8x128xf32>
    %17 = math.exp %16 : vector<8x128xf32>
    %cst_11 = arith.constant 1.000000e+00 : f32
    %18 = vector.broadcast %cst_11 : f32 to vector<8x128xf32>
    %19 = arith.addf %18, %17 : vector<8x128xf32>
    %20 = arith.divf %18, %19 : vector<8x128xf32>
    %21 = vector.extract_strided_slice %7 {offsets = [0, 256], sizes = [8, 128], strides = [1, 1]} : vector<8x512xf32> to vector<8x128xf32>
    %22 = math.tanh %21 : vector<8x128xf32>
    %23 = vector.extract_strided_slice %7 {offsets = [0, 384], sizes = [8, 128], strides = [1, 1]} : vector<8x512xf32> to vector<8x128xf32>
    %24 = arith.negf %23 : vector<8x128xf32>
    %25 = math.exp %24 : vector<8x128xf32>
    %cst_12 = arith.constant 1.000000e+00 : f32
    %26 = vector.broadcast %cst_12 : f32 to vector<8x128xf32>
    %27 = arith.addf %26, %25 : vector<8x128xf32>
    %28 = arith.divf %26, %27 : vector<8x128xf32>
    %29 = arith.mulf %20, %8 : vector<8x128xf32>
    %30 = arith.mulf %14, %22 : vector<8x128xf32>
    %31 = arith.addf %29, %30 : vector<8x128xf32>
    %32 = math.tanh %31 : vector<8x128xf32>
    %33 = arith.mulf %28, %32 : vector<8x128xf32>
    %c1_i32 = arith.constant 1 : i32
    %c5_i32 = arith.constant 5 : i32
    %34 = arith.addi %c1_i32, %c5_i32 : i32
    %c1_i32_13 = arith.constant 1 : i32
    %35:2 = scf.for %arg25 = %c1_i32 to %34 step %c1_i32_13 iter_args(%arg26 = %33, %arg27 = %31) -> (vector<8x128xf32>, vector<8x128xf32>)  : i32 {
      %c8_i32 = arith.constant 8 : i32
      %324 = arith.muli %arg25, %c8_i32 : i32
      %325 = tpu.assume_multiple %324, 8 : i32
      %326 = arith.index_cast %325 : i32 to index
      %c0_153 = arith.constant 0 : index
      %327 = vector.load %arg23[%326, %c0_153] : memref<48x512xf32, #tpu.memory_space<vmem>>, vector<8x512xf32>
      %c0_154 = arith.constant 0 : index
      %c0_155 = arith.constant 0 : index
      %328 = vector.load %arg3[%c0_154, %c0_155] : memref<128x512xf32, #tpu.memory_space<vmem>>, vector<128x512xf32>
      %cst_156 = arith.constant dense<0.000000e+00> : vector<8x512xf32>
      %329 = tpu.matmul %arg26, %328, %cst_156 {dimension_numbers = #tpu.dot_dimension_numbers<[1], [0], [0], [1], [0, 0, 1, 1], [], []>} : vector<8x128xf32>, vector<128x512xf32>, vector<8x512xf32> -> vector<8x512xf32>
      %330 = arith.addf %327, %329 : vector<8x512xf32>
      %331 = vector.extract_strided_slice %330 {offsets = [0, 0], sizes = [8, 128], strides = [1, 1]} : vector<8x512xf32> to vector<8x128xf32>
      %332 = arith.negf %331 : vector<8x128xf32>
      %333 = math.exp %332 : vector<8x128xf32>
      %cst_157 = arith.constant 1.000000e+00 : f32
      %334 = vector.broadcast %cst_157 : f32 to vector<8x128xf32>
      %335 = arith.addf %334, %333 : vector<8x128xf32>
      %336 = arith.divf %334, %335 : vector<8x128xf32>
      %337 = vector.extract_strided_slice %330 {offsets = [0, 128], sizes = [8, 128], strides = [1, 1]} : vector<8x512xf32> to vector<8x128xf32>
      %338 = arith.negf %337 : vector<8x128xf32>
      %339 = math.exp %338 : vector<8x128xf32>
      %cst_158 = arith.constant 1.000000e+00 : f32
      %340 = vector.broadcast %cst_158 : f32 to vector<8x128xf32>
      %341 = arith.addf %340, %339 : vector<8x128xf32>
      %342 = arith.divf %340, %341 : vector<8x128xf32>
      %343 = vector.extract_strided_slice %330 {offsets = [0, 256], sizes = [8, 128], strides = [1, 1]} : vector<8x512xf32> to vector<8x128xf32>
      %344 = math.tanh %343 : vector<8x128xf32>
      %345 = vector.extract_strided_slice %330 {offsets = [0, 384], sizes = [8, 128], strides = [1, 1]} : vector<8x512xf32> to vector<8x128xf32>
      %346 = arith.negf %345 : vector<8x128xf32>
      %347 = math.exp %346 : vector<8x128xf32>
      %cst_159 = arith.constant 1.000000e+00 : f32
      %348 = vector.broadcast %cst_159 : f32 to vector<8x128xf32>
      %349 = arith.addf %348, %347 : vector<8x128xf32>
      %350 = arith.divf %348, %349 : vector<8x128xf32>
      %351 = arith.mulf %342, %arg27 : vector<8x128xf32>
      %352 = arith.mulf %336, %344 : vector<8x128xf32>
      %353 = arith.addf %351, %352 : vector<8x128xf32>
      %354 = math.tanh %353 : vector<8x128xf32>
      %355 = arith.mulf %350, %354 : vector<8x128xf32>
      scf.yield %355, %353 : vector<8x128xf32>, vector<8x128xf32>
    }
    %c5_i32_14 = arith.constant 5 : i32
    %c0_15 = arith.constant 0 : index
    %c0_16 = arith.constant 0 : index
    %36 = vector.load %arg5[%c0_15, %c0_16] : memref<128x384xf32, #tpu.memory_space<vmem>>, vector<128x384xf32>
    %cst_17 = arith.constant dense<0.000000e+00> : vector<8x384xf32>
    %37 = tpu.matmul %35#0, %36, %cst_17 {dimension_numbers = #tpu.dot_dimension_numbers<[1], [0], [0], [1], [0, 0, 1, 1], [], []>} : vector<8x128xf32>, vector<128x384xf32>, vector<8x384xf32> -> vector<8x384xf32>
    %c0_18 = arith.constant 0 : index
    %c0_19 = arith.constant 0 : index
    %38 = vector.load %arg6[%c0_18, %c0_19] : memref<1x384xf32, #tpu.memory_space<vmem>>, vector<1x384xf32>
    %39 = vector.broadcast %38 : vector<1x384xf32> to vector<8x384xf32>
    %40 = arith.addf %37, %39 : vector<8x384xf32>
    %c0_20 = arith.constant 0 : index
    %c0_21 = arith.constant 0 : index
    %41 = vector.load %arg1[%c0_20, %c0_21] : memref<8x384xf32, #tpu.memory_space<vmem>>, vector<8x384xf32>
    %cst_22 = arith.constant 1.000000e+00 : f32
    %42 = vector.broadcast %cst_22 : f32 to vector<4x128xf32>
    %43 = vector.extract_strided_slice %40 {offsets = [0, 0], sizes = [4, 128], strides = [1, 1]} : vector<8x384xf32> to vector<4x128xf32>
    %44 = vector.extract_strided_slice %41 {offsets = [0, 0], sizes = [4, 128], strides = [1, 1]} : vector<8x384xf32> to vector<4x128xf32>
    %45 = arith.mulf %43, %43 : vector<4x128xf32>
    %cst_23 = arith.constant dense<0.000000e+00> : vector<4xf32>
    %46 = vector.multi_reduction <add>, %45, %cst_23 [1] : vector<4x128xf32> to vector<4xf32>
    %47 = vector.shape_cast %46 : vector<4xf32> to vector<4x1xf32>
    %48 = arith.mulf %44, %44 : vector<4x128xf32>
    %cst_24 = arith.constant dense<0.000000e+00> : vector<4xf32>
    %49 = vector.multi_reduction <add>, %48, %cst_24 [1] : vector<4x128xf32> to vector<4xf32>
    %50 = vector.shape_cast %49 : vector<4xf32> to vector<4x1xf32>
    %51 = arith.mulf %43, %43 : vector<4x128xf32>
    %cst_25 = arith.constant dense<0.000000e+00> : vector<4x4xf32>
    %52 = tpu.matmul %42, %51, %cst_25 {dimension_numbers = #tpu.dot_dimension_numbers<[1], [1], [0], [0], [0, 0, 1, 0], [], []>} : vector<4x128xf32>, vector<4x128xf32>, vector<4x4xf32> -> vector<4x4xf32>
    %53 = arith.mulf %44, %44 : vector<4x128xf32>
    %cst_26 = arith.constant dense<0.000000e+00> : vector<4x4xf32>
    %54 = tpu.matmul %42, %53, %cst_26 {dimension_numbers = #tpu.dot_dimension_numbers<[1], [1], [0], [0], [0, 0, 1, 0], [], []>} : vector<4x128xf32>, vector<4x128xf32>, vector<4x4xf32> -> vector<4x4xf32>
    %cst_27 = arith.constant dense<0.000000e+00> : vector<4x4xf32>
    %55 = tpu.matmul %44, %44, %cst_27 {dimension_numbers = #tpu.dot_dimension_numbers<[1], [1], [0], [0], [0, 0, 1, 0], [], []>} : vector<4x128xf32>, vector<4x128xf32>, vector<4x4xf32> -> vector<4x4xf32>
    %56 = vector.broadcast %50 : vector<4x1xf32> to vector<4x4xf32>
    %57 = arith.addf %56, %54 : vector<4x4xf32>
    %cst_28 = arith.constant 2.000000e+00 : f32
    %58 = vector.broadcast %cst_28 : f32 to vector<4x4xf32>
    %59 = arith.mulf %58, %55 : vector<4x4xf32>
    %60 = arith.subf %57, %59 : vector<4x4xf32>
    %cst_29 = arith.constant 0.000000e+00 : f32
    %61 = vector.broadcast %cst_29 : f32 to vector<4x4xf32>
    %62 = arith.maximumf %60, %61 : vector<4x4xf32>
    %cst_30 = arith.constant 0.000000e+00 : f32
    %63 = vector.broadcast %cst_30 : f32 to vector<4x4xf32>
    %64 = arith.subf %63, %62 : vector<4x4xf32>
    %cst_31 = arith.constant 3.906250e-03 : f32
    %65 = vector.broadcast %cst_31 : f32 to vector<4x4xf32>
    %66 = arith.mulf %64, %65 : vector<4x4xf32>
    %67 = math.exp %66 : vector<4x4xf32>
    %68 = vector.shape_cast %67 : vector<4x4xf32> to vector<1x4x4xf32>
    %cst_32 = arith.constant dense<0.000000e+00> : vector<1xf32>
    %69 = vector.multi_reduction <add>, %68, %cst_32 [1, 2] : vector<1x4x4xf32> to vector<1xf32>
    %70 = vector.shape_cast %69 : vector<1xf32> to vector<1x1x1xf32>
    %71 = vector.extract %70[0, 0, 0] : f32 from vector<1x1x1xf32>
    %cst_33 = arith.constant 1.600000e+01 : f32
    %72 = arith.divf %71, %cst_33 : f32
    %cst_34 = arith.constant 0.000000e+00 : f32
    %73 = arith.addf %cst_34, %72 : f32
    %cst_35 = arith.constant dense<0.000000e+00> : vector<4x4xf32>
    %74 = tpu.matmul %43, %43, %cst_35 {dimension_numbers = #tpu.dot_dimension_numbers<[1], [1], [0], [0], [0, 0, 1, 0], [], []>} : vector<4x128xf32>, vector<4x128xf32>, vector<4x4xf32> -> vector<4x4xf32>
    %75 = vector.broadcast %47 : vector<4x1xf32> to vector<4x4xf32>
    %76 = arith.addf %75, %52 : vector<4x4xf32>
    %cst_36 = arith.constant 2.000000e+00 : f32
    %77 = vector.broadcast %cst_36 : f32 to vector<4x4xf32>
    %78 = arith.mulf %77, %74 : vector<4x4xf32>
    %79 = arith.subf %76, %78 : vector<4x4xf32>
    %cst_37 = arith.constant 0.000000e+00 : f32
    %80 = vector.broadcast %cst_37 : f32 to vector<4x4xf32>
    %81 = arith.maximumf %79, %80 : vector<4x4xf32>
    %cst_38 = arith.constant 0.000000e+00 : f32
    %82 = vector.broadcast %cst_38 : f32 to vector<4x4xf32>
    %83 = arith.subf %82, %81 : vector<4x4xf32>
    %cst_39 = arith.constant 3.906250e-03 : f32
    %84 = vector.broadcast %cst_39 : f32 to vector<4x4xf32>
    %85 = arith.mulf %83, %84 : vector<4x4xf32>
    %86 = math.exp %85 : vector<4x4xf32>
    %87 = vector.shape_cast %86 : vector<4x4xf32> to vector<1x4x4xf32>
    %cst_40 = arith.constant dense<0.000000e+00> : vector<1xf32>
    %88 = vector.multi_reduction <add>, %87, %cst_40 [1, 2] : vector<1x4x4xf32> to vector<1xf32>
    %89 = vector.shape_cast %88 : vector<1xf32> to vector<1x1x1xf32>
    %90 = vector.extract %89[0, 0, 0] : f32 from vector<1x1x1xf32>
    %cst_41 = arith.constant 1.600000e+01 : f32
    %91 = arith.divf %90, %cst_41 : f32
    %92 = arith.addf %73, %91 : f32
    %cst_42 = arith.constant dense<0.000000e+00> : vector<4x4xf32>
    %93 = tpu.matmul %44, %43, %cst_42 {dimension_numbers = #tpu.dot_dimension_numbers<[1], [1], [0], [0], [0, 0, 1, 0], [], []>} : vector<4x128xf32>, vector<4x128xf32>, vector<4x4xf32> -> vector<4x4xf32>
    %94 = vector.broadcast %50 : vector<4x1xf32> to vector<4x4xf32>
    %95 = arith.addf %94, %52 : vector<4x4xf32>
    %cst_43 = arith.constant 2.000000e+00 : f32
    %96 = vector.broadcast %cst_43 : f32 to vector<4x4xf32>
    %97 = arith.mulf %96, %93 : vector<4x4xf32>
    %98 = arith.subf %95, %97 : vector<4x4xf32>
    %cst_44 = arith.constant 0.000000e+00 : f32
    %99 = vector.broadcast %cst_44 : f32 to vector<4x4xf32>
    %100 = arith.maximumf %98, %99 : vector<4x4xf32>
    %cst_45 = arith.constant 0.000000e+00 : f32
    %101 = vector.broadcast %cst_45 : f32 to vector<4x4xf32>
    %102 = arith.subf %101, %100 : vector<4x4xf32>
    %cst_46 = arith.constant 3.906250e-03 : f32
    %103 = vector.broadcast %cst_46 : f32 to vector<4x4xf32>
    %104 = arith.mulf %102, %103 : vector<4x4xf32>
    %105 = math.exp %104 : vector<4x4xf32>
    %106 = vector.shape_cast %105 : vector<4x4xf32> to vector<1x4x4xf32>
    %cst_47 = arith.constant dense<0.000000e+00> : vector<1xf32>
    %107 = vector.multi_reduction <add>, %106, %cst_47 [1, 2] : vector<1x4x4xf32> to vector<1xf32>
    %108 = vector.shape_cast %107 : vector<1xf32> to vector<1x1x1xf32>
    %109 = vector.extract %108[0, 0, 0] : f32 from vector<1x1x1xf32>
    %cst_48 = arith.constant 1.600000e+01 : f32
    %110 = arith.divf %109, %cst_48 : f32
    %cst_49 = arith.constant 2.000000e+00 : f32
    %111 = arith.mulf %cst_49, %110 : f32
    %112 = arith.subf %92, %111 : f32
    %113 = vector.extract_strided_slice %40 {offsets = [0, 128], sizes = [4, 128], strides = [1, 1]} : vector<8x384xf32> to vector<4x128xf32>
    %114 = vector.extract_strided_slice %41 {offsets = [0, 128], sizes = [4, 128], strides = [1, 1]} : vector<8x384xf32> to vector<4x128xf32>
    %115 = arith.mulf %113, %113 : vector<4x128xf32>
    %cst_50 = arith.constant dense<0.000000e+00> : vector<4xf32>
    %116 = vector.multi_reduction <add>, %115, %cst_50 [1] : vector<4x128xf32> to vector<4xf32>
    %117 = vector.shape_cast %116 : vector<4xf32> to vector<4x1xf32>
    %118 = arith.mulf %114, %114 : vector<4x128xf32>
    %cst_51 = arith.constant dense<0.000000e+00> : vector<4xf32>
    %119 = vector.multi_reduction <add>, %118, %cst_51 [1] : vector<4x128xf32> to vector<4xf32>
    %120 = vector.shape_cast %119 : vector<4xf32> to vector<4x1xf32>
    %121 = arith.mulf %113, %113 : vector<4x128xf32>
    %cst_52 = arith.constant dense<0.000000e+00> : vector<4x4xf32>
    %122 = tpu.matmul %42, %121, %cst_52 {dimension_numbers = #tpu.dot_dimension_numbers<[1], [1], [0], [0], [0, 0, 1, 0], [], []>} : vector<4x128xf32>, vector<4x128xf32>, vector<4x4xf32> -> vector<4x4xf32>
    %123 = arith.mulf %114, %114 : vector<4x128xf32>
    %cst_53 = arith.constant dense<0.000000e+00> : vector<4x4xf32>
    %124 = tpu.matmul %42, %123, %cst_53 {dimension_numbers = #tpu.dot_dimension_numbers<[1], [1], [0], [0], [0, 0, 1, 0], [], []>} : vector<4x128xf32>, vector<4x128xf32>, vector<4x4xf32> -> vector<4x4xf32>
    %cst_54 = arith.constant dense<0.000000e+00> : vector<4x4xf32>
    %125 = tpu.matmul %114, %114, %cst_54 {dimension_numbers = #tpu.dot_dimension_numbers<[1], [1], [0], [0], [0, 0, 1, 0], [], []>} : vector<4x128xf32>, vector<4x128xf32>, vector<4x4xf32> -> vector<4x4xf32>
    %126 = vector.broadcast %120 : vector<4x1xf32> to vector<4x4xf32>
    %127 = arith.addf %126, %124 : vector<4x4xf32>
    %cst_55 = arith.constant 2.000000e+00 : f32
    %128 = vector.broadcast %cst_55 : f32 to vector<4x4xf32>
    %129 = arith.mulf %128, %125 : vector<4x4xf32>
    %130 = arith.subf %127, %129 : vector<4x4xf32>
    %cst_56 = arith.constant 0.000000e+00 : f32
    %131 = vector.broadcast %cst_56 : f32 to vector<4x4xf32>
    %132 = arith.maximumf %130, %131 : vector<4x4xf32>
    %cst_57 = arith.constant 0.000000e+00 : f32
    %133 = vector.broadcast %cst_57 : f32 to vector<4x4xf32>
    %134 = arith.subf %133, %132 : vector<4x4xf32>
    %cst_58 = arith.constant 3.906250e-03 : f32
    %135 = vector.broadcast %cst_58 : f32 to vector<4x4xf32>
    %136 = arith.mulf %134, %135 : vector<4x4xf32>
    %137 = math.exp %136 : vector<4x4xf32>
    %138 = vector.shape_cast %137 : vector<4x4xf32> to vector<1x4x4xf32>
    %cst_59 = arith.constant dense<0.000000e+00> : vector<1xf32>
    %139 = vector.multi_reduction <add>, %138, %cst_59 [1, 2] : vector<1x4x4xf32> to vector<1xf32>
    %140 = vector.shape_cast %139 : vector<1xf32> to vector<1x1x1xf32>
    %141 = vector.extract %140[0, 0, 0] : f32 from vector<1x1x1xf32>
    %cst_60 = arith.constant 1.600000e+01 : f32
    %142 = arith.divf %141, %cst_60 : f32
    %143 = arith.addf %112, %142 : f32
    %cst_61 = arith.constant dense<0.000000e+00> : vector<4x4xf32>
    %144 = tpu.matmul %113, %113, %cst_61 {dimension_numbers = #tpu.dot_dimension_numbers<[1], [1], [0], [0], [0, 0, 1, 0], [], []>} : vector<4x128xf32>, vector<4x128xf32>, vector<4x4xf32> -> vector<4x4xf32>
    %145 = vector.broadcast %117 : vector<4x1xf32> to vector<4x4xf32>
    %146 = arith.addf %145, %122 : vector<4x4xf32>
    %cst_62 = arith.constant 2.000000e+00 : f32
    %147 = vector.broadcast %cst_62 : f32 to vector<4x4xf32>
    %148 = arith.mulf %147, %144 : vector<4x4xf32>
    %149 = arith.subf %146, %148 : vector<4x4xf32>
    %cst_63 = arith.constant 0.000000e+00 : f32
    %150 = vector.broadcast %cst_63 : f32 to vector<4x4xf32>
    %151 = arith.maximumf %149, %150 : vector<4x4xf32>
    %cst_64 = arith.constant 0.000000e+00 : f32
    %152 = vector.broadcast %cst_64 : f32 to vector<4x4xf32>
    %153 = arith.subf %152, %151 : vector<4x4xf32>
    %cst_65 = arith.constant 3.906250e-03 : f32
    %154 = vector.broadcast %cst_65 : f32 to vector<4x4xf32>
    %155 = arith.mulf %153, %154 : vector<4x4xf32>
    %156 = math.exp %155 : vector<4x4xf32>
    %157 = vector.shape_cast %156 : vector<4x4xf32> to vector<1x4x4xf32>
    %cst_66 = arith.constant dense<0.000000e+00> : vector<1xf32>
    %158 = vector.multi_reduction <add>, %157, %cst_66 [1, 2] : vector<1x4x4xf32> to vector<1xf32>
    %159 = vector.shape_cast %158 : vector<1xf32> to vector<1x1x1xf32>
    %160 = vector.extract %159[0, 0, 0] : f32 from vector<1x1x1xf32>
    %cst_67 = arith.constant 1.600000e+01 : f32
    %161 = arith.divf %160, %cst_67 : f32
    %162 = arith.addf %143, %161 : f32
    %cst_68 = arith.constant dense<0.000000e+00> : vector<4x4xf32>
    %163 = tpu.matmul %114, %113, %cst_68 {dimension_numbers = #tpu.dot_dimension_numbers<[1], [1], [0], [0], [0, 0, 1, 0], [], []>} : vector<4x128xf32>, vector<4x128xf32>, vector<4x4xf32> -> vector<4x4xf32>
    %164 = vector.broadcast %120 : vector<4x1xf32> to vector<4x4xf32>
    %165 = arith.addf %164, %122 : vector<4x4xf32>
    %cst_69 = arith.constant 2.000000e+00 : f32
    %166 = vector.broadcast %cst_69 : f32 to vector<4x4xf32>
    %167 = arith.mulf %166, %163 : vector<4x4xf32>
    %168 = arith.subf %165, %167 : vector<4x4xf32>
    %cst_70 = arith.constant 0.000000e+00 : f32
    %169 = vector.broadcast %cst_70 : f32 to vector<4x4xf32>
    %170 = arith.maximumf %168, %169 : vector<4x4xf32>
    %cst_71 = arith.constant 0.000000e+00 : f32
    %171 = vector.broadcast %cst_71 : f32 to vector<4x4xf32>
    %172 = arith.subf %171, %170 : vector<4x4xf32>
    %cst_72 = arith.constant 3.906250e-03 : f32
    %173 = vector.broadcast %cst_72 : f32 to vector<4x4xf32>
    %174 = arith.mulf %172, %173 : vector<4x4xf32>
    %175 = math.exp %174 : vector<4x4xf32>
    %176 = vector.shape_cast %175 : vector<4x4xf32> to vector<1x4x4xf32>
    %cst_73 = arith.constant dense<0.000000e+00> : vector<1xf32>
    %177 = vector.multi_reduction <add>, %176, %cst_73 [1, 2] : vector<1x4x4xf32> to vector<1xf32>
    %178 = vector.shape_cast %177 : vector<1xf32> to vector<1x1x1xf32>
    %179 = vector.extract %178[0, 0, 0] : f32 from vector<1x1x1xf32>
    %cst_74 = arith.constant 1.600000e+01 : f32
    %180 = arith.divf %179, %cst_74 : f32
    %cst_75 = arith.constant 2.000000e+00 : f32
    %181 = arith.mulf %cst_75, %180 : f32
    %182 = arith.subf %162, %181 : f32
    %183 = vector.extract_strided_slice %40 {offsets = [0, 256], sizes = [4, 128], strides = [1, 1]} : vector<8x384xf32> to vector<4x128xf32>
    %184 = vector.extract_strided_slice %41 {offsets = [0, 256], sizes = [4, 128], strides = [1, 1]} : vector<8x384xf32> to vector<4x128xf32>
    %185 = arith.mulf %183, %183 : vector<4x128xf32>
    %cst_76 = arith.constant dense<0.000000e+00> : vector<4xf32>
    %186 = vector.multi_reduction <add>, %185, %cst_76 [1] : vector<4x128xf32> to vector<4xf32>
    %187 = vector.shape_cast %186 : vector<4xf32> to vector<4x1xf32>
    %188 = arith.mulf %184, %184 : vector<4x128xf32>
    %cst_77 = arith.constant dense<0.000000e+00> : vector<4xf32>
    %189 = vector.multi_reduction <add>, %188, %cst_77 [1] : vector<4x128xf32> to vector<4xf32>
    %190 = vector.shape_cast %189 : vector<4xf32> to vector<4x1xf32>
    %191 = arith.mulf %183, %183 : vector<4x128xf32>
    %cst_78 = arith.constant dense<0.000000e+00> : vector<4x4xf32>
    %192 = tpu.matmul %42, %191, %cst_78 {dimension_numbers = #tpu.dot_dimension_numbers<[1], [1], [0], [0], [0, 0, 1, 0], [], []>} : vector<4x128xf32>, vector<4x128xf32>, vector<4x4xf32> -> vector<4x4xf32>
    %193 = arith.mulf %184, %184 : vector<4x128xf32>
    %cst_79 = arith.constant dense<0.000000e+00> : vector<4x4xf32>
    %194 = tpu.matmul %42, %193, %cst_79 {dimension_numbers = #tpu.dot_dimension_numbers<[1], [1], [0], [0], [0, 0, 1, 0], [], []>} : vector<4x128xf32>, vector<4x128xf32>, vector<4x4xf32> -> vector<4x4xf32>
    %cst_80 = arith.constant dense<0.000000e+00> : vector<4x4xf32>
    %195 = tpu.matmul %184, %184, %cst_80 {dimension_numbers = #tpu.dot_dimension_numbers<[1], [1], [0], [0], [0, 0, 1, 0], [], []>} : vector<4x128xf32>, vector<4x128xf32>, vector<4x4xf32> -> vector<4x4xf32>
    %196 = vector.broadcast %190 : vector<4x1xf32> to vector<4x4xf32>
    %197 = arith.addf %196, %194 : vector<4x4xf32>
    %cst_81 = arith.constant 2.000000e+00 : f32
    %198 = vector.broadcast %cst_81 : f32 to vector<4x4xf32>
    %199 = arith.mulf %198, %195 : vector<4x4xf32>
    %200 = arith.subf %197, %199 : vector<4x4xf32>
    %cst_82 = arith.constant 0.000000e+00 : f32
    %201 = vector.broadcast %cst_82 : f32 to vector<4x4xf32>
    %202 = arith.maximumf %200, %201 : vector<4x4xf32>
    %cst_83 = arith.constant 0.000000e+00 : f32
    %203 = vector.broadcast %cst_83 : f32 to vector<4x4xf32>
    %204 = arith.subf %203, %202 : vector<4x4xf32>
    %cst_84 = arith.constant 3.906250e-03 : f32
    %205 = vector.broadcast %cst_84 : f32 to vector<4x4xf32>
    %206 = arith.mulf %204, %205 : vector<4x4xf32>
    %207 = math.exp %206 : vector<4x4xf32>
    %208 = vector.shape_cast %207 : vector<4x4xf32> to vector<1x4x4xf32>
    %cst_85 = arith.constant dense<0.000000e+00> : vector<1xf32>
    %209 = vector.multi_reduction <add>, %208, %cst_85 [1, 2] : vector<1x4x4xf32> to vector<1xf32>
    %210 = vector.shape_cast %209 : vector<1xf32> to vector<1x1x1xf32>
    %211 = vector.extract %210[0, 0, 0] : f32 from vector<1x1x1xf32>
    %cst_86 = arith.constant 1.600000e+01 : f32
    %212 = arith.divf %211, %cst_86 : f32
    %213 = arith.addf %182, %212 : f32
    %cst_87 = arith.constant dense<0.000000e+00> : vector<4x4xf32>
    %214 = tpu.matmul %183, %183, %cst_87 {dimension_numbers = #tpu.dot_dimension_numbers<[1], [1], [0], [0], [0, 0, 1, 0], [], []>} : vector<4x128xf32>, vector<4x128xf32>, vector<4x4xf32> -> vector<4x4xf32>
    %215 = vector.broadcast %187 : vector<4x1xf32> to vector<4x4xf32>
    %216 = arith.addf %215, %192 : vector<4x4xf32>
    %cst_88 = arith.constant 2.000000e+00 : f32
    %217 = vector.broadcast %cst_88 : f32 to vector<4x4xf32>
    %218 = arith.mulf %217, %214 : vector<4x4xf32>
    %219 = arith.subf %216, %218 : vector<4x4xf32>
    %cst_89 = arith.constant 0.000000e+00 : f32
    %220 = vector.broadcast %cst_89 : f32 to vector<4x4xf32>
    %221 = arith.maximumf %219, %220 : vector<4x4xf32>
    %cst_90 = arith.constant 0.000000e+00 : f32
    %222 = vector.broadcast %cst_90 : f32 to vector<4x4xf32>
    %223 = arith.subf %222, %221 : vector<4x4xf32>
    %cst_91 = arith.constant 3.906250e-03 : f32
    %224 = vector.broadcast %cst_91 : f32 to vector<4x4xf32>
    %225 = arith.mulf %223, %224 : vector<4x4xf32>
    %226 = math.exp %225 : vector<4x4xf32>
    %227 = vector.shape_cast %226 : vector<4x4xf32> to vector<1x4x4xf32>
    %cst_92 = arith.constant dense<0.000000e+00> : vector<1xf32>
    %228 = vector.multi_reduction <add>, %227, %cst_92 [1, 2] : vector<1x4x4xf32> to vector<1xf32>
    %229 = vector.shape_cast %228 : vector<1xf32> to vector<1x1x1xf32>
    %230 = vector.extract %229[0, 0, 0] : f32 from vector<1x1x1xf32>
    %cst_93 = arith.constant 1.600000e+01 : f32
    %231 = arith.divf %230, %cst_93 : f32
    %232 = arith.addf %213, %231 : f32
    %cst_94 = arith.constant dense<0.000000e+00> : vector<4x4xf32>
    %233 = tpu.matmul %184, %183, %cst_94 {dimension_numbers = #tpu.dot_dimension_numbers<[1], [1], [0], [0], [0, 0, 1, 0], [], []>} : vector<4x128xf32>, vector<4x128xf32>, vector<4x4xf32> -> vector<4x4xf32>
    %234 = vector.broadcast %190 : vector<4x1xf32> to vector<4x4xf32>
    %235 = arith.addf %234, %192 : vector<4x4xf32>
    %cst_95 = arith.constant 2.000000e+00 : f32
    %236 = vector.broadcast %cst_95 : f32 to vector<4x4xf32>
    %237 = arith.mulf %236, %233 : vector<4x4xf32>
    %238 = arith.subf %235, %237 : vector<4x4xf32>
    %cst_96 = arith.constant 0.000000e+00 : f32
    %239 = vector.broadcast %cst_96 : f32 to vector<4x4xf32>
    %240 = arith.maximumf %238, %239 : vector<4x4xf32>
    %cst_97 = arith.constant 0.000000e+00 : f32
    %241 = vector.broadcast %cst_97 : f32 to vector<4x4xf32>
    %242 = arith.subf %241, %240 : vector<4x4xf32>
    %cst_98 = arith.constant 3.906250e-03 : f32
    %243 = vector.broadcast %cst_98 : f32 to vector<4x4xf32>
    %244 = arith.mulf %242, %243 : vector<4x4xf32>
    %245 = math.exp %244 : vector<4x4xf32>
    %246 = vector.shape_cast %245 : vector<4x4xf32> to vector<1x4x4xf32>
    %cst_99 = arith.constant dense<0.000000e+00> : vector<1xf32>
    %247 = vector.multi_reduction <add>, %246, %cst_99 [1, 2] : vector<1x4x4xf32> to vector<1xf32>
    %248 = vector.shape_cast %247 : vector<1xf32> to vector<1x1x1xf32>
    %249 = vector.extract %248[0, 0, 0] : f32 from vector<1x1x1xf32>
    %cst_100 = arith.constant 1.600000e+01 : f32
    %250 = arith.divf %249, %cst_100 : f32
    %cst_101 = arith.constant 2.000000e+00 : f32
    %251 = arith.mulf %cst_101, %250 : f32
    %252 = arith.subf %232, %251 : f32
    %253 = vector.broadcast %252 : f32 to vector<1x1xf32>
    %c0_102 = arith.constant 0 : index
    %c0_103 = arith.constant 0 : index
    %254 = vector.load %arg22[%c0_102, %c0_103] : memref<1x1xf32, #tpu.memory_space<vmem>>, vector<1x1xf32>
    tpu.vector_store %arg22[%c0_102, %c0_103], %253 {strides = array<i32>} : memref<1x1xf32, #tpu.memory_space<vmem>>, vector<1x1xf32>,
    %c0_104 = arith.constant 0 : index
    %c0_105 = arith.constant 0 : index
    %255 = vector.load %arg7[%c0_104, %c0_105] : memref<384x128xf32, #tpu.memory_space<vmem>>, vector<384x128xf32>
    %cst_106 = arith.constant dense<0.000000e+00> : vector<8x128xf32>
    %256 = tpu.matmul %40, %255, %cst_106 {dimension_numbers = #tpu.dot_dimension_numbers<[1], [0], [0], [1], [0, 0, 1, 1], [], []>} : vector<8x384xf32>, vector<384x128xf32>, vector<8x128xf32> -> vector<8x128xf32>
    %c0_107 = arith.constant 0 : index
    %c0_108 = arith.constant 0 : index
    %257 = vector.load %arg8[%c0_107, %c0_108] : memref<1x128xf32, #tpu.memory_space<vmem>>, vector<1x128xf32>
    %258 = vector.broadcast %257 : vector<1x128xf32> to vector<8x128xf32>
    %259 = arith.addf %256, %258 : vector<8x128xf32>
    %cst_109 = arith.constant 0.000000e+00 : f32
    %260 = vector.broadcast %cst_109 : f32 to vector<8x128xf32>
    %261 = arith.maximumf %259, %260 : vector<8x128xf32>
    %c0_110 = arith.constant 0 : index
    %c0_111 = arith.constant 0 : index
    %262 = vector.load %arg9[%c0_110, %c0_111] : memref<128x128xf32, #tpu.memory_space<vmem>>, vector<128x128xf32>
    %cst_112 = arith.constant dense<0.000000e+00> : vector<8x128xf32>
    %263 = tpu.matmul %261, %262, %cst_112 {dimension_numbers = #tpu.dot_dimension_numbers<[1], [0], [0], [1], [0, 0, 1, 1], [], []>} : vector<8x128xf32>, vector<128x128xf32>, vector<8x128xf32> -> vector<8x128xf32>
    %c0_113 = arith.constant 0 : index
    %c0_114 = arith.constant 0 : index
    %264 = vector.load %arg10[%c0_113, %c0_114] : memref<1x128xf32, #tpu.memory_space<vmem>>, vector<1x128xf32>
    %265 = vector.broadcast %264 : vector<1x128xf32> to vector<8x128xf32>
    %266 = arith.addf %263, %265 : vector<8x128xf32>
    %cst_115 = arith.constant 0.000000e+00 : f32
    %267 = vector.broadcast %cst_115 : f32 to vector<8x128xf32>
    %268 = arith.maximumf %266, %267 : vector<8x128xf32>
    %c0_116 = arith.constant 0 : index
    %c0_117 = arith.constant 0 : index
    %269 = vector.load %arg13[%c0_116, %c0_117] : memref<1x512xf32, #tpu.memory_space<vmem>>, vector<1x512xf32>
    %270 = vector.shape_cast %269 : vector<1x512xf32> to vector<1x512xf32>
    %271 = vector.broadcast %270 : vector<1x512xf32> to vector<8x512xf32>
    %c0_118 = arith.constant 0 : index
    %c0_119 = arith.constant 0 : index
    %272 = vector.load %arg11[%c0_118, %c0_119] : memref<128x512xf32, #tpu.memory_space<vmem>>, vector<128x512xf32>
    %cst_120 = arith.constant dense<0.000000e+00> : vector<8x512xf32>
    %273 = tpu.matmul %268, %272, %cst_120 {dimension_numbers = #tpu.dot_dimension_numbers<[1], [0], [0], [1], [0, 0, 1, 1], [], []>} : vector<8x128xf32>, vector<128x512xf32>, vector<8x512xf32> -> vector<8x512xf32>
    %274 = arith.addf %273, %271 : vector<8x512xf32>
    %cst_121 = arith.constant 0.000000e+00 : f32
    %275 = vector.broadcast %cst_121 : f32 to vector<8x128xf32>
    %276 = vector.extract_strided_slice %274 {offsets = [0, 0], sizes = [8, 128], strides = [1, 1]} : vector<8x512xf32> to vector<8x128xf32>
    %277 = arith.negf %276 : vector<8x128xf32>
    %278 = math.exp %277 : vector<8x128xf32>
    %cst_122 = arith.constant 1.000000e+00 : f32
    %279 = vector.broadcast %cst_122 : f32 to vector<8x128xf32>
    %280 = arith.addf %279, %278 : vector<8x128xf32>
    %281 = arith.divf %279, %280 : vector<8x128xf32>
    %282 = vector.extract_strided_slice %274 {offsets = [0, 128], sizes = [8, 128], strides = [1, 1]} : vector<8x512xf32> to vector<8x128xf32>
    %283 = arith.negf %282 : vector<8x128xf32>
    %284 = math.exp %283 : vector<8x128xf32>
    %cst_123 = arith.constant 1.000000e+00 : f32
    %285 = vector.broadcast %cst_123 : f32 to vector<8x128xf32>
    %286 = arith.addf %285, %284 : vector<8x128xf32>
    %287 = arith.divf %285, %286 : vector<8x128xf32>
    %288 = vector.extract_strided_slice %274 {offsets = [0, 256], sizes = [8, 128], strides = [1, 1]} : vector<8x512xf32> to vector<8x128xf32>
    %289 = math.tanh %288 : vector<8x128xf32>
    %290 = vector.extract_strided_slice %274 {offsets = [0, 384], sizes = [8, 128], strides = [1, 1]} : vector<8x512xf32> to vector<8x128xf32>
    %291 = arith.negf %290 : vector<8x128xf32>
    %292 = math.exp %291 : vector<8x128xf32>
    %cst_124 = arith.constant 1.000000e+00 : f32
    %293 = vector.broadcast %cst_124 : f32 to vector<8x128xf32>
    %294 = arith.addf %293, %292 : vector<8x128xf32>
    %295 = arith.divf %293, %294 : vector<8x128xf32>
    %296 = arith.mulf %287, %275 : vector<8x128xf32>
    %297 = arith.mulf %281, %289 : vector<8x128xf32>
    %298 = arith.addf %296, %297 : vector<8x128xf32>
    %299 = math.tanh %298 : vector<8x128xf32>
    %300 = arith.mulf %295, %299 : vector<8x128xf32>
    %c0_125 = arith.constant 0 : index
    %c0_126 = arith.constant 0 : index
    %301 = vector.load %arg24[%c0_125, %c0_126] : memref<48x128xf32, #tpu.memory_space<vmem>>, vector<8x128xf32>
    tpu.vector_store %arg24[%c0_125, %c0_126], %300 {strides = array<i32>} : memref<48x128xf32, #tpu.memory_space<vmem>>, vector<8x128xf32>,
    %c1_i32_127 = arith.constant 1 : i32
    %c5_i32_128 = arith.constant 5 : i32
    %302 = arith.addi %c1_i32_127, %c5_i32_128 : i32
    %c1_i32_129 = arith.constant 1 : i32
    %303:2 = scf.for %arg25 = %c1_i32_127 to %302 step %c1_i32_129 iter_args(%arg26 = %300, %arg27 = %298) -> (vector<8x128xf32>, vector<8x128xf32>)  : i32 {
      %c0_153 = arith.constant 0 : index
      %c0_154 = arith.constant 0 : index
      %324 = vector.load %arg12[%c0_153, %c0_154] : memref<128x512xf32, #tpu.memory_space<vmem>>, vector<128x512xf32>
      %cst_155 = arith.constant dense<0.000000e+00> : vector<8x512xf32>
      %325 = tpu.matmul %arg26, %324, %cst_155 {dimension_numbers = #tpu.dot_dimension_numbers<[1], [0], [0], [1], [0, 0, 1, 1], [], []>} : vector<8x128xf32>, vector<128x512xf32>, vector<8x512xf32> -> vector<8x512xf32>
      %326 = arith.addf %325, %271 : vector<8x512xf32>
      %327 = vector.extract_strided_slice %326 {offsets = [0, 0], sizes = [8, 128], strides = [1, 1]} : vector<8x512xf32> to vector<8x128xf32>
      %328 = arith.negf %327 : vector<8x128xf32>
      %329 = math.exp %328 : vector<8x128xf32>
      %cst_156 = arith.constant 1.000000e+00 : f32
      %330 = vector.broadcast %cst_156 : f32 to vector<8x128xf32>
      %331 = arith.addf %330, %329 : vector<8x128xf32>
      %332 = arith.divf %330, %331 : vector<8x128xf32>
      %333 = vector.extract_strided_slice %326 {offsets = [0, 128], sizes = [8, 128], strides = [1, 1]} : vector<8x512xf32> to vector<8x128xf32>
      %334 = arith.negf %333 : vector<8x128xf32>
      %335 = math.exp %334 : vector<8x128xf32>
      %cst_157 = arith.constant 1.000000e+00 : f32
      %336 = vector.broadcast %cst_157 : f32 to vector<8x128xf32>
      %337 = arith.addf %336, %335 : vector<8x128xf32>
      %338 = arith.divf %336, %337 : vector<8x128xf32>
      %339 = vector.extract_strided_slice %326 {offsets = [0, 256], sizes = [8, 128], strides = [1, 1]} : vector<8x512xf32> to vector<8x128xf32>
      %340 = math.tanh %339 : vector<8x128xf32>
      %341 = vector.extract_strided_slice %326 {offsets = [0, 384], sizes = [8, 128], strides = [1, 1]} : vector<8x512xf32> to vector<8x128xf32>
      %342 = arith.negf %341 : vector<8x128xf32>
      %343 = math.exp %342 : vector<8x128xf32>
      %cst_158 = arith.constant 1.000000e+00 : f32
      %344 = vector.broadcast %cst_158 : f32 to vector<8x128xf32>
      %345 = arith.addf %344, %343 : vector<8x128xf32>
      %346 = arith.divf %344, %345 : vector<8x128xf32>
      %347 = arith.mulf %338, %arg27 : vector<8x128xf32>
      %348 = arith.mulf %332, %340 : vector<8x128xf32>
      %349 = arith.addf %347, %348 : vector<8x128xf32>
      %350 = math.tanh %349 : vector<8x128xf32>
      %351 = arith.mulf %346, %350 : vector<8x128xf32>
      %c8_i32 = arith.constant 8 : i32
      %352 = arith.muli %arg25, %c8_i32 : i32
      %353 = tpu.assume_multiple %352, 8 : i32
      %354 = arith.index_cast %353 : i32 to index
      %c0_159 = arith.constant 0 : index
      %355 = vector.load %arg24[%354, %c0_159] : memref<48x128xf32, #tpu.memory_space<vmem>>, vector<8x128xf32>
      tpu.vector_store %arg24[%354, %c0_159], %351 {strides = array<i32>} : memref<48x128xf32, #tpu.memory_space<vmem>>, vector<8x128xf32>,
      scf.yield %351, %349 : vector<8x128xf32>, vector<8x128xf32>
    }
    %c5_i32_130 = arith.constant 5 : i32
    %c0_131 = arith.constant 0 : index
    %c0_132 = arith.constant 0 : index
    %304 = vector.load %arg24[%c0_131, %c0_132] : memref<48x128xf32, #tpu.memory_space<vmem>>, vector<48x128xf32>
    %c0_133 = arith.constant 0 : index
    %c0_134 = arith.constant 0 : index
    %305 = vector.load %arg14[%c0_133, %c0_134] : memref<128x128xf32, #tpu.memory_space<vmem>>, vector<128x128xf32>
    %cst_135 = arith.constant dense<0.000000e+00> : vector<48x128xf32>
    %306 = tpu.matmul %304, %305, %cst_135 {dimension_numbers = #tpu.dot_dimension_numbers<[1], [0], [0], [1], [0, 0, 1, 1], [], []>} : vector<48x128xf32>, vector<128x128xf32>, vector<48x128xf32> -> vector<48x128xf32>
    %c0_136 = arith.constant 0 : index
    %c0_137 = arith.constant 0 : index
    %307 = vector.load %arg15[%c0_136, %c0_137] : memref<1x128xf32, #tpu.memory_space<vmem>>, vector<1x128xf32>
    %308 = vector.broadcast %307 : vector<1x128xf32> to vector<48x128xf32>
    %309 = arith.addf %306, %308 : vector<48x128xf32>
    %c0_138 = arith.constant 0 : index
    %c0_139 = arith.constant 0 : index
    %310 = vector.load %arg20[%c0_138, %c0_139] : memref<48x128xf32, #tpu.memory_space<vmem>>, vector<48x128xf32>
    tpu.vector_store %arg20[%c0_138, %c0_139], %309 {strides = array<i32>} : memref<48x128xf32, #tpu.memory_space<vmem>>, vector<48x128xf32>,
    %c0_140 = arith.constant 0 : index
    %c0_141 = arith.constant 0 : index
    %311 = vector.load %arg16[%c0_140, %c0_141] : memref<128x128xf32, #tpu.memory_space<vmem>>, vector<128x128xf32>
    %cst_142 = arith.constant dense<0.000000e+00> : vector<8x128xf32>
    %312 = tpu.matmul %268, %311, %cst_142 {dimension_numbers = #tpu.dot_dimension_numbers<[1], [0], [0], [1], [0, 0, 1, 1], [], []>} : vector<8x128xf32>, vector<128x128xf32>, vector<8x128xf32> -> vector<8x128xf32>
    %c0_143 = arith.constant 0 : index
    %c0_144 = arith.constant 0 : index
    %313 = vector.load %arg17[%c0_143, %c0_144] : memref<1x128xf32, #tpu.memory_space<vmem>>, vector<1x128xf32>
    %314 = vector.broadcast %313 : vector<1x128xf32> to vector<8x128xf32>
    %315 = arith.addf %312, %314 : vector<8x128xf32>
    %cst_145 = arith.constant 0.000000e+00 : f32
    %316 = vector.broadcast %cst_145 : f32 to vector<8x128xf32>
    %317 = arith.maximumf %315, %316 : vector<8x128xf32>
    %c0_146 = arith.constant 0 : index
    %c0_147 = arith.constant 0 : index
    %318 = vector.load %arg18[%c0_146, %c0_147] : memref<128x128xf32, #tpu.memory_space<vmem>>, vector<128x128xf32>
    %cst_148 = arith.constant dense<0.000000e+00> : vector<8x128xf32>
    %319 = tpu.matmul %317, %318, %cst_148 {dimension_numbers = #tpu.dot_dimension_numbers<[1], [0], [0], [1], [0, 0, 1, 1], [], []>} : vector<8x128xf32>, vector<128x128xf32>, vector<8x128xf32> -> vector<8x128xf32>
    %c0_149 = arith.constant 0 : index
    %c0_150 = arith.constant 0 : index
    %320 = vector.load %arg19[%c0_149, %c0_150] : memref<1x128xf32, #tpu.memory_space<vmem>>, vector<1x128xf32>
    %321 = vector.broadcast %320 : vector<1x128xf32> to vector<8x128xf32>
    %322 = arith.addf %319, %321 : vector<8x128xf32>
    %c0_151 = arith.constant 0 : index
    %c0_152 = arith.constant 0 : index
    %323 = vector.load %arg21[%c0_151, %c0_152] : memref<8x128xf32, #tpu.memory_space<vmem>>, vector<8x128xf32>
    tpu.vector_store %arg21[%c0_151, %c0_152], %322 {strides = array<i32>} : memref<8x128xf32, #tpu.memory_space<vmem>>, vector<8x128xf32>,
    return
  }
}

</mosaic_0001>

<bundles_post_ra>
// kernel: _lambda_.1
= control target key start
LH: loop header
LB: loop body
LE: loop exit
PB: predicated region body
PF: predicated region fallthrough
CT: control target
= control target key end

     0   :  { %s5617_s0 = inlined_call_operand.vmem [shape: f32[48,20], index: 0, kind: input, shape index: {}]   ;;  %s5618_s1 = inlined_call_operand.vmem [shape: f32[8,384], index: 1, kind: input, shape index: {}]   ;;  %s5619_s2 = inlined_call_operand.hbm [shape: f32[20,512], index: 2, kind: input, shape index: {}]   ;;  %s5620_s3 = inlined_call_operand.hbm [shape: f32[128,512], index: 3, kind: input, shape index: {}]   ;;  %s5621_s4 = inlined_call_operand.vmem [shape: f32[1,512], index: 4, kind: input, shape index: {}]   ;;  %s5622_s5 = inlined_call_operand.vmem [shape: f32[128,384], index: 5, kind: input, shape index: {}]   ;;  %s5623_s6 = inlined_call_operand.vmem [shape: f32[1,384], index: 6, kind: input, shape index: {}]   ;;  %s5624_s7 = inlined_call_operand.hbm [shape: f32[384,128], index: 7, kind: input, shape index: {}]   ;;  %s5625_s8 = inlined_call_operand.vmem [shape: f32[1,128], index: 8, kind: input, shape index: {}]   ;;  %s5626_s9 = inlined_call_operand.hbm [shape: f32[128,128], index: 9, kind: input, shape index: {}]   ;;  %s5627_s10 = inlined_call_operand.vmem [shape: f32[1,128], index: 10, kind: input, shape index: {}]   ;;  %s5628_s11 = inlined_call_operand.hbm [shape: f32[128,512], index: 11, kind: input, shape index: {}]   ;;  %s5629_s12 = inlined_call_operand.hbm [shape: f32[128,512], index: 12, kind: input, shape index: {}]   ;;  %s5630_s13 = inlined_call_operand.vmem [shape: f32[1,512], index: 13, kind: input, shape index: {}]   ;;  %s5631_s14 = inlined_call_operand.hbm [shape: f32[128,128], index: 14, kind: input, shape index: {}]   ;;  %s5632_s15 = inlined_call_operand.vmem [shape: f32[1,128], index: 15, kind: input, shape index: {}]   ;;  %s5633_s16 = inlined_call_operand.hbm [shape: f32[128,128], index: 16, kind: input, shape index: {}]   ;;  %s5634_s17 = inlined_call_operand.vmem [shape: f32[1,128], index: 17, kind: input, shape index: {}]   ;;  %s5635_s18 = inlined_call_operand.hbm [shape: f32[128,128], index: 18, kind: input, shape index: {}]   ;;  %s5636_s19 = inlined_call_operand.vmem [shape: f32[1,128], index: 19, kind: input, shape index: {}]   ;;  %s5637_s20 = inlined_call_operand.vmem [shape: f32[48,128], index: 20, kind: output, shape index: {0}]   ;;  %s5638_s21 = inlined_call_operand.vmem [shape: f32[8,128], index: 21, kind: output, shape index: {1}]   ;;  %s5639_s22 = inlined_call_operand.hbm [shape: f32[1,1], index: 22, kind: output, shape index: {2}]  }
   0x1   :  { %5645 = sst [smem:[#allocation26_spill]] %s5617_s0 }
   0x2   :  { %5646 = sst [smem:[#allocation27_spill]] %s5618_s1 }
   0x3   :  { %5647 = sst [smem:[#allocation28_spill]] %s5619_s2 }
   0x4   :  { %5648 = sst [smem:[#allocation29_spill]] %s5620_s3 }
   0x5   :  { %5649 = sst [smem:[#allocation30_spill]] %s5621_s4 }
   0x6   :  { %5650 = sst [smem:[#allocation31_spill]] %s5622_s5 }
   0x7   :  { %5651 = sst [smem:[#allocation32_spill]] %s5623_s6 }
   0x8   :  { %5652 = sst [smem:[#allocation33_spill]] %s5636_s19 }
   0x9   :  { %5653 = sst [smem:[#allocation34_spill]] %s5638_s21 }
   0xa   :  { %28 = vsyncpa [#allocation5], 0 }
   0xb   :  { %29 = vsyncpa [#allocation8], 0 }
   0xc   :  { %30 = vsyncpa [#allocation11], 0 }
   0xd   :  { %31 = vsyncpa [#allocation14], 0 }
   0xe   :  { %32 = vsyncpa [#allocation17], 0 }
   0xf   :  { %33 = vsyncpa [#allocation6], 0  ;;  %s4777_s3 = smov [#allocation7]   ;;  %s5654_s4 = sld [smem:[#allocation29_spill]] }
  0x10   :  { %s55_s28 = sshll.u32 %s4777_s3, 4  ;;  %s56_s28 = int_to_ptr.vmem [resolvable:$true] %s55_s28 }
  0x15   :  { %s4497_s0 = scalar_lea.hbm %s5654_s4, 8192 }
  0x16   :  { %p4498_p0 = scmp.ne.s32.totalorder %s5654_s4, %s4497_s0  ;;  %p4501_p1 = scmp.lt.u32.totalorder %s4497_s0, %s5654_s4 }
  0x18   :  { %p4503_p2 = pnand %p4501_p1, %p4498_p0 }
  0x1a   :  { %4506 = shalt.err (!%p4503_p2)
}
  0x1b   :  { %s4507_s6 = scalar_lea.vmem %s56_s28, 8192  ;;  %p4512_p4 = scmp.lt.s32.totalorder %s56_s28, %s56_s28 }
  0x1c   :  { %p4508_p3 = scmp.ne.s32.totalorder %s56_s28, %s4507_s6  ;;  %p4513_p5 = scmp.lt.s32.totalorder %s4507_s6, %s4507_s6 }
  0x1e   :  { %p4514_p6 = por %p4513_p5, %p4512_p4 }
  0x20   :  { %p4515_p7 = pnand %p4514_p6, %p4508_p3 }
  0x22   :  { %4518 = shalt.err (!%p4515_p7)
}
  0x23   :  { %s4778_s25 = smov 512   ;;  %s4779_s26 = smov 32  }
  0x24   :  { %61 = dma.hbm_to_vmem [thread:$0]  %s5654_s4, 8192, %s56_s28, [#allocation8], %s4778_s25, %s4778_s25, %s4779_s26  }
  0x25   :  { %s4780_s3 = smov [#allocation10]   ;;  %s4781_s30 = smov [#allocation13]  }
  0x26   :  { %s87_s29 = sshll.u32 %s4780_s3, 4  ;;  %s113_s0 = sshll.u32 %s4781_s30, 4  ;;  %s88_s29 = int_to_ptr.vmem [resolvable:$true] %s87_s29  ;;  %s114_s0 = int_to_ptr.vmem [resolvable:$true] %s113_s0 }
  0x27   :  { %s4519_s5 = scalar_lea.hbm %s5626_s9, 2048 }
  0x28   :  { %p4520_p8 = scmp.ne.s32.totalorder %s5626_s9, %s4519_s5  ;;  %p4523_p9 = scmp.lt.u32.totalorder %s4519_s5, %s5626_s9 }
  0x2a   :  { %p4525_p10 = pnand %p4523_p9, %p4520_p8 }
  0x2c   :  { %4528 = shalt.err (!%p4525_p10)
}
  0x2d   :  { %s4529_s28 = scalar_lea.vmem %s88_s29, 2048  ;;  %p4534_p12 = scmp.lt.s32.totalorder %s88_s29, %s88_s29 }
  0x2e   :  { %p4530_p11 = scmp.ne.s32.totalorder %s88_s29, %s4529_s28  ;;  %p4535_p13 = scmp.lt.s32.totalorder %s4529_s28, %s4529_s28 }
  0x30   :  { %p4536_p0 = por %p4535_p13, %p4534_p12 }
  0x32   :  { %p4537_p1 = pnand %p4536_p0, %p4530_p11 }
  0x34   :  { %4540 = shalt.err (!%p4537_p1)
}
  0x35   :  { %s4782_s4 = smov 128   ;;  %s4783_s2 = smov 8  }
  0x36   :  { %93 = dma.hbm_to_vmem [thread:$0]  %s5626_s9, 2048, %s88_s29, [#allocation11], %s4782_s4, %s4782_s4, %s4783_s2  }
  0x37   :  { %s4541_s30 = scalar_lea.hbm %s5629_s12, 8192 }
  0x38   :  { %p4542_p2 = scmp.ne.s32.totalorder %s5629_s12, %s4541_s30  ;;  %p4545_p3 = scmp.lt.u32.totalorder %s4541_s30, %s5629_s12 }
  0x3a   :  { %p4547_p4 = pnand %p4545_p3, %p4542_p2 }
  0x3c   :  { %4550 = shalt.err (!%p4547_p4)
}
  0x3d   :  { %s4551_s6 = scalar_lea.vmem %s114_s0, 8192  ;;  %p4556_p6 = scmp.lt.s32.totalorder %s114_s0, %s114_s0 }
  0x3e   :  { %p4552_p5 = scmp.ne.s32.totalorder %s114_s0, %s4551_s6  ;;  %p4557_p7 = scmp.lt.s32.totalorder %s4551_s6, %s4551_s6 }
  0x40   :  { %p4558_p8 = por %p4557_p7, %p4556_p6 }
  0x42   :  { %p4559_p9 = pnand %p4558_p8, %p4552_p5 }
  0x44   :  { %4562 = shalt.err (!%p4559_p9)
}
  0x45   :  { %119 = dma.hbm_to_vmem [thread:$0]  %s5629_s12, 8192, %s114_s0, [#allocation14], %s4778_s25, %s4778_s25, %s4779_s26  }
  0x46   :  { %s4784_s28 = smov [#allocation16]   ;;  %s4785_s3 = smov [#allocation4]  }
  0x47   :  { %s141_s27 = sshll.u32 %s4784_s28, 4  ;;  %s43_s19 = sshll.u32 %s4785_s3, 4  ;;  %s142_s27 = int_to_ptr.vmem [resolvable:$true] %s141_s27  ;;  %s44_s19 = int_to_ptr.vmem [resolvable:$true] %s43_s19 }
  0x48   :  { %s4563_s23 = scalar_lea.hbm %s5633_s16, 2048 }
  0x49   :  { %p4564_p10 = scmp.ne.s32.totalorder %s5633_s16, %s4563_s23  ;;  %p4567_p11 = scmp.lt.u32.totalorder %s4563_s23, %s5633_s16 }
  0x4b   :  { %p4569_p12 = pnand %p4567_p11, %p4564_p10 }
  0x4d   :  { %4572 = shalt.err (!%p4569_p12)
}
  0x4e   :  { %s4573_s12 = scalar_lea.vmem %s142_s27, 2048  ;;  %p4578_p0 = scmp.lt.s32.totalorder %s142_s27, %s142_s27 }
  0x4f   :  { %p4574_p13 = scmp.ne.s32.totalorder %s142_s27, %s4573_s12  ;;  %p4579_p1 = scmp.lt.s32.totalorder %s4573_s12, %s4573_s12 }
  0x51   :  { %p4580_p2 = por %p4579_p1, %p4578_p0 }
  0x53   :  { %p4581_p3 = pnand %p4580_p2, %p4574_p13 }
  0x55   :  { %4584 = shalt.err (!%p4581_p3)
}
  0x56   :  { %147 = dma.hbm_to_vmem [thread:$0]  %s5633_s16, 2048, %s142_s27, [#allocation17], %s4782_s4, %s4782_s4, %s4783_s2  }
  0x57   :  { %s5655_s3 = sld [smem:[#allocation28_spill]] }
  0x5d   :  { %s4585_s21 = scalar_lea.hbm %s5655_s3, 1536 }
  0x5e   :  { %p4586_p4 = scmp.ne.s32.totalorder %s5655_s3, %s4585_s21  ;;  %p4589_p5 = scmp.lt.u32.totalorder %s4585_s21, %s5655_s3 }
  0x60   :  { %p4591_p6 = pnand %p4589_p5, %p4586_p4 }
  0x62   :  { %4594 = shalt.err (!%p4591_p6)
}
  0x63   :  { %s4595_s24 = scalar_lea.vmem %s44_s19, 1536  ;;  %p4600_p8 = scmp.lt.s32.totalorder %s44_s19, %s44_s19 }
  0x64   :  { %p4596_p7 = scmp.ne.s32.totalorder %s44_s19, %s4595_s24  ;;  %p4601_p9 = scmp.lt.s32.totalorder %s4595_s24, %s4595_s24 }
  0x66   :  { %p4602_p10 = por %p4601_p9, %p4600_p8 }
  0x68   :  { %p4603_p11 = pnand %p4602_p10, %p4596_p7 }
  0x6a   :  { %4606 = shalt.err (!%p4603_p11)
}
  0x6b   :  { %49 = dma.hbm_to_vmem [thread:$0]  %s5655_s3, 1536, %s44_s19, [#allocation5], %s4778_s25, %s4778_s25, %s4779_s26  }
  0x6c   :  { %s4786_s6 = smov [#allocation9]   ;;  %s4787_s0 = smov [#allocation12]  }
  0x6d   :  { %s73_s12 = sshll.u32 %s4786_s6, 4  ;;  %s101_s9 = sshll.u32 %s4787_s0, 4  ;;  %s74_s12 = int_to_ptr.vmem [resolvable:$true] %s73_s12  ;;  %s102_s9 = int_to_ptr.vmem [resolvable:$true] %s101_s9 }
  0x6e   :  { %s4607_s21 = scalar_lea.hbm %s5624_s7, 6144 }
  0x6f   :  { %p4608_p12 = scmp.ne.s32.totalorder %s5624_s7, %s4607_s21  ;;  %p4611_p13 = scmp.lt.u32.totalorder %s4607_s21, %s5624_s7 }
  0x71   :  { %p4613_p0 = pnand %p4611_p13, %p4608_p12 }
  0x73   :  { %4616 = shalt.err (!%p4613_p0)
}
  0x74   :  { %s4617_s19 = scalar_lea.vmem %s74_s12, 6144  ;;  %p4622_p2 = scmp.lt.s32.totalorder %s74_s12, %s74_s12 }
  0x75   :  { %p4618_p1 = scmp.ne.s32.totalorder %s74_s12, %s4617_s19  ;;  %p4623_p3 = scmp.lt.s32.totalorder %s4617_s19, %s4617_s19 }
  0x77   :  { %p4624_p4 = por %p4623_p3, %p4622_p2 }
  0x79   :  { %p4625_p5 = pnand %p4624_p4, %p4618_p1 }
  0x7b   :  { %4628 = shalt.err (!%p4625_p5)
}
  0x7c   :  { %79 = dma.hbm_to_vmem [thread:$0]  %s5624_s7, 6144, %s74_s12, [#allocation8], %s4782_s4, %s4782_s4, %s4783_s2  }
  0x7d   :  { %s4629_s6 = scalar_lea.hbm %s5628_s11, 8192 }
  0x7e   :  { %p4630_p6 = scmp.ne.s32.totalorder %s5628_s11, %s4629_s6  ;;  %p4633_p7 = scmp.lt.u32.totalorder %s4629_s6, %s5628_s11 }
  0x80   :  { %p4635_p8 = pnand %p4633_p7, %p4630_p6 }
  0x82   :  { %4638 = shalt.err (!%p4635_p8)
}
  0x83   :  { %s4639_s30 = scalar_lea.vmem %s102_s9, 8192  ;;  %p4644_p10 = scmp.lt.s32.totalorder %s102_s9, %s102_s9 }
  0x84   :  { %p4640_p9 = scmp.ne.s32.totalorder %s102_s9, %s4639_s30  ;;  %p4645_p11 = scmp.lt.s32.totalorder %s4639_s30, %s4639_s30 }
  0x86   :  { %p4646_p12 = por %p4645_p11, %p4644_p10 }
  0x88   :  { %p4647_p13 = pnand %p4646_p12, %p4640_p9 }
  0x8a   :  { %4650 = shalt.err (!%p4647_p13)
}
  0x8b   :  { %107 = dma.hbm_to_vmem [thread:$0]  %s5628_s11, 8192, %s102_s9, [#allocation11], %s4778_s25, %s4778_s25, %s4779_s26  }
  0x8c   :  { %s4788_s23 = smov [#allocation15]   ;;  %s4789_s5 = smov [#allocation18]  }
  0x8d   :  { %s127_s1 = sshll.u32 %s4788_s23, 4  ;;  %s155_s19 = sshll.u32 %s4789_s5, 4  ;;  %s128_s1 = int_to_ptr.vmem [resolvable:$true] %s127_s1  ;;  %s156_s19 = int_to_ptr.vmem [resolvable:$true] %s155_s19 }
  0x8e   :  { %s4651_s16 = scalar_lea.hbm %s5631_s14, 2048 }
  0x8f   :  { %p4652_p0 = scmp.ne.s32.totalorder %s5631_s14, %s4651_s16  ;;  %p4655_p1 = scmp.lt.u32.totalorder %s4651_s16, %s5631_s14 }
  0x91   :  { %p4657_p2 = pnand %p4655_p1, %p4652_p0 }
  0x93   :  { %4660 = shalt.err (!%p4657_p2)
}
  0x94   :  { %s4661_s11 = scalar_lea.vmem %s128_s1, 2048  ;;  %p4666_p4 = scmp.lt.s32.totalorder %s128_s1, %s128_s1 }
  0x95   :  { %p4662_p3 = scmp.ne.s32.totalorder %s128_s1, %s4661_s11  ;;  %p4667_p5 = scmp.lt.s32.totalorder %s4661_s11, %s4661_s11 }
  0x97   :  { %p4668_p6 = por %p4667_p5, %p4666_p4 }
  0x99   :  { %p4669_p7 = pnand %p4668_p6, %p4662_p3 }
  0x9b   :  { %4672 = shalt.err (!%p4669_p7)
}
  0x9c   :  { %133 = dma.hbm_to_vmem [thread:$0]  %s5631_s14, 2048, %s128_s1, [#allocation14], %s4782_s4, %s4782_s4, %s4783_s2  }
  0x9d   :  { %s4673_s21 = scalar_lea.hbm %s5635_s18, 2048 }
  0x9e   :  { %p4674_p8 = scmp.ne.s32.totalorder %s5635_s18, %s4673_s21  ;;  %p4677_p9 = scmp.lt.u32.totalorder %s4673_s21, %s5635_s18 }
  0xa0   :  { %p4679_p10 = pnand %p4677_p9, %p4674_p8 }
  0xa2   :  { %4682 = shalt.err (!%p4679_p10)
}
  0xa3   :  { %s4683_s5 = scalar_lea.vmem %s156_s19, 2048  ;;  %p4688_p12 = scmp.lt.s32.totalorder %s156_s19, %s156_s19 }
  0xa4   :  { %p4684_p11 = scmp.ne.s32.totalorder %s156_s19, %s4683_s5  ;;  %p4689_p13 = scmp.lt.s32.totalorder %s4683_s5, %s4683_s5 }
  0xa6   :  { %p4690_p0 = por %p4689_p13, %p4688_p12 }
  0xa8   :  { %p4691_p1 = pnand %p4690_p0, %p4684_p11 }
  0xaa   :  { %4694 = shalt.err (!%p4691_p1)
}
  0xab   :  { %161 = dma.hbm_to_vmem [thread:$0]  %s5635_s18, 2048, %s156_s19, [#allocation17], %s4782_s4, %s4782_s4, %s4783_s2  }
  0xac   :  { %4741 = dma.done.wait [#allocation5], 1536  }
  0xad   :  { %4742 = vsyncadd [#allocation5], 4294965760 }
  0xae   :  { %4743 = dma.done.wait [#allocation8], 14336  }
  0xaf   :  { %4744 = vsyncadd [#allocation8], 4294952960 }
  0xb0   :  { %4745 = dma.done.wait [#allocation11], 10240  }
  0xb1   :  { %4746 = vsyncadd [#allocation11], 4294957056 }
  0xb2   :  { %4747 = dma.done.wait [#allocation14], 10240  }
  0xb3   :  { %4748 = vsyncadd [#allocation14], 4294957056 }
  0xb4   :  { %4749 = dma.done.wait [#allocation17], 4096  }
  0xb5   :  { %4750 = vsyncadd [#allocation17], 4294963200  ;;  %v4790_v0 = vmov 0.0   ;;  %v198_v1 = vld [vmem:[#allocation4 + $0x8] sm:$0xff]  ;;  %v197_v3 = vld [vmem:[#allocation4] sm:$0xff]  ;;  %vm250_vm0 = vcmask 1043456   ;;  %v211_v23 = vlaneseq }
  0xb6   :  { %327 = vmatprep.mubr.f32.mxu0 %v4790_v0  ;;  %428 = vmatprep.mubr.f32.mxu1 %v4790_v0  ;;  %v202_v2 = vld [vmem:[#allocation4 + $0x28] sm:$0xff]  ;;  %v201_v5 = vld [vmem:[#allocation4 + $0x20] sm:$0xff]  ;;  %v200_v8 = vld [vmem:[#allocation4 + $0x18] sm:$0xff]  ;;  %s5656_s2 = sld [smem:[#allocation26_spill]]  ;;  %vm231_vm1 = vcmask 162816   ;;  %s5657_s28 = sld [smem:[#allocation30_spill]] }
  0xb7   :  { %v3913_v4 = vpack.c.bf16 %v202_v2, %v198_v1  ;;  %v3915_v6 = vpack.c.bf16 %v201_v5, %v197_v3  ;;  %v206_v7 = vld [vmem:[#allocation4 + $0x48] sm:$0xf]  ;;  %v204_v9 = vld [vmem:[#allocation4 + $0x38] sm:$0xff]  ;;  %v199_v11 = vld [vmem:[#allocation4 + $0x10] sm:$0xff]  ;;  %v5093_v24 = vshrl.u32 %v211_v23, 7  ;;  %s5149_s21 = smov 1  }
  0xb8   :  { %v3917_v10 = vpack.c.bf16 %v204_v9, %v200_v8  ;;  %v203_v12 = vld [vmem:[#allocation4 + $0x30] sm:$0xff]  ;;  %v208_v14 = vld [vmem:[#allocation4 + $0x58] sm:$0xf]  ;;  %v205_v15 = vld [vmem:[#allocation4 + $0x40] sm:$0xf] }
  0xb9   :  { %3914 = vmatprep.subr.bf16.mxu0 %v3913_v4  ;;  %v3919_v13 = vpack.c.bf16 %v203_v12, %v199_v11  ;;  %v207_v17 = vld [vmem:[#allocation4 + $0x50] sm:$0xf]  ;;  %v5096_v25 = vsub.s32 0, %v5093_v24  ;;  %v5102_v27 = vsub.s32 1, %v5093_v24  ;;  %v5105_v28 = vsub.s32 2, %v5093_v24 }
  0xba   :  { %3916 = vmatpush1.bf16.msra.mxu0 %v3915_v6  ;;  %3918 = vmatprep.subr.bf16.mxu1 %v3917_v10  ;;  %v225_v29 = vsub.s32 3, %v5093_v24 }
  0xbb   :  { %3412 = vmatprep.subr.msk.mxu0 %vm250_vm0, %v206_v7  ;;  %3920 = vmatpush1.bf16.msra.mxu1 %v3919_v13 }
  0xbc   :  { %v191_v16 = vld [vmem:[%s5656_s2] sm:$0xff]  ;;  %3420 = vmatprep.subr.msk.mxu1 %vm250_vm0, %v208_v14  ;;  %v192_v18 = vld [vmem:[%s5656_s2 + $0x8] sm:$0xff]  ;;  %v193_v19 = vld [vmem:[%s5656_s2 + $0x10] sm:$0xff] }
  0xbd   :  { %v194_v20 = vld [vmem:[%s5656_s2 + $0x18] sm:$0xff]  ;;  %v195_v21 = vld [vmem:[%s5656_s2 + $0x20] sm:$0xff]  ;;  %v196_v22 = vld [vmem:[%s5656_s2 + $0x28] sm:$0xff] }
  0xbe   :  { %3413 = vmatpush1.msk.msra.mxu0 %vm250_vm0, %v205_v15  ;;  %v209_v26 = vld [vmem:[%s5657_s28] sm:$0xf] }
  0xbf   :  { %3414 = vmatmul.mubr.msk.f32.vlgmr.msra.gmra.mrb[0].mxu0 %vm231_vm1, %v191_v16  ;;  %3421 = vmatpush1.msk.msra.mxu1 %vm250_vm0, %v207_v17  ;;  %v5109_v30 = vrot.slane %v209_v26, %v5096_v25  ;;  %v5112_v31 = vrot.slane %v209_v26, %v5102_v27  ;;  %v5115_v32 = vrot.slane %v209_v26, %v5105_v28 }
  0xc0   :  { %333 = vmatprep.mubr.f32.mxu0 %v4790_v0  ;;  %3422 = vmatmul.mubr.msk.f32.vlgmr.msra.gmra.mrb[0].mxu1 %vm231_vm1, %v191_v16  ;;  %v5119_v34 = vrot.slane %v209_v26, %v225_v29 }
  0xc1   :  { %434 = vmatprep.mubr.f32.mxu1 %v4790_v0 }
  0xc3   :  { %3415 = vmatmul.mubr.msk.f32.gmra.mrb[2].mxu0 %vm231_vm1, %v192_v18 }
  0xc4   :  { %339 = vmatprep.mubr.f32.mxu0 %v4790_v0  ;;  %3423 = vmatmul.mubr.msk.f32.gmra.mrb[2].mxu1 %vm231_vm1, %v192_v18 }
  0xc5   :  { %440 = vmatprep.mubr.f32.mxu1 %v4790_v0 }
  0xc7   :  { %3416 = vmatmul.mubr.msk.f32.gmra.mrb[4].mxu0 %vm231_vm1, %v193_v19 }
  0xc8   :  { %345 = vmatprep.mubr.f32.mxu0 %v4790_v0  ;;  %3424 = vmatmul.mubr.msk.f32.gmra.mrb[4].mxu1 %vm231_vm1, %v193_v19 }
  0xc9   :  { %446 = vmatprep.mubr.f32.mxu1 %v4790_v0 }
  0xcb   :  { %3417 = vmatmul.mubr.msk.f32.gmra.mrb[6].mxu0 %vm231_vm1, %v194_v20 }
  0xcc   :  { %351 = vmatprep.mubr.f32.mxu0 %v4790_v0  ;;  %3425 = vmatmul.mubr.msk.f32.gmra.mrb[6].mxu1 %vm231_vm1, %v194_v20 }
  0xcd   :  { %452 = vmatprep.mubr.f32.mxu1 %v4790_v0 }
  0xcf   :  { %3418 = vmatmul.mubr.msk.f32.gmra.mrb[8].mxu0 %vm231_vm1, %v195_v21 }
  0xd0   :  { %357 = vmatprep.mubr.f32.mxu0 %v4790_v0  ;;  %3426 = vmatmul.mubr.msk.f32.gmra.mrb[8].mxu1 %vm231_vm1, %v195_v21 }
  0xd1   :  { %458 = vmatprep.mubr.f32.mxu1 %v4790_v0 }
  0xd3   :  { %3419 = vmatmul.mubr.msk.f32.gmra.mrb[10].mxu0 %vm231_vm1, %v196_v22 }
  0xd4   :  { %3427 = vmatmul.mubr.msk.f32.gmra.mrb[10].mxu1 %vm231_vm1, %v196_v22 }
 0x192   :  { %v329_v33 = vpop.f32.mrb[0].mxu0 }
 0x193   :  { %v330_v35 = vadd.f32 %v329_v33, %v5109_v30  ;;  %v331_v36 = vpop.f32.mrb[1].mxu0  ;;  %v430_v38 = vpop.f32.mrb[0].mxu1 }
 0x194   :  { %v332_v37 = vadd.f32 %v331_v36, %v5112_v31  ;;  %v431_v40 = vadd.f32 %v430_v38, %v5115_v32  ;;  %v432_v41 = vpop.f32.mrb[1].mxu1 }
 0x195   :  { %465 = vst [vmem:[#allocation2] sm:$0xff] %v330_v35  ;;  %v3428_v39 = vmul.f32 -1.442695, %v330_v35  ;;  %v433_v43 = vadd.f32 %v432_v41, %v5119_v34 }
 0x196   :  { %466 = vst [vmem:[#allocation2 + $0x8] sm:$0xff] %v332_v37  ;;  %v3429_v42 = vmul.f32 -1.442695, %v332_v37  ;;  %v335_v44 = vpop.f32.mrb[2].mxu0  ;;  %467 = vst [vmem:[#allocation2 + $0x10] sm:$0xff] %v431_v40 }
 0x197   :  { %4415 = vpow2.f32 %v3428_v39  ;;  %v336_v45 = vadd.f32 %v335_v44, %v5109_v30  ;;  %v337_v46 = vpop.f32.mrb[3].mxu0  ;;  %468 = vst [vmem:[#allocation2 + $0x18] sm:$0xff] %v433_v43  ;;  %v436_v47 = vpop.f32.mrb[2].mxu1  ;;  %v3430_v57 = vmul.f32 -1.442695, %v433_v43 }
 0x198   :  { %4417 = vpow2.f32 %v3429_v42  ;;  %v338_v48 = vadd.f32 %v337_v46, %v5112_v31  ;;  %v437_v49 = vadd.f32 %v436_v47, %v5115_v32  ;;  %v438_v50 = vpop.f32.mrb[3].mxu1 }
 0x199   :  { %469 = vst [vmem:[#allocation2 + $0x20] sm:$0xff] %v336_v45  ;;  %v439_v51 = vadd.f32 %v438_v50, %v5119_v34  ;;  %4419 = vpow2.f32 %v3430_v57 }
 0x19a   :  { %470 = vst [vmem:[#allocation2 + $0x28] sm:$0xff] %v338_v48  ;;  %v341_v52 = vpop.f32.mrb[4].mxu0  ;;  %471 = vst [vmem:[#allocation2 + $0x30] sm:$0xff] %v437_v49  ;;  %4421 = vtanh.f32 %v431_v40 }
 0x19b   :  { %v342_v53 = vadd.f32 %v341_v52, %v5109_v30  ;;  %v343_v54 = vpop.f32.mrb[5].mxu0  ;;  %472 = vst [vmem:[#allocation2 + $0x38] sm:$0xff] %v439_v51  ;;  %v442_v55 = vpop.f32.mrb[4].mxu1 }
 0x19c   :  { %v344_v56 = vadd.f32 %v343_v54, %v5112_v31  ;;  %v443_v58 = vadd.f32 %v442_v55, %v5115_v32  ;;  %v444_v59 = vpop.f32.mrb[5].mxu1 }
 0x19d   :  { %473 = vst [vmem:[#allocation2 + $0x40] sm:$0xff] %v342_v53  ;;  %v445_v60 = vadd.f32 %v444_v59, %v5119_v34 }
 0x19e   :  { %474 = vst [vmem:[#allocation2 + $0x48] sm:$0xff] %v344_v56  ;;  %v347_v61 = vpop.f32.mrb[6].mxu0  ;;  %475 = vst [vmem:[#allocation2 + $0x50] sm:$0xff] %v443_v58 }
 0x19f   :  { %v348_v62 = vadd.f32 %v347_v61, %v5109_v30  ;;  %v349_v63 = vpop.f32.mrb[7].mxu0  ;;  %476 = vst [vmem:[#allocation2 + $0x58] sm:$0xff] %v445_v60  ;;  %v448_v1 = vpop.f32.mrb[6].mxu1 }
 0x1a0   :  { %v350_v2 = vadd.f32 %v349_v63, %v5112_v31  ;;  %v449_v4 = vadd.f32 %v448_v1, %v5115_v32  ;;  %v450_v5 = vpop.f32.mrb[7].mxu1 }
 0x1a1   :  { %v4416_v3 = vpop.eup %4415  ;;  %477 = vst [vmem:[#allocation2 + $0x60] sm:$0xff] %v348_v62  ;;  %v451_v8 = vadd.f32 %v450_v5, %v5119_v34 }
 0x1a2   :  { %v4418_v6 = vpop.eup %4417  ;;  %v496_v7 = vadd.f32 1.0, %v4416_v3  ;;  %478 = vst [vmem:[#allocation2 + $0x68] sm:$0xff] %v350_v2  ;;  %v353_v9 = vpop.f32.mrb[8].mxu0  ;;  %479 = vst [vmem:[#allocation2 + $0x70] sm:$0xff] %v449_v4 }
 0x1a3   :  { %v502_v10 = vadd.f32 1.0, %v4418_v6  ;;  %v354_v11 = vadd.f32 %v353_v9, %v5109_v30  ;;  %v355_v12 = vpop.f32.mrb[9].mxu0  ;;  %480 = vst [vmem:[#allocation2 + $0x78] sm:$0xff] %v451_v8  ;;  %v454_v13 = vpop.f32.mrb[8].mxu1 }
 0x1a4   :  { %4423 = vrcp.f32 %v496_v7  ;;  %v356_v14 = vadd.f32 %v355_v12, %v5112_v31  ;;  %v455_v15 = vadd.f32 %v454_v13, %v5115_v32  ;;  %v456_v16 = vpop.f32.mrb[9].mxu1  ;;  %v4420_v35 = vpop.eup %4419 }
 0x1a5   :  { %4425 = vrcp.f32 %v502_v10  ;;  %481 = vst [vmem:[#allocation2 + $0x80] sm:$0xff] %v354_v11  ;;  %v457_v17 = vadd.f32 %v456_v16, %v5119_v34  ;;  %v4422_v36 = vpop.eup %4421  ;;  %v509_v38 = vadd.f32 1.0, %v4420_v35 }
 0x1a6   :  { %482 = vst [vmem:[#allocation2 + $0x88] sm:$0xff] %v356_v14  ;;  %v359_v18 = vpop.f32.mrb[10].mxu0  ;;  %483 = vst [vmem:[#allocation2 + $0x90] sm:$0xff] %v455_v15 }
 0x1a7   :  { %v360_v19 = vadd.f32 %v359_v18, %v5109_v30  ;;  %v361_v20 = vpop.f32.mrb[11].mxu0  ;;  %484 = vst [vmem:[#allocation2 + $0x98] sm:$0xff] %v457_v17  ;;  %v460_v21 = vpop.f32.mrb[10].mxu1  ;;  %4427 = vrcp.f32 %v509_v38 }
 0x1a8   :  { %v362_v22 = vadd.f32 %v361_v20, %v5112_v31  ;;  %v461_v23 = vadd.f32 %v460_v21, %v5115_v32  ;;  %v462_v26 = vpop.f32.mrb[11].mxu1 }
 0x1a9   :  { %485 = vst [vmem:[#allocation2 + $0xa0] sm:$0xff] %v360_v19  ;;  %v463_v33 = vadd.f32 %v462_v26, %v5119_v34 }
 0x1aa   :  { %486 = vst [vmem:[#allocation2 + $0xa8] sm:$0xff] %v362_v22  ;;  %487 = vst [vmem:[#allocation2 + $0xb0] sm:$0xff] %v461_v23 }
 0x1ab   :  { %488 = vst [vmem:[#allocation2 + $0xb8] sm:$0xff] %v463_v33 }
 0x1ae   :  { %v4424_v37 = vpop.eup %4423 }
 0x1af   :  { %v4426_v39 = vpop.eup %4425  ;;  %v513_v30 = vmul.f32 %v4424_v37, %v4422_v36 }
 0x1b0   :  { %v512_v40 = vmul.f32 0.0, %v4426_v39 }
 0x1b1   :  { %v4428_v31 = vpop.eup %4427 }
 0x1b2   :  { %v514_v41 = vadd.f32 %v513_v30, %v512_v40  }
 0x1b4   :  { %4429 = vtanh.f32 %v514_v41 }
 0x1be   :  { %v4430_v42 = vpop.eup %4429 }
 0x1bf   :  { %v516_v43 = vmul.f32 %v4430_v42, %v4428_v31  }
 0x1c0 LB: > { %v536_v32 = vld [vmem:[#allocation7 + $0x8] sm:$0xff]  ;;  %v535_v44 = vld [vmem:[#allocation7] sm:$0xff]  ;;  %v4791_v49 = vmov 0.0   ;;  %v538_v61 = vld [vmem:[#allocation7 + $0x18] sm:$0xff]  ;;  %s3431_s30 = sshll.u32 %s4763_s21, 3  ;;  %s522_s21 = sadd.s32 1, %s4763_s21   ;;  %s4763_s21 = sphi %s5149_s21, %s522_s21   ;;  %v4759_v43 = vphi %v516_v43, %v5659_v43   ;;  %v4755_v41 = vphi %v514_v41, %v766_v41  }
 0x1c1   : > { %v540_v34 = vld [vmem:[#allocation7 + $0x28] sm:$0xff]  ;;  %v539_v46 = vld [vmem:[#allocation7 + $0x20] sm:$0xff]  ;;  %663 = vmatprep.mubr.f32.mxu0 %v4791_v49  ;;  %734 = vmatprep.mubr.f32.mxu1 %v4791_v49  ;;  %v542_v62 = vld [vmem:[#allocation7 + $0x38] sm:$0xff]  ;;  %s526_s7 = sshra.s32 %s3431_s30, 3  ;;  %p519_p2 = scmp.ge.s32.totalorder %s522_s21, 6  }
 0x1c2   : > { %v3921_v45 = vpack.c.bf16 %v540_v34, %v536_v32  ;;  %v544_v47 = vld [vmem:[#allocation7 + $0x48] sm:$0xff]  ;;  %v3923_v50 = vpack.c.bf16 %v539_v46, %v535_v44  ;;  %v543_v52 = vld [vmem:[#allocation7 + $0x40] sm:$0xff]  ;;  %v3953_v1 = vpack.c.bf16 %v542_v62, %v538_v61  ;;  %v537_v2 = vld [vmem:[#allocation7 + $0x10] sm:$0xff]  ;;  %s3449_s12 = sshll.u32 %s526_s7, 5  ;;  %s5660_s1 = sld [smem:[#allocation31_spill]] (%p519_p2)  ;;  %vm4793_vm2 = vmmov (%p519_p2), 0  }
 0x1c3   : > { %v548_v48 = vld [vmem:[#allocation7 + $0x68] sm:$0xff]  ;;  %v547_v53 = vld [vmem:[#allocation7 + $0x60] sm:$0xff]  ;;  %v541_v3 = vld [vmem:[#allocation7 + $0x30] sm:$0xff]  ;;  %s530_s23 = scalar_lea.vmem [#allocation2], %s3449_s12  ;;  %s5661_s19 = sld [smem:[#allocation27_spill]] (%p519_p2)  ;;  %vm1204_vm3 = vcmask (%p519_p2), 27648  }
 0x1c4   : > { %v3925_v51 = vpack.c.bf16 %v548_v48, %v544_v47  ;;  %v552_v54 = vld [vmem:[#allocation7 + $0x88] sm:$0xff]  ;;  %3922 = vmatprep.subr.bf16.mxu0 %v3921_v45  ;;  %v3927_v56 = vpack.c.bf16 %v547_v53, %v543_v52  ;;  %v551_v57 = vld [vmem:[#allocation7 + $0x80] sm:$0xff]  ;;  %v3955_v4 = vpack.c.bf16 %v541_v3, %v537_v2  ;;  %3954 = vmatprep.subr.bf16.mxu1 %v3953_v1  ;;  %v546_v6 = vld [vmem:[#allocation7 + $0x58] sm:$0xff]  ;;  %s5662_s16 = sld [smem:[#allocation32_spill]] (%p519_p2)  ;;  %vm2255_vm4 = vcmask (%p519_p2), 0  }
 0x1c5   : > { %v556_v55 = vld [vmem:[#allocation7 + $0xa8] sm:$0xff]  ;;  %3924 = vmatpush1.bf16.msra.mxu0 %v3923_v50  ;;  %v555_v58 = vld [vmem:[#allocation7 + $0xa0] sm:$0xff]  ;;  %v550_v7 = vld [vmem:[#allocation7 + $0x78] sm:$0xff] }
 0x1c6   : > { %3926 = vmatprep.subr.bf16.mxu0 %v3925_v51  ;;  %v3929_v59 = vpack.c.bf16 %v556_v55, %v552_v54  ;;  %v560_v60 = vld [vmem:[#allocation7 + $0xc8] sm:$0xff]  ;;  %v3931_v5 = vpack.c.bf16 %v555_v58, %v551_v57  ;;  %v545_v8 = vld [vmem:[#allocation7 + $0x50] sm:$0xff]  ;;  %v559_v10 = vld [vmem:[#allocation7 + $0xc0] sm:$0xff]  ;;  %3956 = vmatpush1.bf16.msra.mxu1 %v3955_v4  ;;  %v3957_v12 = vpack.c.bf16 %v550_v7, %v546_v6 }
 0x1c7   : > { %v564_v63 = vld [vmem:[#allocation7 + $0xe8] sm:$0xff]  ;;  %v563_v11 = vld [vmem:[#allocation7 + $0xe0] sm:$0xff]  ;;  %v549_v13 = vld [vmem:[#allocation7 + $0x70] sm:$0xff] }
 0x1c8   : > { %v3933_v9 = vpack.c.bf16 %v564_v63, %v560_v60  ;;  %v568_v14 = vld [vmem:[#allocation7 + $0x108] sm:$0xff]  ;;  %v3959_v16 = vpack.c.bf16 %v549_v13, %v545_v8  ;;  %v554_v17 = vld [vmem:[#allocation7 + $0x98] sm:$0xff]  ;;  %3958 = vmatprep.subr.bf16.mxu1 %v3957_v12  ;;  %v553_v19 = vld [vmem:[#allocation7 + $0x90] sm:$0xff]  ;;  %v3935_v21 = vpack.c.bf16 %v563_v11, %v559_v10 }
 0x1c9   : > { %3928 = vmatpush1.bf16.msra.mxu0 %v3927_v56  ;;  %v572_v15 = vld [vmem:[#allocation7 + $0x128] sm:$0xff]  ;;  %v558_v18 = vld [vmem:[#allocation7 + $0xb8] sm:$0xff]  ;;  %v557_v20 = vld [vmem:[#allocation7 + $0xb0] sm:$0xff] }
 0x1ca   : > { %3930 = vmatprep.subr.bf16.mxu0 %v3929_v59  ;;  %v567_v22 = vld [vmem:[#allocation7 + $0x100] sm:$0xff]  ;;  %v3961_v26 = vpack.c.bf16 %v558_v18, %v554_v17  ;;  %v3937_v33 = vpack.c.bf16 %v572_v15, %v568_v14  ;;  %3960 = vmatpush1.bf16.msra.mxu1 %v3959_v16  ;;  %v576_v35 = vld [vmem:[#allocation7 + $0x148] sm:$0xff]  ;;  %v3963_v36 = vpack.c.bf16 %v557_v20, %v553_v19  ;;  %v562_v37 = vld [vmem:[#allocation7 + $0xd8] sm:$0xff] }
 0x1cb   : > { %v571_v23 = vld [vmem:[#allocation7 + $0x120] sm:$0xff]  ;;  %v566_v38 = vld [vmem:[#allocation7 + $0xf8] sm:$0xff]  ;;  %v580_v39 = vld [vmem:[#allocation7 + $0x168] sm:$0xff] }
 0x1cc   : > { %3962 = vmatprep.subr.bf16.mxu1 %v3961_v26  ;;  %v3965_v30 = vpack.c.bf16 %v566_v38, %v562_v37  ;;  %v561_v40 = vld [vmem:[#allocation7 + $0xd0] sm:$0xff]  ;;  %v3939_v42 = vpack.c.bf16 %v571_v23, %v567_v22  ;;  %v570_v32 = vld [vmem:[#allocation7 + $0x118] sm:$0xff]  ;;  %v3941_v44 = vpack.c.bf16 %v580_v39, %v576_v35  ;;  %v575_v45 = vld [vmem:[#allocation7 + $0x140] sm:$0xff] }
 0x1cd   : > { %3932 = vmatpush1.bf16.msra.mxu0 %v3931_v5  ;;  %v565_v31 = vld [vmem:[#allocation7 + $0xf0] sm:$0xff]  ;;  %v574_v34 = vld [vmem:[#allocation7 + $0x138] sm:$0xff]  ;;  %v579_v46 = vld [vmem:[#allocation7 + $0x160] sm:$0xff] }
 0x1ce   : > { %3934 = vmatprep.subr.bf16.mxu0 %v3933_v9  ;;  %3964 = vmatpush1.bf16.msra.mxu1 %v3963_v36  ;;  %v584_v47 = vld [vmem:[#allocation7 + $0x188] sm:$0xff]  ;;  %v3967_v48 = vpack.c.bf16 %v565_v31, %v561_v40  ;;  %v3969_v50 = vpack.c.bf16 %v574_v34, %v570_v32  ;;  %v569_v51 = vld [vmem:[#allocation7 + $0x110] sm:$0xff]  ;;  %v578_v53 = vld [vmem:[#allocation7 + $0x158] sm:$0xff]  ;;  %v3943_v55 = vpack.c.bf16 %v579_v46, %v575_v45 }
 0x1cf   : > { %v588_v49 = vld [vmem:[#allocation7 + $0x1a8] sm:$0xff]  ;;  %3966 = vmatprep.subr.bf16.mxu1 %v3965_v30  ;;  %v573_v52 = vld [vmem:[#allocation7 + $0x130] sm:$0xff]  ;;  %v582_v54 = vld [vmem:[#allocation7 + $0x178] sm:$0xff] }
 0x1d0   : > { %v3945_v56 = vpack.c.bf16 %v588_v49, %v584_v47  ;;  %v583_v57 = vld [vmem:[#allocation7 + $0x180] sm:$0xff]  ;;  %v592_v59 = vld [vmem:[#allocation7 + $0x1c8] sm:$0xff]  ;;  %v3971_v60 = vpack.c.bf16 %v573_v52, %v569_v51  ;;  %v3973_v62 = vpack.c.bf16 %v582_v54, %v578_v53  ;;  %v577_v63 = vld [vmem:[#allocation7 + $0x150] sm:$0xff] }
 0x1d1   : > { %3936 = vmatpush1.bf16.msra.mxu0 %v3935_v21  ;;  %v587_v58 = vld [vmem:[#allocation7 + $0x1a0] sm:$0xff]  ;;  %v596_v61 = vld [vmem:[#allocation7 + $0x1e8] sm:$0xff]  ;;  %v581_v1 = vld [vmem:[#allocation7 + $0x170] sm:$0xff] }
 0x1d2   : > { %3938 = vmatprep.subr.bf16.mxu0 %v3937_v33  ;;  %3968 = vmatpush1.bf16.msra.mxu1 %v3967_v48  ;;  %v586_v2 = vld [vmem:[#allocation7 + $0x198] sm:$0xff]  ;;  %v3947_v4 = vpack.c.bf16 %v587_v58, %v583_v57  ;;  %v3949_v5 = vpack.c.bf16 %v596_v61, %v592_v59  ;;  %v591_v6 = vld [vmem:[#allocation7 + $0x1c0] sm:$0xff]  ;;  %v3975_v8 = vpack.c.bf16 %v581_v1, %v577_v63  ;;  %v585_v10 = vld [vmem:[#allocation7 + $0x190] sm:$0xff]  ;;  %v4792_v61 = vmov (%p519_p2), 0.0|0.0  }
 0x1d3   : > { %3970 = vmatprep.subr.bf16.mxu1 %v3969_v50  ;;  %v590_v3 = vld [vmem:[#allocation7 + $0x1b8] sm:$0xff]  ;;  %v595_v7 = vld [vmem:[#allocation7 + $0x1e0] sm:$0xff]  ;;  %v589_v11 = vld [vmem:[#allocation7 + $0x1b0] sm:$0xff] }
 0x1d4   : > { %v3977_v9 = vpack.c.bf16 %v590_v3, %v586_v2  ;;  %v594_v12 = vld [vmem:[#allocation7 + $0x1d8] sm:$0xff]  ;;  %v3951_v14 = vpack.c.bf16 %v595_v7, %v591_v6  ;;  %v3979_v15 = vpack.c.bf16 %v589_v11, %v585_v10  ;;  %v593_v17 = vld [vmem:[#allocation7 + $0x1d0] sm:$0xff]  ;;  %v534_v37 = vld [vmem:[%s530_s23 + $0x18] sm:$0xff] }
 0x1d5   : > { %3940 = vmatpush1.bf16.msra.mxu0 %v3939_v42  ;;  %v598_v13 = vld [vmem:[#allocation7 + $0x1f8] sm:$0xff]  ;;  %v597_v18 = vld [vmem:[#allocation7 + $0x1f0] sm:$0xff]  ;;  %v533_v40 = vld [vmem:[%s530_s23 + $0x10] sm:$0xff] }
 0x1d6   : > { %3942 = vmatprep.subr.bf16.mxu0 %v3941_v44  ;;  %3972 = vmatpush1.bf16.msra.mxu1 %v3971_v60  ;;  %v3981_v16 = vpack.c.bf16 %v598_v13, %v594_v12  ;;  %v3983_v19 = vpack.c.bf16 %v597_v18, %v593_v17  ;;  %v531_v20 = vld [vmem:[%s530_s23] sm:$0xff]  ;;  %v532_v21 = vld [vmem:[%s530_s23 + $0x8] sm:$0xff]  ;;  %v772_v59 = vld [vmem:[%s5660_s1 + $0x18] sm:$0xff] (%p519_p2) }
 0x1d7   : > { %3974 = vmatprep.subr.bf16.mxu1 %v3973_v62  ;;  %v769_v57 = vld [vmem:[%s5660_s1] sm:$0xff] (%p519_p2)  ;;  %v779_v60 = vld [vmem:[%s5660_s1 + $0x50] sm:$0xff] (%p519_p2)  ;;  %v778_v2 = vld [vmem:[%s5660_s1 + $0x48] sm:$0xff] (%p519_p2) }
 0x1d8   :  { %v3987_v62 = vpack.c.bf16 (%p519_p2), %v772_v59, %v769_v57  ;;  %v775_v1 = vld [vmem:[%s5660_s1 + $0x30] sm:$0xff] (%p519_p2)  ;;  %v782_v3 = vld [vmem:[%s5660_s1 + $0x68] sm:$0xff] (%p519_p2)  ;;  %v784_v10 = vld [vmem:[%s5660_s1 + $0x78] sm:$0xff] (%p519_p2) }
 0x1d9   : > { %3944 = vmatpush1.bf16.msra.mxu0 %v3943_v55  ;;  %v770_v55 = vld [vmem:[%s5660_s1 + $0x8] sm:$0xff] (%p519_p2)  ;;  %v771_v6 = vld [vmem:[%s5660_s1 + $0x10] sm:$0xff] (%p519_p2)  ;;  %v788_v12 = vld [vmem:[%s5660_s1 + $0x98] sm:$0xff] (%p519_p2) }
 0x1da   : > { %3946 = vmatprep.subr.bf16.mxu0 %v3945_v56  ;;  %3976 = vmatpush1.bf16.msra.mxu1 %v3975_v8  ;;  %v773_v56 = vld [vmem:[%s5660_s1 + $0x20] sm:$0xff] (%p519_p2)  ;;  %v774_v7 = vld [vmem:[%s5660_s1 + $0x28] sm:$0xff] (%p519_p2)  ;;  %v791_v13 = vld [vmem:[%s5660_s1 + $0xb0] sm:$0xff] (%p519_p2) }
 0x1db   : > { %3978 = vmatprep.subr.bf16.mxu1 %v3977_v9  ;;  %v3985_v58 = vpack.c.bf16 (%p519_p2), %v773_v56, %v770_v55  ;;  %v781_v9 = vld [vmem:[%s5660_s1 + $0x60] sm:$0xff] (%p519_p2)  ;;  %v4018_v11 = vpack.c.bf16 (%p519_p2), %v774_v7, %v771_v6  ;;  %v783_v18 = vld [vmem:[%s5660_s1 + $0x70] sm:$0xff] (%p519_p2)  ;;  %v808_v56 = vld [vmem:[%s5660_s1 + $0x138] sm:$0xff] (%p519_p2) }
 0x1dc   :  { %v3995_v17 = vpack.c.bf16 (%p519_p2), %v784_v10, %v781_v9  ;;  %v805_v55 = vld [vmem:[%s5660_s1 + $0x120] sm:$0xff] (%p519_p2)  ;;  %v812_v57 = vld [vmem:[%s5660_s1 + $0x158] sm:$0xff] (%p519_p2) }
 0x1dd   : > { %3948 = vmatpush1.bf16.msra.mxu0 %v3947_v4  ;;  %v785_v4 = vld [vmem:[%s5660_s1 + $0x80] sm:$0xff] (%p519_p2)  ;;  %v816_v6 = vld [vmem:[%s5660_s1 + $0x178] sm:$0xff] (%p519_p2) }
 0x1de   : > { %3950 = vmatprep.subr.bf16.mxu0 %v3949_v5  ;;  %3980 = vmatpush1.bf16.msra.mxu1 %v3979_v15  ;;  %v3991_v5 = vpack.c.bf16 (%p519_p2), %v778_v2, %v775_v1  ;;  %v3993_v8 = vpack.c.bf16 (%p519_p2), %v785_v4, %v782_v3  ;;  %v780_v15 = vld [vmem:[%s5660_s1 + $0x58] sm:$0xff] (%p519_p2)  ;;  %v811_v1 = vld [vmem:[%s5660_s1 + $0x150] sm:$0xff] (%p519_p2)  ;;  %v814_v2 = vld [vmem:[%s5660_s1 + $0x168] sm:$0xff] (%p519_p2) }
 0x1df   : > { %3982 = vmatprep.subr.bf16.mxu1 %v3981_v16  ;;  %v4015_v4 = vpack.c.bf16 (%p519_p2), %v814_v2, %v811_v1  ;;  %v2282_v1 = vld [vmem:[#allocation9 + $0xc8] sm:$0xff] (%p519_p2) }
 0x1e1   : > { %3952 = vmatpush1.bf16.msra.mxu0 %v3951_v14  ;;  %v777_v14 = vld [vmem:[%s5660_s1 + $0x40] sm:$0xff] (%p519_p2) }
 0x1e2   : > { %3984 = vmatpush1.bf16.msra.mxu1 %v3983_v19  ;;  %3986 = vmatprep.subr.bf16.mxu0 (%p519_p2), %v3985_v58  ;;  %v4021_v16 = vpack.c.bf16 (%p519_p2), %v780_v15, %v777_v14  ;;  %v786_v19 = vld [vmem:[%s5660_s1 + $0x88] sm:$0xff] (%p519_p2)  ;;  %v815_v58 = vld [vmem:[%s5660_s1 + $0x170] sm:$0xff] (%p519_p2) }
 0x1e3   :  { %4017 = vmatprep.subr.bf16.mxu1 (%p519_p2), %v4792_v61 }
 0x1e4   : > { %664 = vmatmul.mubr.f32.vlgmr.msra.gmra.mrb[0].mxu0 %v4759_v43 }
 0x1e5   : > { %735 = vmatmul.mubr.f32.vlgmr.msra.gmra.mrb[0].mxu1 %v4759_v43  ;;  %898 = vmatprep.mubr.f32.mxu0 (%p519_p2), %v4790_v0 }
 0x1e6   :  { %3654 = vmatprep.mubr.msk.f32.mxu1 (%p519_p2), %vm4793_vm2, %v4790_v0  ;;  %3988 = vmatpush1.bf16.msra.mxu0 (%p519_p2), %v3987_v62  ;;  %v810_v62 = vld [vmem:[%s5660_s1 + $0x148] sm:$0xff] (%p519_p2) }
 0x1e7   :  { %4019 = vmatpush3.bf16.msra.mxu1 (%p519_p2), %v4018_v11 }
 0x1e8   :  { %4020 = vmatprep.subr.bf16.mxu1 (%p519_p2), %v4792_v61 }
 0x1eb   :  { %4022 = vmatpush3.bf16.msra.mxu1 (%p519_p2), %v4021_v16  ;;  %v5357_v16 = vld [vmem:[%s5661_s19 + $0x10] sm:$0xff] (%p519_p2) }
 0x1ec   :  { %4023 = vmatprep.subr.bf16.mxu1 (%p519_p2), %v4792_v61 }
 0x2b7   : > { %v665_v22 = vpop.f32.mrb[0].mxu0 }
 0x2b8   : > { %v741_v23 = vadd.f32 %v665_v22, %v531_v20  ;;  %v667_v26 = vpop.f32.mrb[1].mxu0  ;;  %v736_v38 = vpop.f32.mrb[0].mxu1  ;;  %v3997_v20 = vpack.c.bf16 (%p519_p2), %v791_v13, %v788_v12  ;;  %v790_v22 = vld [vmem:[%s5660_s1 + $0xa8] sm:$0xff] (%p519_p2) }
 0x2b9   : > { %v742_v33 = vadd.f32 %v667_v26, %v532_v21  ;;  %v738_v39 = vpop.f32.mrb[1].mxu1  ;;  %v743_v31 = vadd.f32 %v736_v38, %v533_v40  ;;  %v787_v21 = vld [vmem:[%s5660_s1 + $0x90] sm:$0xff] (%p519_p2)  ;;  %v797_v26 = vld [vmem:[%s5660_s1 + $0xe0] sm:$0xff] (%p519_p2)  ;;  %v800_v40 = vld [vmem:[%s5660_s1 + $0xf8] sm:$0xff] (%p519_p2) }
 0x2ba   : > { %v3434_v35 = vmul.f32 -1.442695, %v741_v23  ;;  %v744_v30 = vadd.f32 %v738_v39, %v534_v37  ;;  %v794_v23 = vld [vmem:[%s5660_s1 + $0xc8] sm:$0xff] (%p519_p2)  ;;  %v792_v37 = vld [vmem:[%s5660_s1 + $0xb8] sm:$0xff] (%p519_p2)  ;;  %v793_v39 = vld [vmem:[%s5660_s1 + $0xc0] sm:$0xff] (%p519_p2) }
 0x2bb   : > { %v3435_v36 = vmul.f32 -1.442695, %v742_v33  ;;  %v4024_v33 = vpack.c.bf16 (%p519_p2), %v786_v19, %v783_v18  ;;  %v4001_v38 = vpack.c.bf16 (%p519_p2), %v797_v26, %v794_v23  ;;  %v5364_v18 = vld [vmem:[%s5661_s19] sm:$0xff] (%p519_p2) }
 0x2bc   : > { %4431 = vpow2.f32 %v3434_v35  ;;  %v3436_v43 = vmul.f32 -1.442695, %v744_v30  ;;  %v3999_v35 = vpack.c.bf16 (%p519_p2), %v790_v22, %v787_v21  ;;  %v796_v30 = vld [vmem:[%s5660_s1 + $0xd8] sm:$0xff] (%p519_p2)  ;;  %v5375_v22 = vmul.f32 (%p519_p2), %v5357_v16, %v5357_v16 }
 0x2bd   : > { %4433 = vpow2.f32 %v3435_v36  ;;  %v789_v36 = vld [vmem:[%s5660_s1 + $0xa0] sm:$0xff] (%p519_p2)  ;;  %4025 = vmatpush3.bf16.msra.mxu1 (%p519_p2), %v4024_v33 }
 0x2be   : > { %4435 = vpow2.f32 %v3436_v43  ;;  %4026 = vmatprep.subr.bf16.mxu1 (%p519_p2), %v4792_v61 }
 0x2bf   : > { %4437 = vtanh.f32 %v743_v31  ;;  %v4027_v31 = vpack.c.bf16 (%p519_p2), %v792_v37, %v789_v36  ;;  %v2273_v37 = vld [vmem:[#allocation9 + $0x80] sm:$0xff] (%p519_p2) }
 0x2c1   :  { %4028 = vmatpush3.bf16.msra.mxu1 (%p519_p2), %v4027_v31 }
 0x2c2   :  { %4029 = vmatprep.subr.bf16.mxu1 (%p519_p2), %v4792_v61 }
 0x2c6   : > { %v4432_v42 = vpop.eup %4431 }
 0x2c7   : > { %v4434_v32 = vpop.eup %4433  ;;  %v748_v34 = vadd.f32 1.0, %v4432_v42  ;;  %v4003_v42 = vpack.c.bf16 (%p519_p2), %v796_v30, %v793_v39  ;;  %v4794_v39 = vmov (%p519_p2), 1.0  }
 0x2c8   : > { %v754_v44 = vadd.f32 1.0, %v4434_v32  ;;  %v4436_v45 = vpop.eup %4435  ;;  %v795_v32 = vld [vmem:[%s5660_s1 + $0xd0] sm:$0xff] (%p519_p2) }
 0x2c9   : > { %4439 = vrcp.f32 %v748_v34  ;;  %v4438_v46 = vpop.eup %4437  ;;  %v761_v48 = vadd.f32 1.0, %v4436_v45  ;;  %v798_v34 = vld [vmem:[%s5660_s1 + $0xe8] sm:$0xff] (%p519_p2)  ;;  %v799_v45 = vld [vmem:[%s5660_s1 + $0xf0] sm:$0xff] (%p519_p2) }
 0x2ca   : > { %4441 = vrcp.f32 %v754_v44 }
 0x2cb   : > { %4443 = vrcp.f32 %v761_v48  ;;  %v809_v48 = vld [vmem:[%s5660_s1 + $0x140] sm:$0xff] (%p519_p2) }
 0x2d3   : > { %v4440_v47 = vpop.eup %4439 }
 0x2d4   : > { %v4442_v49 = vpop.eup %4441  ;;  %v765_v50 = vmul.f32 %v4440_v47, %v4438_v46  ;;  %v802_v46 = vld [vmem:[%s5660_s1 + $0x108] sm:$0xff] (%p519_p2) }
 0x2d5   : > { %v764_v51 = vmul.f32 %v4755_v41, %v4442_v49  ;;  %v4444_v52 = vpop.eup %4443  ;;  %v806_v47 = vld [vmem:[%s5660_s1 + $0x128] sm:$0xff] (%p519_p2)  ;;  %v4030_v49 = vpack.c.bf16 (%p519_p2), %v798_v34, %v795_v32 }
 0x2d6   :  { %v2276_v32 = vld [vmem:[#allocation9 + $0x98] sm:$0xff] (%p519_p2) }
 0x2d7   : > { %v766_v41 = vadd.f32 %v765_v50, %v764_v51   ;;  %v4007_v50 = vpack.c.bf16 (%p519_p2), %v802_v46, %v799_v45  ;;  %v801_v51 = vld [vmem:[%s5660_s1 + $0x100] sm:$0xff] (%p519_p2)  ;;  %4031 = vmatpush3.bf16.msra.mxu1 (%p519_p2), %v4030_v49  ;;  %v2260_v46 = vld [vmem:[#allocation9 + $0x18] sm:$0xff] (%p519_p2)  ;;  %v2278_v49 = vld [vmem:[#allocation9 + $0xa8] sm:$0xff] (%p519_p2) }
 0x2d8   :  { %4032 = vmatprep.subr.bf16.mxu1 (%p519_p2), %v4792_v61  ;;  %v2259_v45 = vld [vmem:[#allocation9 + $0x10] sm:$0xff] (%p519_p2) }
 0x2d9   : > { %4445 = vtanh.f32 %v766_v41  ;;  %v776_v41 = vld [vmem:[%s5660_s1 + $0x38] sm:$0xff] (%p519_p2) }
 0x2da   :  { %v3989_v63 = vpack.c.bf16 (%p519_p2), %v779_v60, %v776_v41  ;;  %v4011_v41 = vpack.c.bf16 (%p519_p2), %v808_v56, %v805_v55  ;;  %v807_v60 = vld [vmem:[%s5660_s1 + $0x130] sm:$0xff] (%p519_p2)  ;;  %v2279_v56 = vld [vmem:[#allocation9 + $0xb0] sm:$0xff] (%p519_p2) }
 0x2db   :  { %v4036_v3 = vpack.c.bf16 (%p519_p2), %v810_v62, %v807_v60  ;;  %v2264_v60 = vld [vmem:[#allocation9 + $0x38] sm:$0xff] (%p519_p2) }
 0x2dc   :  { %3990 = vmatprep.subr.bf16.mxu0 (%p519_p2), %v3989_v63  ;;  %v4013_v63 = vpack.c.bf16 (%p519_p2), %v815_v58, %v812_v57  ;;  %v2280_v57 = vld [vmem:[#allocation9 + $0xb8] sm:$0xff] (%p519_p2) }
 0x2dd   :  { %3992 = vmatpush1.bf16.msra.mxu0 (%p519_p2), %v3991_v5  ;;  %v813_v5 = vld [vmem:[%s5660_s1 + $0x160] sm:$0xff] (%p519_p2)  ;;  %v4053_v62 = vpack.c.bf16 (%p519_p2), %v2280_v57, %v2279_v56 }
 0x2de   :  { %3994 = vmatprep.subr.bf16.mxu0 (%p519_p2), %v3993_v8  ;;  %v4039_v7 = vpack.c.bf16 (%p519_p2), %v816_v6, %v813_v5  ;;  %v976_v8 = vld [vmem:[%s5661_s19 + $0x8] sm:$0xff] (%p519_p2)  ;;  %v2266_v5 = vld [vmem:[#allocation9 + $0x48] sm:$0xff] (%p519_p2) }
 0x2df   :  { %v5340_v9 = vmul.f32 (%p519_p2), %v976_v8, %v976_v8 }
 0x2e1   :  { %521 = sbr.rel (!%p519_p2) target bundleno = 448 (0x1c0), region = 168  ;;  %3996 = vmatpush1.bf16.msra.mxu0 (%p519_p2), %v3995_v17  ;;  %v1409_v10 = vsel (%p519_p2), %vm250_vm0, %v5340_v9, 0.0 }
 0x2e2   :  { %3998 = vmatprep.subr.bf16.mxu0 (%p519_p2), %v3997_v20  ;;  %1410 = vadd.xlane.f32.xlu1 (%p519_p2), %v1409_v10 }
 0x2e3   : > { %v4446_v53 = vpop.eup %4445 }
 0x2e4   : > { %v5164_v43 = vmul.f32 %v4446_v53, %v4444_v52   ;;  %v804_v52 = vld [vmem:[%s5660_s1 + $0x118] sm:$0xff] (%p519_p2)  ;;  %v4009_v53 = vpack.c.bf16 (%p519_p2), %v809_v48, %v806_v47  ;;  %v2277_v48 = vld [vmem:[#allocation9 + $0xa0] sm:$0xff] (%p519_p2) }
 0x2e5   :  { %4000 = vmatpush1.bf16.msra.mxu0 (%p519_p2), %v3999_v35  ;;  %v4033_v59 = vpack.c.bf16 (%p519_p2), %v804_v52, %v801_v51  ;;  %v982_v35 = vmul.f32 (%p519_p2), %v5364_v18, %v5364_v18  ;;  %v2261_v52 = vld [vmem:[#allocation9 + $0x20] sm:$0xff] (%p519_p2)  ;;  %v4049_v55 = vpack.c.bf16 (%p519_p2), %v2278_v49, %v2277_v48  ;;  %v2300_v48 = vld [vmem:[#allocation9 + $0x158] sm:$0xff] (%p519_p2) }
 0x2e6   : > { %v5658_v54 = vmov %v5164_v43  ;;  %4002 = vmatprep.subr.bf16.mxu0 (%p519_p2), %v4001_v38  ;;  %v2274_v38 = vld [vmem:[#allocation9 + $0x88] sm:$0xff] (%p519_p2) }
 0x2e7   : > { %v5659_v43 = vmov %v5658_v54  ;;  %4034 = vmatpush3.bf16.msra.mxu1 (%p519_p2), %v4033_v59  ;;  %v4041_v31 = vpack.c.bf16 (%p519_p2), %v2274_v38, %v2273_v37  ;;  %v983_v59 = vsel (%p519_p2), %vm250_vm0, %v982_v35, 0.0  ;;  %v2290_v37 = vld [vmem:[#allocation9 + $0x108] sm:$0xff] (%p519_p2) }
 0x2e8   :  { %v803_v43 = vld [vmem:[%s5660_s1 + $0x110] sm:$0xff]  ;;  %4035 = vmatprep.subr.bf16.mxu1 %v4792_v61 }
 0x2e9   :  { %v4005_v44 = vpack.c.bf16 %v803_v43, %v800_v40  ;;  %4004 = vmatpush1.bf16.msra.mxu0 %v4003_v42  ;;  %v2257_v40 = vld [vmem:[#allocation9] sm:$0xff]  ;;  %v2258_v43 = vld [vmem:[#allocation9 + $0x8] sm:$0xff]  ;;  %v2275_v42 = vld [vmem:[#allocation9 + $0x90] sm:$0xff] }
 0x2ea   :  { %v4043_v34 = vpack.c.bf16 %v2258_v43, %v2257_v40  ;;  %v4045_v47 = vpack.c.bf16 %v2276_v32, %v2275_v42  ;;  %v2292_v40 = vld [vmem:[#allocation9 + $0x118] sm:$0xff]  ;;  %v2294_v42 = vld [vmem:[#allocation9 + $0x128] sm:$0xff] }
 0x2eb   :  { %4006 = vmatprep.subr.bf16.mxu0 %v4005_v44  ;;  %4037 = vmatpush3.bf16.msra.mxu1 %v4036_v3  ;;  %v1834_v3 = vsel %vm250_vm0, %v5375_v22, 0.0 }
 0x2ec   :  { %4038 = vmatprep.subr.bf16.mxu1 %v4792_v61 }
 0x2ed   :  { %4008 = vmatpush1.bf16.msra.mxu0 %v4007_v50  ;;  %v4047_v50 = vpack.c.bf16 %v2260_v46, %v2259_v45  ;;  %v2298_v45 = vld [vmem:[#allocation9 + $0x148] sm:$0xff] }
 0x2ee   :  { %4010 = vmatprep.subr.bf16.mxu0 %v4009_v53  ;;  %v2262_v53 = vld [vmem:[#allocation9 + $0x28] sm:$0xff] }
 0x2ef   :  { %4040 = vmatpush3.bf16.msra.mxu1 %v4039_v7  ;;  %v4051_v58 = vpack.c.bf16 %v2262_v53, %v2261_v52  ;;  %v2283_v7 = vld [vmem:[#allocation9 + $0xd0] sm:$0xff] }
 0x2f0   :  { %3692 = vmatprep.subr.mxu1 %v4790_v0  ;;  %v2303_v53 = vld [vmem:[#allocation9 + $0x170] sm:$0xff] }
 0x2f1   :  { %4012 = vmatpush1.bf16.msra.mxu0 %v4011_v41  ;;  %v2263_v41 = vld [vmem:[#allocation9 + $0x30] sm:$0xff] }
 0x2f2   :  { %4014 = vmatprep.subr.bf16.mxu0 %v4013_v63  ;;  %3655 = vmatmul.mubr.f32.vlgmr.msra.gmra.mrb[0].mxu1 %v5658_v54  ;;  %v2281_v63 = vld [vmem:[#allocation9 + $0xc0] sm:$0xff]  ;;  %v4055_v2 = vpack.c.bf16 %v2264_v60, %v2263_v41  ;;  %v2454_v41 = vld [vmem:[#allocation10 + $0x8] sm:$0xff] }
 0x2f3   :  { %3694 = vmatprep.mubr.msk.f32.mxu1 %vm4793_vm2, %v4790_v0  ;;  %v4057_v6 = vpack.c.bf16 %v2282_v1, %v2281_v63  ;;  %v2456_v63 = vld [vmem:[#allocation10 + $0x18] sm:$0xff] }
 0x2f5   :  { %4016 = vmatpush1.bf16.msra.mxu0 %v4015_v4  ;;  %v2265_v4 = vld [vmem:[#allocation9 + $0x40] sm:$0xff] }
 0x2f6   :  { %3657 = vmatprep.subr.mxu0 %v4790_v0  ;;  %v4059_v10 = vpack.c.bf16 %v2266_v5, %v2265_v4  ;;  %v2459_v4 = vld [vmem:[#allocation10 + $0x30] sm:$0xff]  ;;  %v2460_v5 = vld [vmem:[#allocation10 + $0x38] sm:$0xff] }
 0x2f8   :  { %899 = vmatmul.mubr.f32.vlgmr.msra.gmra.mrb[0].mxu0 %v5658_v54  ;;  %3693 = vmatpush3.xpose.msra.mxu1 %v976_v8  ;;  %v817_v54 = vld [vmem:[%s5662_s16] sm:$0x7] }
 0x2f9   :  { %3659 = vmatprep.mubr.msk.f32.mxu0 %vm4793_vm2, %v4790_v0  ;;  %3702 = vmatprep.subr.mxu1 %v4790_v0  ;;  %v822_v11 = vrot.slane %v817_v54, %v5096_v25  ;;  %v826_v12 = vrot.slane %v817_v54, %v5102_v27  ;;  %v830_v23 = vrot.slane %v817_v54, %v5105_v28  ;;  %v2267_v54 = vld [vmem:[#allocation9 + $0x50] sm:$0xff] }
 0x2fb   :  { %3695 = vmatmul.mubr.f32.vlgmr.msra.gmra.mrb[2].mxu1 %v976_v8 }
 0x2fc   :  { %3704 = vmatprep.mubr.msk.f32.mxu1 %vm4793_vm2, %v4790_v0 }
 0x3c5   :  { %v971_v20 = vpop.f32.mrb[0].mxu1 }
 0x3c6   :  { %v3656_v26 = vpop.f32.mrb[1].mxu1  ;;  %v5387_v30 = vadd.f32 %v971_v20, %v830_v23 }
 0x3c7   :  { %v2271_v26 = vld [vmem:[#allocation9 + $0x70] sm:$0xff] }
 0x3c8   :  { %v5400_v44 = vmul.f32 %v5387_v30, %v5387_v30 }
 0x3ca   :  { %v1830_v51 = vsel %vm250_vm0, %v5400_v44, 0.0 }
 0x3cb   :  { %v900_v13 = vpop.f32.mrb[0].mxu0 }
 0x3cc   :  { %v5352_v14 = vadd.f32 %v900_v13, %v822_v11  ;;  %v902_v15 = vpop.f32.mrb[1].mxu0  ;;  %v2268_v11 = vld [vmem:[#allocation9 + $0x58] sm:$0xff]  ;;  %v2285_v13 = vld [vmem:[#allocation9 + $0xe0] sm:$0xff] }
 0x3cd   :  { %v5359_v17 = vadd.f32 %v902_v15, %v826_v12  ;;  %v2286_v15 = vld [vmem:[#allocation9 + $0xe8] sm:$0xff] }
 0x3ce   :  { %v978_v19 = vmul.f32 %v5352_v14, %v5352_v14  ;;  %v4065_v20 = vpack.c.bf16 %v2286_v15, %v2285_v13  ;;  %v5471_v57 = vpop.f32.mrb[2].mxu1  ;;  %v2465_v13 = vld [vmem:[#allocation10 + $0x60] sm:$0xff]  ;;  %v2466_v15 = vld [vmem:[#allocation10 + $0x68] sm:$0xff] }
 0x3cf   :  { %3703 = vmatpush3.xpose.msra.mxu1 %v5359_v17  ;;  %v5371_v21 = vmul.f32 %v5359_v17, %v5359_v17 }
 0x3d0   :  { %3658 = vmatpush3.xpose.msra.mxu0 %v978_v19  ;;  %v979_v33 = vsel %vm250_vm0, %v978_v19, 0.0  ;;  %3712 = vmatprep.subr.mxu1 %v4790_v0  ;;  %v2270_v19 = vld [vmem:[#allocation9 + $0x68] sm:$0xff] }
 0x3d1   :  { %980 = vadd.xlane.f32.xlu0 %v979_v33  ;;  %v1405_v36 = vsel %vm250_vm0, %v5371_v21, 0.0  ;;  %3662 = vmatprep.subr.mxu0 %v4790_v0  ;;  %v2272_v33 = vld [vmem:[#allocation9 + $0x78] sm:$0xff] }
 0x3d2   :  { %3705 = vmatmul.mubr.f32.vlgmr.msra.gmra.mrb[4].mxu1 %v976_v8  ;;  %1406 = vadd.xlane.f32.xlu1 %v1405_v36  ;;  %v2284_v8 = vld [vmem:[#allocation9 + $0xd8] sm:$0xff]  ;;  %v4071_v36 = vpack.c.bf16 %v2272_v33, %v2271_v26 }
 0x3d3   :  { %3660 = vmatmul.mubr.f32.vlgmr.msra.gmra.mrb[2].mxu0 %v4794_v39  ;;  %3713 = vmatpush3.xpose.msra.mxu1 %v5375_v22  ;;  %v4061_v12 = vpack.c.bf16 %v2284_v8, %v2283_v7  ;;  %v2288_v22 = vld [vmem:[#allocation9 + $0xf8] sm:$0xff]  ;;  %v2461_v7 = vld [vmem:[#allocation10 + $0x40] sm:$0xff]  ;;  %v2462_v8 = vld [vmem:[#allocation10 + $0x48] sm:$0xff] }
 0x3d4   :  { %3663 = vmatpush3.xpose.msra.mxu0 %v982_v35  ;;  %3714 = vmatprep.mubr.msk.f32.mxu1 %vm4793_vm2, %v4790_v0 }
 0x3d5   :  { %3664 = vmatprep.mubr.msk.f32.mxu0 %vm4793_vm2, %v4790_v0  ;;  %3722 = vmatprep.subr.mxu1 %v4790_v0 }
 0x3d6   :  { %3715 = vmatmul.mubr.f32.vlgmr.msra.gmra.mrb[6].mxu1 %v4794_v39  ;;  %3667 = vmatprep.subr.mxu0 %v4790_v0 }
 0x3d7   :  { %3665 = vmatmul.mubr.f32.vlgmr.msra.gmra.mrb[4].mxu0 %v4794_v39  ;;  %3723 = vmatpush3.xpose.msra.mxu1 %v5387_v30 }
 0x3d8   :  { %3668 = vmatpush3.xpose.msra.mxu0 %v5364_v18  ;;  %3724 = vmatprep.mubr.msk.f32.mxu1 %vm4793_vm2, %v4790_v0 }
 0x3d9   :  { %3669 = vmatprep.mubr.msk.f32.mxu0 %vm4793_vm2, %v4790_v0  ;;  %4042 = vmatprep.subr.bf16.mxu1 %v4041_v31  ;;  %v2293_v31 = vld [vmem:[#allocation9 + $0x120] sm:$0xff] }
 0x3da   :  { %3725 = vmatmul.mubr.f32.vlgmr.msra.gmra.mrb[8].mxu1 %v5387_v30  ;;  %3672 = vmatprep.subr.mxu0 %v4790_v0  ;;  %v4080_v32 = vpack.c.bf16 %v2294_v42, %v2293_v31 }
 0x3db   :  { %3670 = vmatmul.mubr.f32.vlgmr.msra.gmra.mrb[6].mxu0 %v5364_v18  ;;  %4044 = vmatpush3.bf16.msra.mxu1 %v4043_v34  ;;  %v2295_v34 = vld [vmem:[#allocation9 + $0x130] sm:$0xff] }
 0x3dc   :  { %2376 = vmatprep.mubr.f32.mxu1 %v5359_v17  ;;  %3673 = vmatpush3.xpose.msra.mxu0 %v5352_v14 }
 0x3dd   :  { %3674 = vmatprep.mubr.msk.f32.mxu0 %vm4793_vm2, %v4790_v0  ;;  %4046 = vmatprep.subr.bf16.mxu1 %v4045_v47  ;;  %v2299_v47 = vld [vmem:[#allocation9 + $0x150] sm:$0xff] }
 0x3de   :  { %3677 = vmatprep.subr.mxu0 %v4790_v0  ;;  %1831 = vadd.xlane.f32.xlu1 %v1830_v51  ;;  %v4089_v49 = vpack.c.bf16 %v2300_v48, %v2299_v47  ;;  %v2302_v51 = vld [vmem:[#allocation9 + $0x168] sm:$0xff] }
 0x3df   :  { %3675 = vmatmul.mubr.f32.vlgmr.msra.gmra.mrb[8].mxu0 %v5352_v14  ;;  %4048 = vmatpush3.bf16.msra.mxu1 %v4047_v50  ;;  %v2301_v50 = vld [vmem:[#allocation9 + $0x160] sm:$0xff] }
 0x3e0   :  { %3678 = vmatpush3.xpose.msra.mxu0 %v5352_v14  ;;  %3679 = vmatprep.mubr.msk.f32.mxu0 %vm4793_vm2, %v4790_v0  ;;  %v4092_v52 = vpack.c.bf16 %v2302_v51, %v2301_v50 }
 0x3e1   :  { %4050 = vmatprep.subr.bf16.mxu1 %v4049_v55  ;;  %3682 = vmatprep.subr.mxu0 %v4790_v0  ;;  %v2304_v55 = vld [vmem:[#allocation9 + $0x178] sm:$0xff] }
 0x3e2   :  { %984 = vadd.xlane.f32.xlu0 %v983_v59  ;;  %v4095_v56 = vpack.c.bf16 %v2304_v55, %v2303_v53  ;;  %v2453_v59 = vld [vmem:[#allocation10] sm:$0xff] }
 0x3e3   :  { %3680 = vmatmul.mubr.f32.vlgmr.msra.gmra.mrb[10].mxu0 %v5364_v18  ;;  %4052 = vmatpush3.bf16.msra.mxu1 %v4051_v58  ;;  %v4063_v18 = vpack.c.bf16 %v2268_v11, %v2267_v54  ;;  %v3696_v58 = vpop.f32.mrb[3].mxu1  ;;  %v4098_v60 = vpack.c.bf16 %v2454_v41, %v2453_v59  ;;  %v2463_v54 = vld [vmem:[#allocation10 + $0x50] sm:$0xff]  ;;  %v2464_v11 = vld [vmem:[#allocation10 + $0x58] sm:$0xff] }
 0x3e4   :  { %3683 = vmatpush3.xpose.msra.mxu0 %v5371_v21  ;;  %3684 = vmatprep.mubr.msk.f32.mxu0 %vm4793_vm2, %v4790_v0  ;;  %v2287_v21 = vld [vmem:[#allocation9 + $0xf0] sm:$0xff] }
 0x3e5   :  { %4054 = vmatprep.subr.bf16.mxu1 %v4053_v62  ;;  %3687 = vmatprep.subr.mxu0 %v4790_v0  ;;  %v4069_v35 = vpack.c.bf16 %v2288_v22, %v2287_v21  ;;  %v2455_v62 = vld [vmem:[#allocation10 + $0x10] sm:$0xff] }
 0x3e6   :  { %1835 = vadd.xlane.f32.xlu0 %v1834_v3  ;;  %v4101_v1 = vpack.c.bf16 %v2456_v63, %v2455_v62  ;;  %v2458_v3 = vld [vmem:[#allocation10 + $0x28] sm:$0xff]  ;;  %v1411_v62 = vpop.xlane.xlu1 %1410 }
 0x3e7   :  { %3685 = vmatmul.mubr.f32.vlgmr.msra.gmra.mrb[12].mxu0 %v4794_v39  ;;  %4056 = vmatpush3.bf16.msra.mxu1 %v4055_v2  ;;  %v2457_v2 = vld [vmem:[#allocation10 + $0x20] sm:$0xff] }
 0x3e8   :  { %3688 = vmatpush3.xpose.msra.mxu0 %v5340_v9  ;;  %3689 = vmatprep.mubr.msk.f32.mxu0 %vm4793_vm2, %v4790_v0  ;;  %v2269_v9 = vld [vmem:[#allocation9 + $0x60] sm:$0xff] }
 0x3e9   :  { %4058 = vmatprep.subr.bf16.mxu1 %v4057_v6  ;;  %3697 = vmatprep.subr.mxu0 %v4790_v0  ;;  %v4067_v23 = vpack.c.bf16 %v2270_v19, %v2269_v9  ;;  %v4107_v6 = vpack.c.bf16 %v2460_v5, %v2459_v4  ;;  %v2467_v9 = vld [vmem:[#allocation10 + $0x70] sm:$0xff]  ;;  %v2468_v19 = vld [vmem:[#allocation10 + $0x78] sm:$0xff]  ;;  %v1623_v5 = vmul.f32 2.0, %v5471_v57 }
 0x3eb   :  { %3690 = vmatmul.mubr.f32.vlgmr.msra.gmra.mrb[14].mxu0 %v4794_v39  ;;  %4060 = vmatpush3.bf16.msra.mxu1 %v4059_v10  ;;  %v4110_v10 = vpack.c.bf16 %v2462_v8, %v2461_v7 }
 0x3ec   :  { %3698 = vmatpush3.xpose.msra.mxu0 %v5359_v17  ;;  %3699 = vmatprep.mubr.msk.f32.mxu0 %vm4793_vm2, %v4790_v0 }
 0x3ed   :  { %4062 = vmatprep.subr.bf16.mxu1 %v4061_v12  ;;  %3707 = vmatprep.subr.mxu0 %v4790_v0  ;;  %v4113_v12 = vpack.c.bf16 %v2464_v11, %v2463_v54 }
 0x3ef   :  { %3700 = vmatmul.mubr.f32.vlgmr.msra.gmra.mrb[16].mxu0 %v5359_v17  ;;  %4064 = vmatpush3.bf16.msra.mxu1 %v4063_v18  ;;  %v2289_v17 = vld [vmem:[#allocation9 + $0x100] sm:$0xff]  ;;  %v4116_v18 = vpack.c.bf16 %v2466_v15, %v2465_v13 }
 0x3f0   :  { %3708 = vmatpush3.xpose.msra.mxu0 %v5400_v44  ;;  %3709 = vmatprep.mubr.msk.f32.mxu0 %vm4793_vm2, %v4790_v0  ;;  %v4074_v38 = vpack.c.bf16 %v2290_v37, %v2289_v17  ;;  %v2297_v44 = vld [vmem:[#allocation9 + $0x140] sm:$0xff] }
 0x3f1   :  { %4066 = vmatprep.subr.bf16.mxu1 %v4065_v20  ;;  %3717 = vmatprep.subr.mxu0 %v4790_v0  ;;  %v4086_v46 = vpack.c.bf16 %v2298_v45, %v2297_v44  ;;  %v4119_v20 = vpack.c.bf16 %v2468_v19, %v2467_v9 }
 0x3f3   :  { %3710 = vmatmul.mubr.f32.vlgmr.msra.gmra.mrb[18].mxu0 %v4794_v39  ;;  %4068 = vmatpush3.bf16.msra.mxu1 %v4067_v23  ;;  %v2291_v39 = vld [vmem:[#allocation9 + $0x110] sm:$0xff] }
 0x3f4   :  { %3718 = vmatpush3.xpose.msra.mxu0 %v5357_v16  ;;  %3719 = vmatprep.mubr.msk.f32.mxu0 %vm4793_vm2, %v4790_v0  ;;  %v4077_v43 = vpack.c.bf16 %v2292_v40, %v2291_v39 }
 0x3f5   :  { %4070 = vmatprep.subr.bf16.mxu1 %v4069_v35  ;;  %3727 = vmatprep.subr.mxu0 %v4790_v0 }
 0x3f7   :  { %3720 = vmatmul.mubr.f32.vlgmr.msra.gmra.mrb[20].mxu0 %v5357_v16  ;;  %4072 = vmatpush3.bf16.msra.mxu1 %v4071_v36 }
 0x3f8   :  { %3728 = vmatpush3.xpose.msra.mxu0 %v5387_v30  ;;  %3729 = vmatprep.mubr.msk.f32.mxu0 %vm4793_vm2, %v4790_v0 }
 0x3f9   :  { %4073 = vmatprep.subr.bf16.mxu0 %v4792_v61  ;;  %4097 = vmatprep.subr.bf16.mxu1 %v4792_v61 }
 0x3fa   :  { %2377 = vmatmul.mubr.f32.vlgmr.msra.gmra.mrb[10].mxu1 %v5352_v14  ;;  %v2296_v14 = vld [vmem:[#allocation9 + $0x138] sm:$0xff] }
 0x3fb   :  { %3730 = vmatmul.mubr.f32.vlgmr.msra.gmra.mrb[22].mxu0 %v5357_v16  ;;  %3799 = vmatprep.mubr.msk.f32.mxu1 %vm4793_vm2, %v4790_v0  ;;  %v4083_v16 = vpack.c.bf16 %v2296_v14, %v2295_v34 }
 0x3fc   :  { %4075 = vmatpush3.bf16.msra.mxu0 %v4074_v38  ;;  %3764 = vmatprep.mubr.msk.f32.mxu0 %vm4793_vm2, %v4790_v0 }
 0x3fd   :  { %4076 = vmatprep.subr.bf16.mxu0 %v4792_v61  ;;  %4099 = vmatpush3.bf16.msra.mxu1 %v4098_v60 }
 0x3fe   :  { %4100 = vmatprep.subr.bf16.mxu1 %v4792_v61 }
 0x400   :  { %4078 = vmatpush3.bf16.msra.mxu0 %v4077_v43 }
 0x401   :  { %4079 = vmatprep.subr.bf16.mxu0 %v4792_v61  ;;  %4102 = vmatpush3.bf16.msra.mxu1 %v4101_v1 }
 0x402   :  { %4103 = vmatprep.subr.bf16.mxu1 %v4792_v61 }
 0x404   :  { %4081 = vmatpush3.bf16.msra.mxu0 %v4080_v32 }
 0x405   :  { %4082 = vmatprep.subr.bf16.mxu0 %v4792_v61 }
 0x408   :  { %4084 = vmatpush3.bf16.msra.mxu0 %v4083_v16 }
 0x409   :  { %4085 = vmatprep.subr.bf16.mxu0 %v4792_v61 }
 0x40c   :  { %4087 = vmatpush3.bf16.msra.mxu0 %v4086_v46 }
 0x40d   :  { %4088 = vmatprep.subr.bf16.mxu0 %v4792_v61 }
 0x410   :  { %4090 = vmatpush3.bf16.msra.mxu0 %v4089_v49 }
 0x411   :  { %4091 = vmatprep.subr.bf16.mxu0 %v4792_v61 }
 0x414   :  { %4093 = vmatpush3.bf16.msra.mxu0 %v4092_v52 }
 0x415   :  { %4094 = vmatprep.subr.bf16.mxu0 %v4792_v61 }
 0x418   :  { %4096 = vmatpush3.bf16.msra.mxu0 %v4095_v56 }
 0x41b   :  { %3765 = vmatmul.mubr.f32.vlgmr.msra.gmra.mrb[24].mxu0 %v5387_v30  ;;  %v4104_v30 = vpack.c.bf16 %v2458_v3, %v2457_v2 }
 0x41c   :  { %2697 = vmatprep.mubr.f32.mxu0 %v4790_v0 }
 0x41d   :  { %4105 = vmatpush3.bf16.msra.mxu1 %v4104_v30 }
 0x41e   :  { %4106 = vmatprep.subr.bf16.mxu1 %v4792_v61 }
 0x421   :  { %4108 = vmatpush3.bf16.msra.mxu1 %v4107_v6 }
 0x422   :  { %4109 = vmatprep.subr.bf16.mxu1 %v4792_v61 }
 0x425   :  { %4111 = vmatpush3.bf16.msra.mxu1 %v4110_v10 }
 0x426   :  { %4112 = vmatprep.subr.bf16.mxu1 %v4792_v61 }
 0x429   :  { %4114 = vmatpush3.bf16.msra.mxu1 %v4113_v12 }
 0x42a   :  { %4115 = vmatprep.subr.bf16.mxu1 %v4792_v61 }
 0x42d   :  { %4117 = vmatpush3.bf16.msra.mxu1 %v4116_v18 }
 0x42e   :  { %4118 = vmatprep.subr.bf16.mxu1 %v4792_v61 }
 0x431   :  { %4120 = vmatpush3.bf16.msra.mxu1 %v4119_v20 }
 0x45e   :  { %v981_v33 = vpop.xlane.xlu0 %980 }
 0x45f   :  { %v1407_v15 = vpop.xlane.xlu1 %1406 }
 0x46f   :  { %v985_v38 = vpop.xlane.xlu0 %984 }
 0x4a5   :  { %v1802_v21 = vpop.f32.mrb[4].mxu1 }
 0x4a6   :  { %v1052_v22 = vpop.f32.mrb[2].mxu0  ;;  %v3706_v23 = vpop.f32.mrb[5].mxu1  ;;  %v1807_v60 = vmul.f32 2.0, %v1802_v21 }
 0x4a7   :  { %v3661_v26 = vpop.f32.mrb[3].mxu0  ;;  %v1289_v16 = vadd.f32 %v1052_v22, %v981_v33  ;;  %v1381_v50 = vadd.f32 %v1052_v22, %v985_v38 }
 0x4a9   :  { %v5480_v35 = vpop.f32.mrb[6].mxu1 }
 0x4aa   :  { %v1122_v36 = vpop.f32.mrb[4].mxu0  ;;  %v3716_v17 = vpop.f32.mrb[7].mxu1 }
 0x4ab   :  { %v3666_v37 = vpop.f32.mrb[5].mxu0  ;;  %v1196_v31 = vadd.f32 %v1122_v36, %v985_v38  ;;  %v1832_v36 = vpop.xlane.xlu1 %1831 }
 0x4ad   :  { %v2135_v39 = vpop.f32.mrb[8].mxu1 }
 0x4ae   :  { %v1192_v40 = vpop.f32.mrb[6].mxu0  ;;  %v3726_v43 = vpop.f32.mrb[9].mxu1 }
 0x4af   :  { %v1197_v42 = vmul.f32 2.0, %v1192_v40  ;;  %v3671_v32 = vpop.f32.mrb[7].mxu0  ;;  %v2140_v40 = vmul.f32 2.0, %v2135_v39 }
 0x4b1   :  { %v1198_v34 = vsub.f32 %v1196_v31, %v1197_v42  ;;  %v1836_v42 = vpop.xlane.xlu0 %1835 }
 0x4b2   :  { %v1285_v14 = vpop.f32.mrb[8].mxu0 }
 0x4b3   :  { %v1199_v44 = vmax.f32 %v1198_v34, 0.0  ;;  %v1290_v45 = vmul.f32 2.0, %v1285_v14  ;;  %v3676_v46 = vpop.f32.mrb[9].mxu0 }
 0x4b4   :  { %v2047_v46 = vadd.f32 %v5480_v35, %v1836_v42 }
 0x4b5   :  { %v1200_v47 = vsub.f32 0.0, %v1199_v44  ;;  %v1291_v48 = vsub.f32 %v1289_v16, %v1290_v45 }
 0x4b6   :  { %v1377_v49 = vpop.f32.mrb[10].mxu0 }
 0x4b7   :  { %v1201_v51 = vmul.f32 0.00390625, %v1200_v47  ;;  %v1292_v52 = vmax.f32 %v1291_v48, 0.0  ;;  %v1382_v53 = vmul.f32 2.0, %v1377_v49  ;;  %v3681_v55 = vpop.f32.mrb[11].mxu0 }
 0x4b9   :  { %v1202_v56 = vmul.f32 1.442695, %v1201_v51  ;;  %v1293_v58 = vsub.f32 0.0, %v1292_v52  ;;  %v1383_v59 = vsub.f32 %v1381_v50, %v1382_v53 }
 0x4ba   :  { %v1478_v41 = vpop.f32.mrb[12].mxu0 }
 0x4bb   :  { %4447 = vpow2.f32 %v1202_v56  ;;  %v1294_v63 = vmul.f32 0.00390625, %v1293_v58  ;;  %v1384_v1 = vmax.f32 %v1383_v59, 0.0  ;;  %v3686_v2 = vpop.f32.mrb[13].mxu0  ;;  %v1806_v3 = vadd.f32 %v1478_v41, %v1411_v62 }
 0x4bc   :  { %v1714_v19 = vadd.f32 %v1478_v41, %v1407_v15 }
 0x4bd   :  { %v1295_v30 = vmul.f32 1.442695, %v1294_v63  ;;  %v1385_v4 = vsub.f32 0.0, %v1384_v1  ;;  %v1808_v6 = vsub.f32 %v1806_v3, %v1807_v60 }
 0x4be   :  { %v1548_v7 = vpop.f32.mrb[14].mxu0 }
 0x4bf   :  { %4449 = vpow2.f32 %v1295_v30  ;;  %v1386_v8 = vmul.f32 0.00390625, %v1385_v4  ;;  %v1622_v10 = vadd.f32 %v1548_v7, %v1411_v62  ;;  %v3691_v54 = vpop.f32.mrb[15].mxu0  ;;  %v1809_v11 = vmax.f32 %v1808_v6, 0.0 }
 0x4c1   :  { %v1387_v12 = vmul.f32 1.442695, %v1386_v8  ;;  %v1624_v13 = vsub.f32 %v1622_v10, %v1623_v5  ;;  %v1810_v18 = vsub.f32 0.0, %v1809_v11 }
 0x4c2   :  { %v1710_v9 = vpop.f32.mrb[16].mxu0 }
 0x4c3   :  { %4451 = vpow2.f32 %v1387_v12  ;;  %v1625_v20 = vmax.f32 %v1624_v13, 0.0  ;;  %v1715_v21 = vmul.f32 2.0, %v1710_v9  ;;  %v3701_v22 = vpop.f32.mrb[17].mxu0  ;;  %v1811_v57 = vmul.f32 0.00390625, %v1810_v18 }
 0x4c5   :  { %v4448_v23 = vpop.eup %4447  ;;  %v1626_v26 = vsub.f32 0.0, %v1625_v20  ;;  %v1716_v33 = vsub.f32 %v1714_v19, %v1715_v21  ;;  %v1812_v14 = vmul.f32 1.442695, %v1811_v57 }
 0x4c6   :  { %v1903_v17 = vpop.f32.mrb[18].mxu0  ;;  %v1205_v37 = vsel %vm1204_vm3, %v4448_v23, 0.0 }
 0x4c7   :  { %v1627_v38 = vmul.f32 0.00390625, %v1626_v26  ;;  %v1717_v43 = vmax.f32 %v1716_v33, 0.0  ;;  %v2139_v31 = vadd.f32 %v1903_v17, %v1832_v36  ;;  %v3711_v32 = vpop.f32.mrb[19].mxu0  ;;  %1206 = vadd.xlane.f32.xlu0 %v1205_v37  ;;  %v2231_v59 = vadd.f32 %v1903_v17, %v1836_v42  ;;  %v3437_v33 = vld [vmem:[%s5625_s8] ss:$0 sm:$0xff]  ;;  %v2572_v42 = vld [vmem:[#allocation12 + $0x18] sm:$0xff] }
 0x4c9   :  { %v4450_v34 = vpop.eup %4449  ;;  %v1628_v16 = vmul.f32 1.442695, %v1627_v38  ;;  %v1718_v44 = vsub.f32 0.0, %v1717_v43  ;;  %v2141_v45 = vsub.f32 %v2139_v31, %v2140_v40  ;;  %v2570_v43 = vld [vmem:[#allocation12 + $0x8] sm:$0xff] }
 0x4ca   :  { %v2043_v47 = vpop.f32.mrb[20].mxu0  ;;  %v1297_v48 = vsel %vm1204_vm3, %v4450_v34, 0.0  ;;  %v2574_v31 = vld [vmem:[#allocation12 + $0x28] sm:$0xff]  ;;  %v2576_v34 = vld [vmem:[#allocation12 + $0x38] sm:$0xff] }
 0x4cb   :  { %4453 = vpow2.f32 %v1628_v16  ;;  %v1719_v49 = vmul.f32 0.00390625, %v1718_v44  ;;  %v2142_v50 = vmax.f32 %v2141_v45, 0.0  ;;  %v2048_v51 = vmul.f32 2.0, %v2043_v47  ;;  %v3721_v39 = vpop.f32.mrb[21].mxu0  ;;  %1298 = vadd.xlane.f32.xlu1 %v1297_v48  ;;  %v2573_v16 = vld [vmem:[#allocation12 + $0x20] sm:$0xff]  ;;  %v2575_v47 = vld [vmem:[#allocation12 + $0x30] sm:$0xff] }
 0x4cc   :  { %4455 = vpow2.f32 %v1812_v14  ;;  %v4121_v32 = vpack.c.bf16 %v2574_v31, %v2570_v43  ;;  %v2569_v14 = vld [vmem:[#allocation12] sm:$0xff]  ;;  %v4153_v44 = vpack.c.bf16 %v2576_v34, %v2572_v42  ;;  %v2603_v43 = vld [vmem:[#allocation12 + $0x110] sm:$0xff]  ;;  %v2610_v42 = vld [vmem:[#allocation12 + $0x148] sm:$0xff] }
 0x4cd   :  { %v4452_v52 = vpop.eup %4451  ;;  %v1720_v53 = vmul.f32 1.442695, %v1719_v49  ;;  %v2143_v55 = vsub.f32 0.0, %v2142_v50  ;;  %v2049_v56 = vsub.f32 %v2047_v46, %v2048_v51  ;;  %v3529_v58 = vpop.f32.mrb[10].mxu1  ;;  %v4123_v45 = vpack.c.bf16 %v2573_v16, %v2569_v14  ;;  %v2571_v46 = vld [vmem:[#allocation12 + $0x10] sm:$0xff]  ;;  %v2578_v49 = vld [vmem:[#allocation12 + $0x48] sm:$0xff] }
 0x4ce   :  { %v2227_v41 = vpop.f32.mrb[22].mxu0  ;;  %v3530_v60 = vpop.f32.mrb[11].mxu1  ;;  %v1389_v35 = vsel %vm1204_vm3, %v4452_v52, 0.0  ;;  %4122 = vmatprep.subr.bf16.mxu0 %v4121_v32  ;;  %v4155_v48 = vpack.c.bf16 %v2575_v47, %v2571_v46  ;;  %4154 = vmatprep.subr.bf16.mxu1 %v4153_v44  ;;  %v2582_v50 = vld [vmem:[#allocation12 + $0x68] sm:$0xff]  ;;  %v2580_v51 = vld [vmem:[#allocation12 + $0x58] sm:$0xff]  ;;  %v2607_v31 = vld [vmem:[#allocation12 + $0x130] sm:$0xff] }
 0x4cf   :  { %4457 = vpow2.f32 %v1720_v53  ;;  %v2144_v62 = vmul.f32 0.00390625, %v2143_v55  ;;  %v2050_v63 = vmax.f32 %v2049_v56, 0.0  ;;  %v2232_v1 = vmul.f32 2.0, %v2227_v41  ;;  %v3731_v2 = vpop.f32.mrb[23].mxu0  ;;  %1390 = vadd.xlane.f32.xlu0 %v1389_v35  ;;  %4124 = vmatpush1.bf16.msra.mxu0 %v4123_v45  ;;  %v2584_v52 = vld [vmem:[#allocation12 + $0x78] sm:$0xff]  ;;  %v2577_v53 = vld [vmem:[#allocation12 + $0x40] sm:$0xff] }
 0x4d0   :  { %v3531_v3 = vadd.f32 %v3530_v60, %v3529_v58  ;;  %v4125_v39 = vpack.c.bf16 %v2582_v50, %v2578_v49  ;;  %v2581_v55 = vld [vmem:[#allocation12 + $0x60] sm:$0xff]  ;;  %v4157_v56 = vpack.c.bf16 %v2584_v52, %v2580_v51  ;;  %v2583_v41 = vld [vmem:[#allocation12 + $0x70] sm:$0xff]  ;;  %v2586_v35 = vld [vmem:[#allocation12 + $0x88] sm:$0xff]  ;;  %v4171_v32 = vpack.c.bf16 %v2607_v31, %v2603_v43 }
 0x4d1   :  { %v2145_v30 = vmul.f32 1.442695, %v2144_v62  ;;  %v2051_v4 = vsub.f32 0.0, %v2050_v63  ;;  %v2233_v5 = vsub.f32 %v2231_v59, %v2232_v1  ;;  %v4127_v58 = vpack.c.bf16 %v2581_v55, %v2577_v53  ;;  %v2579_v59 = vld [vmem:[#allocation12 + $0x50] sm:$0xff]  ;;  %v2590_v62 = vld [vmem:[#allocation12 + $0xa8] sm:$0xff]  ;;  %v2588_v63 = vld [vmem:[#allocation12 + $0x98] sm:$0xff] }
 0x4d2   :  { %v2379_v36 = vadd.f32 %v3531_v3, %v3437_v33  ;;  %4126 = vmatprep.subr.bf16.mxu0 %v4125_v39  ;;  %v4159_v60 = vpack.c.bf16 %v2583_v41, %v2579_v59  ;;  %v4129_v1 = vpack.c.bf16 %v2590_v62, %v2586_v35  ;;  %v2592_v2 = vld [vmem:[#allocation12 + $0xb8] sm:$0xff]  ;;  %v2585_v3 = vld [vmem:[#allocation12 + $0x80] sm:$0xff]  ;;  %v2614_v34 = vld [vmem:[#allocation12 + $0x168] sm:$0xff] }
 0x4d3   :  { %4459 = vpow2.f32 %v2145_v30  ;;  %v2052_v6 = vmul.f32 0.00390625, %v2051_v4  ;;  %v2234_v7 = vmax.f32 %v2233_v5, 0.0  ;;  %4128 = vmatpush1.bf16.msra.mxu0 %v4127_v58  ;;  %v2589_v30 = vld [vmem:[#allocation12 + $0xa0] sm:$0xff]  ;;  %v4161_v4 = vpack.c.bf16 %v2592_v2, %v2588_v63  ;;  %v2612_v14 = vld [vmem:[#allocation12 + $0x158] sm:$0xff]  ;;  %v2615_v50 = vld [vmem:[#allocation12 + $0x170] sm:$0xff] }
 0x4d4   :  { %v4131_v5 = vpack.c.bf16 %v2589_v30, %v2585_v3  ;;  %4130 = vmatprep.subr.bf16.mxu0 %v4129_v1  ;;  %v2616_v16 = vld [vmem:[#allocation12 + $0x178] sm:$0xff]  ;;  %v4141_v44 = vpack.c.bf16 %v2614_v34, %v2610_v42  ;;  %v2609_v46 = vld [vmem:[#allocation12 + $0x140] sm:$0xff]  ;;  %v2618_v51 = vld [vmem:[#allocation12 + $0x188] sm:$0xff] }
 0x4d5   :  { %v4454_v8 = vpop.eup %4453  ;;  %v2053_v10 = vmul.f32 1.442695, %v2052_v6  ;;  %v2235_v54 = vsub.f32 0.0, %v2234_v7  ;;  %v2587_v6 = vld [vmem:[#allocation12 + $0x90] sm:$0xff]  ;;  %v4173_v45 = vpack.c.bf16 %v2616_v16, %v2612_v14  ;;  %v2613_v47 = vld [vmem:[#allocation12 + $0x160] sm:$0xff]  ;;  %v2622_v39 = vld [vmem:[#allocation12 + $0x1a8] sm:$0xff] }
 0x4d6   :  { %v1630_v11 = vsel %vm1204_vm3, %v4454_v8, 0.0  ;;  %v4456_v12 = vpop.eup %4455  ;;  %v2591_v7 = vld [vmem:[#allocation12 + $0xb0] sm:$0xff]  ;;  %v4143_v49 = vpack.c.bf16 %v2613_v47, %v2609_v46  ;;  %v4145_v53 = vpack.c.bf16 %v2622_v39, %v2618_v51  ;;  %v2620_v55 = vld [vmem:[#allocation12 + $0x198] sm:$0xff]  ;;  %v2617_v58 = vld [vmem:[#allocation12 + $0x180] sm:$0xff] }
 0x4d7   :  { %4461 = vpow2.f32 %v2053_v10  ;;  %v2236_v13 = vmul.f32 0.00390625, %v2235_v54  ;;  %1631 = vadd.xlane.f32.xlu1 %v1630_v11  ;;  %v1814_v9 = vsel %vm1204_vm3, %v4456_v12, 0.0  ;;  %v4163_v8 = vpack.c.bf16 %v2591_v7, %v2587_v6  ;;  %4132 = vmatpush1.bf16.msra.mxu0 %v4131_v5  ;;  %v2594_v10 = vld [vmem:[#allocation12 + $0xc8] sm:$0xff]  ;;  %v2596_v11 = vld [vmem:[#allocation12 + $0xd8] sm:$0xff]  ;;  %v2621_v41 = vld [vmem:[#allocation12 + $0x1a0] sm:$0xff] }
 0x4d8   :  { %v2598_v54 = vld [vmem:[#allocation12 + $0xe8] sm:$0xff]  ;;  %v2623_v35 = vld [vmem:[#allocation12 + $0x1b0] sm:$0xff]  ;;  %v4147_v62 = vpack.c.bf16 %v2621_v41, %v2617_v58  ;;  %v2628_v3 = vld [vmem:[#allocation12 + $0x1d8] sm:$0xff] }
 0x4d9   :  { %v4458_v15 = vpop.eup %4457  ;;  %v2237_v18 = vmul.f32 1.442695, %v2236_v13  ;;  %v4133_v12 = vpack.c.bf16 %v2598_v54, %v2594_v10  ;;  %v2600_v13 = vld [vmem:[#allocation12 + $0xf8] sm:$0xff]  ;;  %v2626_v1 = vld [vmem:[#allocation12 + $0x1c8] sm:$0xff]  ;;  %v2625_v5 = vld [vmem:[#allocation12 + $0x1c0] sm:$0xff] }
 0x4da   :  { %v1722_v19 = vsel %vm1204_vm3, %v4458_v15, 0.0  ;;  %v2593_v15 = vld [vmem:[#allocation12 + $0xc0] sm:$0xff]  ;;  %v2630_v2 = vld [vmem:[#allocation12 + $0x1e8] sm:$0xff]  ;;  %v2627_v10 = vld [vmem:[#allocation12 + $0x1d0] sm:$0xff] }
 0x4db   :  { %4463 = vpow2.f32 %v2237_v18  ;;  %1815 = vadd.xlane.f32.xlu1 %v1814_v9  ;;  %1723 = vadd.xlane.f32.xlu0 %v1722_v19  ;;  %v2597_v18 = vld [vmem:[#allocation12 + $0xe0] sm:$0xff]  ;;  %v4165_v9 = vpack.c.bf16 %v2600_v13, %v2596_v11  ;;  %v4149_v30 = vpack.c.bf16 %v2630_v2, %v2626_v1  ;;  %v2631_v54 = vld [vmem:[#allocation12 + $0x1f0] sm:$0xff] }
 0x4dc   :  { %v4135_v19 = vpack.c.bf16 %v2597_v18, %v2593_v15  ;;  %4134 = vmatprep.subr.bf16.mxu0 %v4133_v12  ;;  %v2629_v6 = vld [vmem:[#allocation12 + $0x1e0] sm:$0xff]  ;;  %v4183_v11 = vpack.c.bf16 %v2631_v54, %v2627_v10 }
 0x4dd   :  { %v4460_v20 = vpop.eup %4459 }
 0x4de   :  { %v2147_v21 = vsel %vm1204_vm3, %v4460_v20, 0.0  ;;  %v2595_v20 = vld [vmem:[#allocation12 + $0xd0] sm:$0xff]  ;;  %4136 = vmatpush1.bf16.msra.mxu0 %v4135_v19 }
 0x4df   :  { %2148 = vadd.xlane.f32.xlu1 %v2147_v21  ;;  %v2599_v21 = vld [vmem:[#allocation12 + $0xf0] sm:$0xff] }
 0x4e1   :  { %v4462_v22 = vpop.eup %4461 }
 0x4e2   :  { %v2055_v23 = vsel %vm1204_vm3, %v4462_v22, 0.0  ;;  %v4167_v22 = vpack.c.bf16 %v2599_v21, %v2595_v20 }
 0x4e3   :  { %2056 = vadd.xlane.f32.xlu0 %v2055_v23  ;;  %v2602_v23 = vld [vmem:[#allocation12 + $0x108] sm:$0xff] }
 0x4e5   :  { %v4464_v57 = vpop.eup %4463 }
 0x4e6   :  { %v2239_v26 = vsel %vm1204_vm3, %v4464_v57, 0.0  ;;  %v2606_v57 = vld [vmem:[#allocation12 + $0x128] sm:$0xff] }
 0x4e7   :  { %2240 = vadd.xlane.f32.xlu0 %v2239_v26  ;;  %v2604_v26 = vld [vmem:[#allocation12 + $0x118] sm:$0xff]  ;;  %v4137_v33 = vpack.c.bf16 %v2606_v57, %v2602_v23 }
 0x4e9   :  { %4138 = vmatprep.subr.bf16.mxu0 %v4137_v33 }
 0x4ee   :  { %v2448_v17 = vpop.f32.mrb[24].mxu0 }
 0x4ef   :  { %v2449_v37 = vadd.f32 %v2448_v17, %v2379_v36  ;;  %v3766_v38 = vpop.f32.mrb[25].mxu0  ;;  %v2608_v36 = vld [vmem:[#allocation12 + $0x138] sm:$0xff]  ;;  %v2601_v17 = vld [vmem:[#allocation12 + $0x100] sm:$0xff] }
 0x4f0   :  { %v4169_v38 = vpack.c.bf16 %v2608_v36, %v2604_v26 }
 0x4f1   :  { %v2452_v40 = vmax.f32 %v2449_v37, 0.0  ;;  %v2605_v37 = vld [vmem:[#allocation12 + $0x120] sm:$0xff] }
 0x4f3   :  { %3800 = vmatmul.mubr.f32.vlgmr.msra.gmra.mrb[12].mxu1 %v2452_v40  ;;  %v4139_v40 = vpack.c.bf16 %v2605_v37, %v2601_v17 }
 0x4f4   :  { %2768 = vmatprep.mubr.f32.mxu1 %v4790_v0  ;;  %4156 = vmatpush1.bf16.msra.mxu1 %v4155_v48  ;;  %v2611_v48 = vld [vmem:[#allocation12 + $0x150] sm:$0xff] }
 0x4f5   :  { %4158 = vmatprep.subr.bf16.mxu1 %v4157_v56  ;;  %4140 = vmatpush1.bf16.msra.mxu0 %v4139_v40  ;;  %v4175_v52 = vpack.c.bf16 %v2615_v50, %v2611_v48  ;;  %v2624_v56 = vld [vmem:[#allocation12 + $0x1b8] sm:$0xff] }
 0x4f6   :  { %4142 = vmatprep.subr.bf16.mxu0 %v4141_v44  ;;  %v4177_v59 = vpack.c.bf16 %v2624_v56, %v2620_v55 }
 0x4f8   :  { %4160 = vmatpush1.bf16.msra.mxu1 %v4159_v60  ;;  %v2619_v60 = vld [vmem:[#allocation12 + $0x190] sm:$0xff] }
 0x4f9   :  { %4162 = vmatprep.subr.bf16.mxu1 %v4161_v4  ;;  %4144 = vmatpush1.bf16.msra.mxu0 %v4143_v49  ;;  %v4179_v63 = vpack.c.bf16 %v2623_v35, %v2619_v60  ;;  %v2632_v4 = vld [vmem:[#allocation12 + $0x1f8] sm:$0xff] }
 0x4fa   :  { %4146 = vmatprep.subr.bf16.mxu0 %v4145_v53  ;;  %v4181_v7 = vpack.c.bf16 %v2632_v4, %v2628_v3 }
 0x4fc   :  { %4164 = vmatpush1.bf16.msra.mxu1 %v4163_v8  ;;  %v4151_v8 = vpack.c.bf16 %v2629_v6, %v2625_v5 }
 0x4fd   :  { %4166 = vmatprep.subr.bf16.mxu1 %v4165_v9  ;;  %4148 = vmatpush1.bf16.msra.mxu0 %v4147_v62 }
 0x4fe   :  { %4150 = vmatprep.subr.bf16.mxu0 %v4149_v30 }
 0x500   :  { %4168 = vmatpush1.bf16.msra.mxu1 %v4167_v22 }
 0x501   :  { %4170 = vmatprep.subr.bf16.mxu1 %v4169_v38  ;;  %4152 = vmatpush1.bf16.msra.mxu0 %v4151_v8 }
 0x504   :  { %4172 = vmatpush1.bf16.msra.mxu1 %v4171_v32 }
 0x505   :  { %4174 = vmatprep.subr.bf16.mxu1 %v4173_v45 }
 0x508   :  { %4176 = vmatpush1.bf16.msra.mxu1 %v4175_v52 }
 0x509   :  { %4178 = vmatprep.subr.bf16.mxu1 %v4177_v59 }
 0x50c   :  { %4180 = vmatpush1.bf16.msra.mxu1 %v4179_v63 }
 0x50d   :  { %4182 = vmatprep.subr.bf16.mxu1 %v4181_v7 }
 0x510   :  { %4184 = vmatpush1.bf16.msra.mxu1 %v4183_v11 }
 0x554   :  { %v1207_v12 = vpop.xlane.xlu0 %1206 }
 0x555   :  { %v1208_v13 = vrot.slane %v1207_v12, 4 }
 0x557   :  { %v1209_v15 = vadd.f32 %v1208_v13, %v1207_v12 }
 0x558   :  { %v1299_v18 = vpop.xlane.xlu1 %1298 }
 0x559   :  { %v1210_v9 = vrot.slane %v1209_v15, 2  ;;  %v1300_v19 = vrot.slane %v1299_v18, 4 }
 0x55b   :  { %v1301_v20 = vadd.f32 %v1300_v19, %v1299_v18  ;;  %v1211_v21 = vadd.f32 %v1210_v9, %v1209_v15 }
 0x55c   :  { %v1391_v22 = vpop.xlane.xlu0 %1390 }
 0x55d   :  { %v1302_v23 = vrot.slane %v1301_v20, 2  ;;  %v1392_v57 = vrot.slane %v1391_v22, 4  ;;  %v1212_v26 = vrot.slane %v1211_v21, 1 }
 0x55f   :  { %v1393_v33 = vadd.f32 %v1392_v57, %v1391_v22  ;;  %v1213_v36 = vadd.f32 %v1212_v26, %v1211_v21  ;;  %v1303_v17 = vadd.f32 %v1302_v23, %v1301_v20  ;;  %v3438_v21 = vld [vmem:[%s5627_s10] ss:$0 sm:$0xff]  ;;  %s5528_s10 = smov 1  }
 0x561   :  { %v1394_v37 = vrot.slane %v1393_v33, 2  ;;  %4329 = vpush %v1213_v36  ;;  %v1304_v38 = vrot.slane %v1303_v17, 1 }
 0x563   :  { %v1305_v40 = vadd.f32 %v1304_v38, %v1303_v17  ;;  %v1395_v43 = vadd.f32 %v1394_v37, %v1393_v33  ;;  %v2547_v33 = vld [vmem:[%s5630_s13] sm:$0xf] }
 0x564   :  { %v1632_v31 = vpop.xlane.xlu1 %1631  ;;  %v5508_v36 = vrot.slane %v2547_v33, %v5096_v25  ;;  %v5511_v17 = vrot.slane %v2547_v33, %v5102_v27  ;;  %v5521_v27 = vrot.slane %v2547_v33, %v5105_v28 }
 0x565   :  { %v1633_v42 = vrot.slane %v1632_v31, 4  ;;  %4331 = vpush %v1305_v40  ;;  %v1396_v32 = vrot.slane %v1395_v43, 1 }
 0x567   :  { %v1634_v34 = vadd.f32 %v1633_v42, %v1632_v31  ;;  %v1397_v14 = vadd.f32 %v1396_v32, %v1395_v43 }
 0x568   :  { %v1816_v16 = vpop.xlane.xlu1 %1815  ;;  %v1724_v44 = vpop.xlane.xlu0 %1723 }
 0x569   :  { %v1635_v45 = vrot.slane %v1634_v34, 2  ;;  %v1817_v46 = vrot.slane %v1816_v16, 4  ;;  %v1725_v47 = vrot.slane %v1724_v44, 4  ;;  %4333 = vpush %v1397_v14  ;;  %v5517_v14 = vrot.slane %v2547_v33, %v225_v29 }
 0x56b   :  { %v1818_v48 = vadd.f32 %v1817_v46, %v1816_v16  ;;  %v1726_v49 = vadd.f32 %v1725_v47, %v1724_v44  ;;  %v1636_v50 = vadd.f32 %v1635_v45, %v1634_v34 }
 0x56c   :  { %v2149_v51 = vpop.xlane.xlu1 %2148 }
 0x56d   :  { %v1819_v39 = vrot.slane %v1818_v48, 2  ;;  %v1727_v52 = vrot.slane %v1726_v49, 2  ;;  %v2150_v53 = vrot.slane %v2149_v51, 4  ;;  %v1637_v55 = vrot.slane %v1636_v50, 1 }
 0x56f   :  { %v2151_v56 = vadd.f32 %v2150_v53, %v2149_v51  ;;  %v1638_v58 = vadd.f32 %v1637_v55, %v1636_v50  ;;  %v1728_v59 = vadd.f32 %v1727_v52, %v1726_v49  ;;  %v1820_v41 = vadd.f32 %v1819_v39, %v1818_v48 }
 0x570   :  { %v2057_v60 = vpop.xlane.xlu0 %2056 }
 0x571   :  { %v2152_v35 = vrot.slane %v2151_v56, 2  ;;  %v2058_v62 = vrot.slane %v2057_v60, 4  ;;  %4335 = vpush %v1638_v58  ;;  %v1729_v63 = vrot.slane %v1728_v59, 1  ;;  %v1821_v1 = vrot.slane %v1820_v41, 1 }
 0x573   :  { %v2059_v2 = vadd.f32 %v2058_v62, %v2057_v60  ;;  %v1730_v3 = vadd.f32 %v1729_v63, %v1728_v59  ;;  %v1822_v30 = vadd.f32 %v1821_v1, %v1820_v41  ;;  %v2153_v4 = vadd.f32 %v2152_v35, %v2151_v56 }
 0x574   :  { %v2241_v5 = vpop.xlane.xlu0 %2240 }
 0x575   :  { %v2060_v6 = vrot.slane %v2059_v2, 2  ;;  %v2242_v7 = vrot.slane %v2241_v5, 4  ;;  %4337 = vpush %v1730_v3  ;;  %v2154_v54 = vrot.slane %v2153_v4, 1 }
 0x576   :  { %4339 = vpush %v1822_v30 }
 0x577   :  { %v2243_v8 = vadd.f32 %v2242_v7, %v2241_v5  ;;  %v2061_v10 = vadd.f32 %v2060_v6, %v2059_v2  ;;  %v2155_v18 = vadd.f32 %v2154_v54, %v2153_v4 }
 0x579   :  { %v2244_v11 = vrot.slane %v2243_v8, 2  ;;  %v2062_v12 = vrot.slane %v2061_v10, 1 }
 0x57b   :  { %v2245_v13 = vadd.f32 %v2244_v11, %v2243_v8  ;;  %v2063_v15 = vadd.f32 %v2062_v12, %v2061_v10 }
 0x57d   :  { %4341 = vpush %v2063_v15  ;;  %v2246_v9 = vrot.slane %v2245_v13, 1 }
 0x57e   :  { %4343 = vpush %v2155_v18 }
 0x57f   :  { %v2247_v19 = vadd.f32 %v2246_v9, %v2245_v13 }
 0x581   :  { %4345 = vpush %v2247_v19 }
 0x592   :  { %s4330_s8 = spop %4329 }
 0x593   :  { %s1217_s30 = smul.f32 0.0625, %s4330_s8 }
 0x596   :  { %s4332_s26 = spop %4331 }
 0x597   :  { %s1309_s21 = smul.f32 0.0625, %s4332_s26 }
 0x599   :  { %s1310_s23 = sadd.f32 %s1309_s21, %s1217_s30 }
 0x59a   :  { %s4334_s9 = spop %4333 }
 0x59b   :  { %s1401_s28 = smul.f32 0.0625, %s4334_s9 }
 0x59d   :  { %s1402_s7 = smul.f32 2.0, %s1401_s28 }
 0x59f   :  { %s1403_s14 = ssub.f32 %s1310_s23, %s1402_s7 }
 0x5a2   :  { %s4336_s12 = spop %4335 }
 0x5a3   :  { %s1642_s5 = smul.f32 0.0625, %s4336_s12 }
 0x5a5   :  { %s1643_s2 = sadd.f32 %s1642_s5, %s1403_s14 }
 0x5a6   :  { %s4338_s18 = spop %4337 }
 0x5a7   :  { %s1734_s4 = smul.f32 0.0625, %s4338_s18  ;;  %s4340_s1 = spop %4339 }
 0x5a8   :  { %s1826_s19 = smul.f32 0.0625, %s4340_s1 }
 0x5a9   :  { %s1735_s3 = sadd.f32 %s1734_s4, %s1643_s2 }
 0x5aa   :  { %s1827_s24 = smul.f32 2.0, %s1826_s19 }
 0x5ac   :  { %s1828_s16 = ssub.f32 %s1735_s3, %s1827_s24 }
 0x5ae   :  { %s4342_s27 = spop %4341 }
 0x5af   :  { %s2067_s6 = smul.f32 0.0625, %s4342_s27  ;;  %s4344_s0 = spop %4343 }
 0x5b0   :  { %s2159_s11 = smul.f32 0.0625, %s4344_s0 }
 0x5b1   :  { %s2068_s29 = sadd.f32 %s2067_s6, %s1828_s16 }
 0x5b2   :  { %s4346_s25 = spop %4345 }
 0x5b3   :  { %s2251_s8 = smul.f32 0.0625, %s4346_s25  ;;  %s2160_s26 = sadd.f32 %s2159_s11, %s2068_s29 }
 0x5b5   :  { %s2252_s9 = smul.f32 2.0, %s2251_s8 }
 0x5b7   :  { %s2253_s28 = ssub.f32 %s2160_s26, %s2252_s9 }
 0x5b9   :  { %v2254_v20 = vstv %s2253_s28 }
 0x5ba   :  { %2256 = vst.msk [vmem:[#allocation19] sm:$0x1] %vm2255_vm4, %v2254_v20 }
 0x5c6   :  { %v2542_v22 = vpop.f32.mrb[12].mxu1 }
 0x5c7   :  { %v2543_v23 = vadd.f32 %v3438_v21, %v2542_v22  ;;  %v3801_v57 = vpop.f32.mrb[13].mxu1 }
 0x5c9   :  { %v5500_v26 = vmax.f32 %v2543_v23, 0.0 }
 0x5cb   :  { %2698 = vmatmul.mubr.f32.vlgmr.msra.gmra.mrb[26].mxu0 %v5500_v26  ;;  %2769 = vmatmul.mubr.f32.vlgmr.msra.gmra.mrb[14].mxu1 %v5500_v26 }
 0x69e   :  { %v2699_v37 = vpop.f32.mrb[26].mxu0  ;;  %v2770_v38 = vpop.f32.mrb[14].mxu1 }
 0x69f   :  { %v2700_v40 = vadd.f32 %v2699_v37, %v5508_v36  ;;  %v2701_v43 = vpop.f32.mrb[27].mxu0  ;;  %v2772_v31 = vpop.f32.mrb[15].mxu1  ;;  %v2771_v44 = vadd.f32 %v2770_v38, %v5521_v27 }
 0x6a0   :  { %v2702_v42 = vadd.f32 %v2701_v43, %v5511_v17  ;;  %v2773_v25 = vadd.f32 %v2772_v31, %v5517_v14 }
 0x6a1   :  { %v3439_v32 = vmul.f32 -1.442695, %v2700_v40 }
 0x6a2   :  { %v3440_v34 = vmul.f32 -1.442695, %v2702_v42  ;;  %v3441_v16 = vmul.f32 -1.442695, %v2773_v25 }
 0x6a3   :  { %4465 = vpow2.f32 %v3439_v32 }
 0x6a4   :  { %4467 = vpow2.f32 %v3440_v34 }
 0x6a5   :  { %4469 = vpow2.f32 %v3441_v16 }
 0x6a6   :  { %4471 = vtanh.f32 %v2771_v44 }
 0x6ad   :  { %v4466_v45 = vpop.eup %4465 }
 0x6ae   :  { %v4468_v46 = vpop.eup %4467  ;;  %v2778_v47 = vadd.f32 1.0, %v4466_v45 }
 0x6af   :  { %v2784_v48 = vadd.f32 1.0, %v4468_v46  ;;  %v4470_v24 = vpop.eup %4469 }
 0x6b0   :  { %4473 = vrcp.f32 %v2778_v47  ;;  %v4472_v29 = vpop.eup %4471  ;;  %v2791_v39 = vadd.f32 1.0, %v4470_v24 }
 0x6b1   :  { %4475 = vrcp.f32 %v2784_v48 }
 0x6b2   :  { %4477 = vrcp.f32 %v2791_v39 }
 0x6ba   :  { %v4474_v49 = vpop.eup %4473 }
 0x6bb   :  { %v4476_v50 = vpop.eup %4475  ;;  %v2795_v51 = vmul.f32 %v4474_v49, %v4472_v29 }
 0x6bc   :  { %v2794_v52 = vmul.f32 0.0, %v4476_v50  ;;  %v4478_v53 = vpop.eup %4477 }
 0x6be   :  { %v2796_v28 = vadd.f32 %v2795_v51, %v2794_v52  }
 0x6c0   :  { %4479 = vtanh.f32 %v2796_v28 }
 0x6ca   :  { %v4480_v55 = vpop.eup %4479 }
 0x6cb   :  { %v2798_v56 = vmul.f32 %v4480_v55, %v4478_v53  }
 0x6cd   :  { %2799 = vst [vmem:[#allocation3] sm:$0xff] %v2798_v56 }
 0x6ce LB: > { %v2809_v58 = vld [vmem:[#allocation13 + $0x8] sm:$0xff]  ;;  %v2808_v41 = vld [vmem:[#allocation13] sm:$0xff]  ;;  %v4795_v1 = vmov 0.0   ;;  %v2811_v12 = vld [vmem:[#allocation13 + $0x18] sm:$0xff]  ;;  %s3445_s13 = sshll.u32 %s4775_s10, 3  ;;  %s2805_s10 = sadd.s32 1, %s4775_s10   ;;  %s4775_s10 = sphi %s5528_s10, %s2805_s10   ;;  %v4771_v56 = vphi %v2798_v56, %v3037_v56   ;;  %v4767_v28 = vphi %v2796_v28, %v3035_v28  }
 0x6cf   : > { %v2813_v59 = vld [vmem:[#allocation13 + $0x28] sm:$0xff]  ;;  %v2812_v35 = vld [vmem:[#allocation13 + $0x20] sm:$0xff]  ;;  %2936 = vmatprep.mubr.f32.mxu0 %v4795_v1  ;;  %3007 = vmatprep.mubr.f32.mxu1 %v4795_v1  ;;  %v2815_v13 = vld [vmem:[#allocation13 + $0x38] sm:$0xff]  ;;  %s3039_s23 = scalar_lea.vmem [#allocation3], %s3445_s13  ;;  %p2802_p3 = scmp.ge.s32.totalorder %s2805_s10, 6  }
 0x6d0   : > { %v4185_v60 = vpack.c.bf16 %v2813_v59, %v2809_v58  ;;  %v2817_v62 = vld [vmem:[#allocation13 + $0x48] sm:$0xff]  ;;  %v4187_v2 = vpack.c.bf16 %v2812_v35, %v2808_v41  ;;  %v2816_v30 = vld [vmem:[#allocation13 + $0x40] sm:$0xff]  ;;  %v4217_v18 = vpack.c.bf16 %v2815_v13, %v2811_v12  ;;  %v2810_v9 = vld [vmem:[#allocation13 + $0x10] sm:$0xff]  ;;  %s4796_s11 = smov (%p2802_p3), [#allocation19]  }
 0x6d1   : > { %v2821_v63 = vld [vmem:[#allocation13 + $0x68] sm:$0xff]  ;;  %v2820_v4 = vld [vmem:[#allocation13 + $0x60] sm:$0xff]  ;;  %v2814_v19 = vld [vmem:[#allocation13 + $0x30] sm:$0xff]  ;;  %s3369_s25 = sshll.u32 (%p2802_p3), %s4796_s11, 4  ;;  %s3370_s25 = int_to_ptr.vmem [resolvable:$true] %s3369_s25 }
 0x6d2   : > { %v4189_v3 = vpack.c.bf16 %v2821_v63, %v2817_v62  ;;  %v2825_v5 = vld [vmem:[#allocation13 + $0x88] sm:$0xff]  ;;  %4186 = vmatprep.subr.bf16.mxu0 %v4185_v60  ;;  %v4191_v7 = vpack.c.bf16 %v2820_v4, %v2816_v30  ;;  %v2824_v8 = vld [vmem:[#allocation13 + $0x80] sm:$0xff]  ;;  %v4219_v20 = vpack.c.bf16 %v2814_v19, %v2810_v9  ;;  %4218 = vmatprep.subr.bf16.mxu1 %v4217_v18  ;;  %v2819_v22 = vld [vmem:[#allocation13 + $0x58] sm:$0xff]  ;;  %s4695_s8 = scalar_lea.vmem (%p2802_p3), %s3370_s25, 16  ;;  %s4699_s26 = scalar_lea.vmem (%p2802_p3), %s3370_s25, 32 }
 0x6d3   : > { %v2829_v6 = vld [vmem:[#allocation13 + $0xa8] sm:$0xff]  ;;  %4188 = vmatpush1.bf16.msra.mxu0 %v4187_v2  ;;  %v2828_v10 = vld [vmem:[#allocation13 + $0xa0] sm:$0xff]  ;;  %v2823_v23 = vld [vmem:[#allocation13 + $0x78] sm:$0xff]  ;;  %p4696_p4 = scmp.ne.s32.totalorder (%p2802_p3), %s3370_s25, %s4695_s8  ;;  %p4700_p5 = scmp.lt.s32.totalorder (%p2802_p3), %s3370_s25, %s3370_s25 }
 0x6d4   : > { %4190 = vmatprep.subr.bf16.mxu0 %v4189_v3  ;;  %v4193_v54 = vpack.c.bf16 %v2829_v6, %v2825_v5  ;;  %v2833_v11 = vld [vmem:[#allocation13 + $0xc8] sm:$0xff]  ;;  %v4195_v21 = vpack.c.bf16 %v2828_v10, %v2824_v8  ;;  %v2818_v57 = vld [vmem:[#allocation13 + $0x50] sm:$0xff]  ;;  %v2832_v37 = vld [vmem:[#allocation13 + $0xc0] sm:$0xff]  ;;  %4220 = vmatpush1.bf16.msra.mxu1 %v4219_v20  ;;  %v4221_v40 = vpack.c.bf16 %v2823_v23, %v2819_v22  ;;  %p4701_p6 = scmp.lt.s32.totalorder (%p2802_p3), %s4699_s26, %s4695_s8 }
 0x6d5   : > { %v2837_v15 = vld [vmem:[#allocation13 + $0xe8] sm:$0xff]  ;;  %v2836_v38 = vld [vmem:[#allocation13 + $0xe0] sm:$0xff]  ;;  %v2822_v43 = vld [vmem:[#allocation13 + $0x70] sm:$0xff] }
 0x6d6   : > { %v4197_v33 = vpack.c.bf16 %v2837_v15, %v2833_v11  ;;  %v2841_v31 = vld [vmem:[#allocation13 + $0x108] sm:$0xff]  ;;  %v4223_v32 = vpack.c.bf16 %v2822_v43, %v2818_v57  ;;  %v2827_v34 = vld [vmem:[#allocation13 + $0x98] sm:$0xff]  ;;  %4222 = vmatprep.subr.bf16.mxu1 %v4221_v40  ;;  %v2826_v16 = vld [vmem:[#allocation13 + $0x90] sm:$0xff]  ;;  %v4199_v45 = vpack.c.bf16 %v2836_v38, %v2832_v37  ;;  %p4702_p7 = por (%p2802_p3), %p4701_p6, %p4700_p5 }
 0x6d7   : > { %4192 = vmatpush1.bf16.msra.mxu0 %v4191_v7  ;;  %v2845_v42 = vld [vmem:[#allocation13 + $0x128] sm:$0xff]  ;;  %v2831_v25 = vld [vmem:[#allocation13 + $0xb8] sm:$0xff]  ;;  %v2830_v44 = vld [vmem:[#allocation13 + $0xb0] sm:$0xff] }
 0x6d8   : > { %4194 = vmatprep.subr.bf16.mxu0 %v4193_v54  ;;  %v2840_v46 = vld [vmem:[#allocation13 + $0x100] sm:$0xff]  ;;  %v4225_v48 = vpack.c.bf16 %v2831_v25, %v2827_v34  ;;  %v4201_v24 = vpack.c.bf16 %v2845_v42, %v2841_v31  ;;  %4224 = vmatpush1.bf16.msra.mxu1 %v4223_v32  ;;  %v2849_v29 = vld [vmem:[#allocation13 + $0x148] sm:$0xff]  ;;  %v4227_v49 = vpack.c.bf16 %v2830_v44, %v2826_v16  ;;  %v2835_v50 = vld [vmem:[#allocation13 + $0xd8] sm:$0xff]  ;;  %p4703_p8 = pnand (%p2802_p3), %p4702_p7, %p4696_p4 }
 0x6d9   : > { %v2844_v47 = vld [vmem:[#allocation13 + $0x120] sm:$0xff]  ;;  %v2839_v51 = vld [vmem:[#allocation13 + $0xf8] sm:$0xff]  ;;  %v2853_v39 = vld [vmem:[#allocation13 + $0x168] sm:$0xff] }
 0x6da   : > { %4226 = vmatprep.subr.bf16.mxu1 %v4225_v48  ;;  %v4229_v52 = vpack.c.bf16 %v2839_v51, %v2835_v50  ;;  %v2834_v53 = vld [vmem:[#allocation13 + $0xd0] sm:$0xff]  ;;  %v4203_v58 = vpack.c.bf16 %v2844_v47, %v2840_v46  ;;  %v2843_v59 = vld [vmem:[#allocation13 + $0x118] sm:$0xff]  ;;  %v4205_v60 = vpack.c.bf16 %v2853_v39, %v2849_v29  ;;  %v2848_v35 = vld [vmem:[#allocation13 + $0x140] sm:$0xff] }
 0x6db   : > { %4196 = vmatpush1.bf16.msra.mxu0 %v4195_v21  ;;  %v2838_v55 = vld [vmem:[#allocation13 + $0xf0] sm:$0xff]  ;;  %v2847_v41 = vld [vmem:[#allocation13 + $0x138] sm:$0xff]  ;;  %v2852_v62 = vld [vmem:[#allocation13 + $0x160] sm:$0xff] }
 0x6dc   : > { %4198 = vmatprep.subr.bf16.mxu0 %v4197_v33  ;;  %4228 = vmatpush1.bf16.msra.mxu1 %v4227_v49  ;;  %v2857_v63 = vld [vmem:[#allocation13 + $0x188] sm:$0xff]  ;;  %v4231_v1 = vpack.c.bf16 %v2838_v55, %v2834_v53  ;;  %v4233_v3 = vpack.c.bf16 %v2847_v41, %v2843_v59  ;;  %v2842_v30 = vld [vmem:[#allocation13 + $0x110] sm:$0xff]  ;;  %v2851_v5 = vld [vmem:[#allocation13 + $0x158] sm:$0xff]  ;;  %v4207_v7 = vpack.c.bf16 %v2852_v62, %v2848_v35 }
 0x6dd   : > { %v2861_v2 = vld [vmem:[#allocation13 + $0x1a8] sm:$0xff]  ;;  %4230 = vmatprep.subr.bf16.mxu1 %v4229_v52  ;;  %v2846_v4 = vld [vmem:[#allocation13 + $0x130] sm:$0xff]  ;;  %v2855_v6 = vld [vmem:[#allocation13 + $0x178] sm:$0xff] }
 0x6de   : > { %v4209_v8 = vpack.c.bf16 %v2861_v2, %v2857_v63  ;;  %v2856_v10 = vld [vmem:[#allocation13 + $0x180] sm:$0xff]  ;;  %v2865_v11 = vld [vmem:[#allocation13 + $0x1c8] sm:$0xff]  ;;  %v4235_v12 = vpack.c.bf16 %v2846_v4, %v2842_v30  ;;  %v4237_v15 = vpack.c.bf16 %v2855_v6, %v2851_v5  ;;  %v2850_v18 = vld [vmem:[#allocation13 + $0x150] sm:$0xff] }
 0x6df   : > { %4200 = vmatpush1.bf16.msra.mxu0 %v4199_v45  ;;  %v2860_v54 = vld [vmem:[#allocation13 + $0x1a0] sm:$0xff]  ;;  %v2869_v13 = vld [vmem:[#allocation13 + $0x1e8] sm:$0xff]  ;;  %v2854_v9 = vld [vmem:[#allocation13 + $0x170] sm:$0xff] }
 0x6e0   : > { %4202 = vmatprep.subr.bf16.mxu0 %v4201_v24  ;;  %4232 = vmatpush1.bf16.msra.mxu1 %v4231_v1  ;;  %v2859_v19 = vld [vmem:[#allocation13 + $0x198] sm:$0xff]  ;;  %v4211_v21 = vpack.c.bf16 %v2860_v54, %v2856_v10  ;;  %v4213_v22 = vpack.c.bf16 %v2869_v13, %v2865_v11  ;;  %v2864_v23 = vld [vmem:[#allocation13 + $0x1c0] sm:$0xff]  ;;  %v4239_v33 = vpack.c.bf16 %v2854_v9, %v2850_v18  ;;  %v2858_v38 = vld [vmem:[#allocation13 + $0x190] sm:$0xff] }
 0x6e1   : > { %4234 = vmatprep.subr.bf16.mxu1 %v4233_v3  ;;  %v2863_v20 = vld [vmem:[#allocation13 + $0x1b8] sm:$0xff]  ;;  %v2868_v57 = vld [vmem:[#allocation13 + $0x1e0] sm:$0xff]  ;;  %v2862_v40 = vld [vmem:[#allocation13 + $0x1b0] sm:$0xff] }
 0x6e2   : > { %v4241_v37 = vpack.c.bf16 %v2863_v20, %v2859_v19  ;;  %v2867_v43 = vld [vmem:[#allocation13 + $0x1d8] sm:$0xff]  ;;  %v4215_v42 = vpack.c.bf16 %v2868_v57, %v2864_v23  ;;  %v4243_v32 = vpack.c.bf16 %v2862_v40, %v2858_v38  ;;  %v2866_v25 = vld [vmem:[#allocation13 + $0x1d0] sm:$0xff]  ;;  %v3171_v30 = vld [vmem:[#allocation16] sm:$0xff] (%p2802_p3) }
 0x6e3   : > { %4204 = vmatpush1.bf16.msra.mxu0 %v4203_v58  ;;  %v2871_v31 = vld [vmem:[#allocation13 + $0x1f8] sm:$0xff]  ;;  %v2870_v16 = vld [vmem:[#allocation13 + $0x1f0] sm:$0xff]  ;;  %v3172_v4 = vld [vmem:[#allocation16 + $0x8] sm:$0xff] (%p2802_p3) }
 0x6e4   : > { %4206 = vmatprep.subr.bf16.mxu0 %v4205_v60  ;;  %4236 = vmatpush1.bf16.msra.mxu1 %v4235_v12  ;;  %v4245_v34 = vpack.c.bf16 %v2871_v31, %v2867_v43  ;;  %v4247_v44 = vpack.c.bf16 %v2870_v16, %v2866_v25  ;;  %v3173_v5 = vld [vmem:[#allocation16 + $0x10] sm:$0xff] (%p2802_p3)  ;;  %v4282_v6 = vpack.c.bf16 (%p2802_p3), %v3172_v4, %v3171_v30  ;;  %v3175_v10 = vld [vmem:[#allocation16 + $0x20] sm:$0xff] (%p2802_p3)  ;;  %v3176_v54 = vld [vmem:[#allocation16 + $0x28] sm:$0xff] (%p2802_p3) }
 0x6e5   : > { %4238 = vmatprep.subr.bf16.mxu1 %v4237_v15  ;;  %v3047_v11 = vld [vmem:[#allocation15] sm:$0xff] (%p2802_p3)  ;;  %v3048_v12 = vld [vmem:[#allocation15 + $0x8] sm:$0xff] (%p2802_p3)  ;;  %v3049_v15 = vld [vmem:[#allocation15 + $0x10] sm:$0xff] (%p2802_p3) }
 0x6e6   :  { %v4249_v13 = vpack.c.bf16 (%p2802_p3), %v3048_v12, %v3047_v11  ;;  %v3177_v18 = vld [vmem:[#allocation16 + $0x30] sm:$0xff] (%p2802_p3)  ;;  %v3178_v9 = vld [vmem:[#allocation16 + $0x38] sm:$0xff] (%p2802_p3)  ;;  %v3179_v57 = vld [vmem:[#allocation16 + $0x40] sm:$0xff] (%p2802_p3) }
 0x6e7   : > { %4208 = vmatpush1.bf16.msra.mxu0 %v4207_v7  ;;  %v3174_v7 = vld [vmem:[#allocation16 + $0x18] sm:$0xff] (%p2802_p3)  ;;  %v3055_v40 = vld [vmem:[#allocation15 + $0x40] sm:$0xff] (%p2802_p3)  ;;  %v3056_v43 = vld [vmem:[#allocation15 + $0x48] sm:$0xff] (%p2802_p3) }
 0x6e8   : > { %4210 = vmatprep.subr.bf16.mxu0 %v4209_v8  ;;  %4240 = vmatpush1.bf16.msra.mxu1 %v4239_v33  ;;  %v4285_v8 = vpack.c.bf16 (%p2802_p3), %v3174_v7, %v3173_v5  ;;  %v3054_v23 = vld [vmem:[#allocation15 + $0x38] sm:$0xff] (%p2802_p3)  ;;  %v3180_v33 = vld [vmem:[#allocation16 + $0x48] sm:$0xff] (%p2802_p3)  ;;  %v3181_v31 = vld [vmem:[#allocation16 + $0x50] sm:$0xff] (%p2802_p3) }
 0x6e9   : > { %4242 = vmatprep.subr.bf16.mxu1 %v4241_v37  ;;  %v4294_v38 = vpack.c.bf16 (%p2802_p3), %v3180_v33, %v3179_v57  ;;  %v3057_v25 = vld [vmem:[#allocation15 + $0x50] sm:$0xff] (%p2802_p3)  ;;  %v3058_v16 = vld [vmem:[#allocation15 + $0x58] sm:$0xff] (%p2802_p3)  ;;  %v3273_v7 = vld [vmem:[#allocation18 + $0x40] sm:$0xff] (%p2802_p3) }
 0x6ea   :  { %v3271_v4 = vld [vmem:[#allocation18 + $0x30] sm:$0xff] (%p2802_p3)  ;;  %v3272_v5 = vld [vmem:[#allocation18 + $0x38] sm:$0xff] (%p2802_p3) }
 0x6eb   : > { %4212 = vmatpush1.bf16.msra.mxu0 %v4211_v21  ;;  %v4291_v21 = vpack.c.bf16 (%p2802_p3), %v3178_v9, %v3177_v18  ;;  %v3276_v11 = vld [vmem:[#allocation18 + $0x58] sm:$0xff] (%p2802_p3) }
 0x6ec   : > { %4214 = vmatprep.subr.bf16.mxu0 %v4213_v22  ;;  %4244 = vmatpush1.bf16.msra.mxu1 %v4243_v32  ;;  %v3053_v22 = vld [vmem:[#allocation15 + $0x30] sm:$0xff] (%p2802_p3)  ;;  %v4265_v32 = vpack.c.bf16 (%p2802_p3), %v3056_v43, %v3055_v40 }
 0x6ed   : > { %4246 = vmatprep.subr.bf16.mxu1 %v4245_v34  ;;  %v4261_v37 = vpack.c.bf16 (%p2802_p3), %v3054_v23, %v3053_v22 }
 0x6ef   : > { %4216 = vmatpush1.bf16.msra.mxu0 %v4215_v42  ;;  %v3182_v42 = vld [vmem:[#allocation16 + $0x58] sm:$0xff] (%p2802_p3) }
 0x6f0   : > { %4248 = vmatpush1.bf16.msra.mxu1 %v4247_v44  ;;  %4250 = vmatprep.subr.bf16.mxu0 (%p2802_p3), %v4249_v13  ;;  %v4297_v34 = vpack.c.bf16 (%p2802_p3), %v3182_v42, %v3181_v31  ;;  %v3183_v44 = vld [vmem:[#allocation16 + $0x60] sm:$0xff] (%p2802_p3) }
 0x6f1   :  { %4281 = vmatprep.subr.bf16.mxu1 (%p2802_p3), %v4792_v61 }
 0x6f2   : > { %2937 = vmatmul.mubr.f32.vlgmr.msra.gmra.mrb[0].mxu0 %v4771_v56 }
 0x6f3   : > { %3008 = vmatmul.mubr.f32.vlgmr.msra.gmra.mrb[0].mxu1 %v4771_v56  ;;  %4252 = vmatpush3.bf16.msra.mxu0 (%p2802_p3), %v4249_v13  ;;  %v3277_v13 = vld [vmem:[#allocation18 + $0x60] sm:$0xff] (%p2802_p3) }
 0x6f4   :  { %3875 = vmatprep.mubr.msk.f32.mxu1 (%p2802_p3), %vm4793_vm2, %v4790_v0  ;;  %4283 = vmatpush3.bf16.msra.mxu1 (%p2802_p3), %v4282_v6  ;;  %v4315_v6 = vpack.c.bf16 (%p2802_p3), %v3272_v5, %v3271_v4 }
 0x6f5   :  { %4284 = vmatprep.subr.bf16.mxu1 (%p2802_p3), %v4792_v61 }
 0x6f8   :  { %4286 = vmatpush3.bf16.msra.mxu1 (%p2802_p3), %v4285_v8  ;;  %v3274_v8 = vld [vmem:[#allocation18 + $0x48] sm:$0xff] (%p2802_p3) }
 0x6f9   :  { %4287 = vmatprep.subr.bf16.mxu1 (%p2802_p3), %v4792_v61 }
 0x7c5   : > { %v2938_v45 = vpop.f32.mrb[0].mxu0 }
 0x7c6   : > { %v2939_v46 = vadd.f32 %v2938_v45, %v5508_v36  ;;  %v2940_v47 = vpop.f32.mrb[1].mxu0  ;;  %v3009_v49 = vpop.f32.mrb[0].mxu1  ;;  %v3050_v36 = vld [vmem:[#allocation15 + $0x18] sm:$0xff] (%p2802_p3)  ;;  %v3184_v45 = vld [vmem:[#allocation16 + $0x68] sm:$0xff] (%p2802_p3) }
 0x7c7   : > { %v2941_v48 = vadd.f32 %v2940_v47, %v5511_v17  ;;  %v3011_v50 = vpop.f32.mrb[1].mxu1  ;;  %v3010_v52 = vadd.f32 %v3009_v49, %v5521_v27  ;;  %v4288_v17 = vpack.c.bf16 (%p2802_p3), %v3176_v54, %v3175_v10  ;;  %v3051_v27 = vld [vmem:[#allocation15 + $0x20] sm:$0xff] (%p2802_p3)  ;;  %v4300_v47 = vpack.c.bf16 (%p2802_p3), %v3184_v45, %v3183_v44  ;;  %v3186_v49 = vld [vmem:[#allocation16 + $0x78] sm:$0xff] (%p2802_p3)  ;;  %v3275_v54 = vld [vmem:[#allocation18 + $0x50] sm:$0xff] (%p2802_p3) }
 0x7c8   : > { %v3442_v24 = vmul.f32 -1.442695, %v2939_v46  ;;  %v3012_v51 = vadd.f32 %v3011_v50, %v5517_v14  ;;  %v4253_v14 = vpack.c.bf16 (%p2802_p3), %v3050_v36, %v3049_v15  ;;  %v4269_v46 = vpack.c.bf16 (%p2802_p3), %v3058_v16, %v3057_v25  ;;  %v3278_v15 = vld [vmem:[#allocation18 + $0x68] sm:$0xff] (%p2802_p3) }
 0x7c9   : > { %v3443_v29 = vmul.f32 -1.442695, %v2941_v48  ;;  %4289 = vmatpush3.bf16.msra.mxu1 (%p2802_p3), %v4288_v17  ;;  %v3059_v48 = vld [vmem:[#allocation15 + $0x60] sm:$0xff] (%p2802_p3)  ;;  %v4318_v10 = vpack.c.bf16 (%p2802_p3), %v3274_v8, %v3273_v7  ;;  %v4321_v12 = vpack.c.bf16 (%p2802_p3), %v3276_v11, %v3275_v54  ;;  %v4324_v36 = vpack.c.bf16 (%p2802_p3), %v3278_v15, %v3277_v13  ;;  %v3280_v17 = vld [vmem:[#allocation18 + $0x78] sm:$0xff] (%p2802_p3) }
 0x7ca   : > { %4481 = vpow2.f32 %v3442_v24  ;;  %v3444_v39 = vmul.f32 -1.442695, %v3012_v51  ;;  %4254 = vmatprep.subr.bf16.mxu0 (%p2802_p3), %v4253_v14  ;;  %4290 = vmatprep.subr.bf16.mxu1 (%p2802_p3), %v4792_v61  ;;  %v3060_v24 = vld [vmem:[#allocation15 + $0x68] sm:$0xff] (%p2802_p3) }
 0x7cb   : > { %4483 = vpow2.f32 %v3443_v29  ;;  %4256 = vmatpush3.bf16.msra.mxu0 (%p2802_p3), %v4253_v14  ;;  %v3185_v29 = vld [vmem:[#allocation16 + $0x70] sm:$0xff] (%p2802_p3)  ;;  %v4273_v50 = vpack.c.bf16 (%p2802_p3), %v3060_v24, %v3059_v48 }
 0x7cc   : > { %4485 = vpow2.f32 %v3444_v39  ;;  %v4303_v51 = vpack.c.bf16 (%p2802_p3), %v3186_v49, %v3185_v29  ;;  %v3061_v39 = vld [vmem:[#allocation15 + $0x70] sm:$0xff] (%p2802_p3) }
 0x7cd   : > { %4487 = vtanh.f32 %v3010_v52  ;;  %4292 = vmatpush3.bf16.msra.mxu1 (%p2802_p3), %v4291_v21  ;;  %v3062_v52 = vld [vmem:[#allocation15 + $0x78] sm:$0xff] (%p2802_p3) }
 0x7ce   :  { %4293 = vmatprep.subr.bf16.mxu1 (%p2802_p3), %v4792_v61 }
 0x7d1   :  { %4295 = vmatpush3.bf16.msra.mxu1 (%p2802_p3), %v4294_v38 }
 0x7d2   :  { %4296 = vmatprep.subr.bf16.mxu1 (%p2802_p3), %v4792_v61 }
 0x7d4   : > { %v4482_v53 = vpop.eup %4481 }
 0x7d5   : > { %v4484_v56 = vpop.eup %4483  ;;  %v3017_v55 = vadd.f32 1.0, %v4482_v53  ;;  %4298 = vmatpush3.bf16.msra.mxu1 (%p2802_p3), %v4297_v34  ;;  %v4277_v53 = vpack.c.bf16 (%p2802_p3), %v3062_v52, %v3061_v39 }
 0x7d6   : > { %v3023_v58 = vadd.f32 1.0, %v4484_v56  ;;  %v4486_v59 = vpop.eup %4485  ;;  %4299 = vmatprep.subr.bf16.mxu1 (%p2802_p3), %v4792_v61 }
 0x7d7   : > { %4489 = vrcp.f32 %v3017_v55  ;;  %v4488_v41 = vpop.eup %4487  ;;  %v3030_v35 = vadd.f32 1.0, %v4486_v59  ;;  %v3266_v55 = vld [vmem:[#allocation18 + $0x8] sm:$0xff] (%p2802_p3) }
 0x7d8   : > { %4491 = vrcp.f32 %v3023_v58 }
 0x7d9   : > { %4493 = vrcp.f32 %v3030_v35  ;;  %4301 = vmatpush3.bf16.msra.mxu1 (%p2802_p3), %v4300_v47 }
 0x7da   :  { %4302 = vmatprep.subr.bf16.mxu1 (%p2802_p3), %v4792_v61 }
 0x7dd   :  { %4304 = vmatpush3.bf16.msra.mxu1 (%p2802_p3), %v4303_v51 }
 0x7e0   :  { %3876 = vmatmul.mubr.f32.vlgmr.msra.gmra.mrb[0].mxu1 (%p2802_p3), %v5500_v26  ;;  %v3270_v26 = vld [vmem:[#allocation18 + $0x28] sm:$0xff] (%p2802_p3) }
 0x7e1   : > { %v4490_v60 = vpop.eup %4489 }
 0x7e2   : > { %v4492_v62 = vpop.eup %4491  ;;  %v3034_v63 = vmul.f32 %v4490_v60, %v4488_v41  ;;  %v3267_v41 = vld [vmem:[#allocation18 + $0x10] sm:$0xff] (%p2802_p3)  ;;  %v3268_v60 = vld [vmem:[#allocation18 + $0x18] sm:$0xff] (%p2802_p3) }
 0x7e3   : > { %v3033_v1 = vmul.f32 %v4767_v28, %v4492_v62  ;;  %v4494_v2 = vpop.eup %4493  ;;  %v4309_v62 = vpack.c.bf16 (%p2802_p3), %v3268_v60, %v3267_v41 }
 0x7e5   : > { %v3035_v28 = vadd.f32 %v3034_v63, %v3033_v1   ;;  %v3269_v1 = vld [vmem:[#allocation18 + $0x20] sm:$0xff] (%p2802_p3) }
 0x7e7   : > { %4495 = vtanh.f32 %v3035_v28  ;;  %v3052_v28 = vld [vmem:[#allocation15 + $0x28] sm:$0xff] (%p2802_p3) }
 0x7e8   :  { %v4257_v19 = vpack.c.bf16 (%p2802_p3), %v3052_v28, %v3051_v27  ;;  %v3447_v27 = vld [vmem:[%s5634_s17] ss:$0 sm:$0xff] (%p2802_p3) }
 0x7ea   :  { %4258 = vmatprep.subr.bf16.mxu0 (%p2802_p3), %v4257_v19 }
 0x7eb   :  { %4260 = vmatpush3.bf16.msra.mxu0 (%p2802_p3), %v4257_v19 }
 0x7ec   :  { %4262 = vmatprep.subr.bf16.mxu0 (%p2802_p3), %v4261_v37 }
 0x7ee   :  { %2804 = sbr.rel (!%p2802_p3) target bundleno = 1742 (0x6ce), region = 179 }
 0x7ef   :  { %4264 = vmatpush3.bf16.msra.mxu0 (%p2802_p3), %v4261_v37 }
 0x7f0   :  { %4266 = vmatprep.subr.bf16.mxu0 (%p2802_p3), %v4265_v32 }
 0x7f1   : > { %v4496_v3 = vpop.eup %4495 }
 0x7f2   : > { %v3037_v56 = vmul.f32 %v4496_v3, %v4494_v2   ;;  %v4312_v3 = vpack.c.bf16 (%p2802_p3), %v3270_v26, %v3269_v1 }
 0x7f3   :  { %4268 = vmatpush3.bf16.msra.mxu0 (%p2802_p3), %v4265_v32 }
 0x7f4   : > { %3040 = vst [vmem:[%s3039_s23] sm:$0xff] %v3037_v56  ;;  %4270 = vmatprep.subr.bf16.mxu0 (%p2802_p3), %v4269_v46  ;;  %v3265_v56 = vld [vmem:[#allocation18] sm:$0xff] (%p2802_p3) }
 0x7f5   :  { %v4306_v59 = vpack.c.bf16 %v3266_v55, %v3265_v56 }
 0x7f7   :  { %4272 = vmatpush3.bf16.msra.mxu0 %v4269_v46 }
 0x7f8   :  { %4274 = vmatprep.subr.bf16.mxu0 %v4273_v50 }
 0x7fb   :  { %v3041_v20 = vld [vmem:[#allocation3] sm:$0xff]  ;;  %4276 = vmatpush3.bf16.msra.mxu0 %v4273_v50  ;;  %v3042_v58 = vld [vmem:[#allocation3 + $0x8] sm:$0xff]  ;;  %v3043_v35 = vld [vmem:[#allocation3 + $0x10] sm:$0xff] }
 0x7fc   :  { %3834 = vmatprep.mubr.f32.mxu0 %v3041_v20  ;;  %4278 = vmatprep.subr.bf16.mxu0 %v4277_v53  ;;  %v3044_v63 = vld [vmem:[#allocation3 + $0x18] sm:$0xff]  ;;  %v3045_v2 = vld [vmem:[#allocation3 + $0x20] sm:$0xff]  ;;  %v3046_v30 = vld [vmem:[#allocation3 + $0x28] sm:$0xff] }
 0x7fd   :  { %v3446_v20 = vld [vmem:[%s5632_s15] ss:$0 sm:$0xff] }
 0x7ff   :  { %4280 = vmatpush3.bf16.msra.mxu0 %v4277_v53 }
 0x800   :  { %4305 = vmatprep.subr.bf16.mxu0 %v4792_v61 }
 0x802   :  { %3835 = vmatmul.mubr.f32.vlgmr.msra.gmra.mrb[0].mxu0 %v3042_v58 }
 0x803   :  { %4307 = vmatpush3.bf16.msra.mxu0 %v4306_v59  ;;  %3837 = vmatprep.mubr.f32.mxu0 %v3043_v35 }
 0x804   :  { %4308 = vmatprep.subr.bf16.mxu0 %v4792_v61 }
 0x806   :  { %3838 = vmatmul.mubr.f32.gmra.mrb[2].mxu0 %v3044_v63 }
 0x807   :  { %4310 = vmatpush3.bf16.msra.mxu0 %v4309_v62  ;;  %3840 = vmatprep.mubr.f32.mxu0 %v3045_v2 }
 0x808   :  { %4311 = vmatprep.subr.bf16.mxu0 %v4792_v61 }
 0x80a   :  { %3841 = vmatmul.mubr.f32.gmra.mrb[4].mxu0 %v3046_v30 }
 0x80b   :  { %4313 = vmatpush3.bf16.msra.mxu0 %v4312_v3  ;;  %3910 = vmatprep.mubr.msk.f32.mxu0 %vm4793_vm2, %v4790_v0  ;;  %v3279_v0 = vld [vmem:[#allocation18 + $0x70] sm:$0xff] }
 0x80c   :  { %4314 = vmatprep.subr.bf16.mxu0 %v4792_v61  ;;  %v4327_v14 = vpack.c.bf16 %v3280_v17, %v3279_v0 }
 0x80f   :  { %4316 = vmatpush3.bf16.msra.mxu0 %v4315_v6 }
 0x810   :  { %4317 = vmatprep.subr.bf16.mxu0 %v4792_v61 }
 0x813   :  { %4319 = vmatpush3.bf16.msra.mxu0 %v4318_v10 }
 0x814   :  { %4320 = vmatprep.subr.bf16.mxu0 %v4792_v61 }
 0x817   :  { %4322 = vmatpush3.bf16.msra.mxu0 %v4321_v12 }
 0x818   :  { %4323 = vmatprep.subr.bf16.mxu0 %v4792_v61 }
 0x81b   :  { %4325 = vmatpush3.bf16.msra.mxu0 %v4324_v36 }
 0x81c   :  { %4326 = vmatprep.subr.bf16.mxu0 %v4792_v61 }
 0x81f   :  { %4328 = vmatpush3.bf16.msra.mxu0 %v4327_v14 }
 0x8b3   :  { %v3260_v28 = vpop.f32.mrb[0].mxu1 }
 0x8b4   :  { %v3261_v18 = vadd.f32 %v3447_v27, %v3260_v28  ;;  %v3877_v9 = vpop.f32.mrb[1].mxu1 }
 0x8b6   :  { %v3264_v19 = vmax.f32 %v3261_v18, 0.0 }
 0x8b8   :  { %3911 = vmatmul.mubr.f32.vlgmr.msra.gmra.mrb[6].mxu0 %v3264_v19 }
 0x8d5   :  { %v3836_v21 = vpop.f32.mrb[0].mxu0 }
 0x8d6   :  { %v3142_v22 = vadd.f32 %v3836_v21, %v3446_v20  ;;  %v3136_v61 = vpop.f32.mrb[1].mxu0 }
 0x8d7   :  { %v3137_v23 = vadd.f32 %v3446_v20, %v3136_v61 }
 0x8d8   :  { %3166 = vst [vmem:[%s5637_s20 + $0x8] sm:$0xff] %v3142_v22 }
 0x8d9   :  { %3165 = vst [vmem:[%s5637_s20] sm:$0xff] %v3137_v23  ;;  %v3839_v57 = vpop.f32.mrb[2].mxu0 }
 0x8da   :  { %v3152_v33 = vadd.f32 %v3839_v57, %v3446_v20  ;;  %v3146_v37 = vpop.f32.mrb[3].mxu0 }
 0x8db   :  { %v3147_v38 = vadd.f32 %v3446_v20, %v3146_v37 }
 0x8dc   :  { %3168 = vst [vmem:[%s5637_s20 + $0x18] sm:$0xff] %v3152_v33 }
 0x8dd   :  { %3167 = vst [vmem:[%s5637_s20 + $0x10] sm:$0xff] %v3147_v38  ;;  %v3842_v40 = vpop.f32.mrb[4].mxu0 }
 0x8de   :  { %v3162_v43 = vadd.f32 %v3842_v40, %v3446_v20  ;;  %v3156_v31 = vpop.f32.mrb[5].mxu0 }
 0x8df   :  { %v3157_v42 = vadd.f32 %v3446_v20, %v3156_v31 }
 0x8e0   :  { %3170 = vst [vmem:[%s5637_s20 + $0x28] sm:$0xff] %v3162_v43 }
 0x8e1   :  { %3169 = vst [vmem:[%s5637_s20 + $0x20] sm:$0xff] %v3157_v42 }
 0x8e2   :  { %4706 = shalt.err (!%p4703_p8)
}
 0x8e3   :  { %s4707_s21 = scalar_lea.hbm %s5639_s22, 16 }
 0x8e4   :  { %p4708_p9 = scmp.ne.s32.totalorder %s5639_s22, %s4707_s21  ;;  %p4711_p10 = scmp.lt.u32.totalorder %s4707_s21, %s5639_s22 }
 0x8e6   :  { %p4713_p11 = pnand %p4711_p10, %p4708_p9 }
 0x8e8   :  { %4716 = shalt.err (!%p4713_p11)
}
 0x8e9   :  { %3372 = dma.vmem_to_hbm [thread:$0]  %s3370_s25, 16, %s5639_s22, [#allocation6]  }
 0x8ea   :  { %s5663_s14 = sld [smem:[#allocation33_spill]]  ;;  %s5664_s1 = sld [smem:[#allocation34_spill]] }
 0x8f0   :  { %v3448_v32 = vld [vmem:[%s5663_s14] ss:$0 sm:$0xff] }
 0x98b   :  { %v3354_v34 = vpop.f32.mrb[6].mxu0 }
 0x98c   :  { %v3355_v25 = vadd.f32 %v3448_v32, %v3354_v34  ;;  %v3912_v16 = vpop.f32.mrb[7].mxu0 }
 0x98e   :  { %3358 = vst [vmem:[%s5664_s1] sm:$0xff] %v3355_v25 }
 0x98f   :  { %4751 = dma.done.wait [#allocation6], 16  }
 0x990   :  { %4752 = vsyncadd [#allocation6], 4294967280 }
 0x991   :  { %3380 = vsyncpa [#allocation5], 1 }
 0x992   :  { %3381 = vsyncpa [#allocation8], 1 }
 0x993   :  { %3382 = vsyncpa [#allocation11], 1 }
 0x994   :  { %3383 = vsyncpa [#allocation14], 1 }
 0x995   :  { %3384 = vsyncpa [#allocation17], 1 }
 0x996   :  { %3385 = vsyncpa [#allocation6], 1 }

</bundles_post_ra>
